<compile_context>
chip_gen: v7x
topology: tpu7x:2x2x1
jax: 0.10.0
libtpu: 0.0.40
codegen_flags: <defaults>
</compile_context>

<pallas_src>
import jax
import jax.numpy as jnp
from jax.experimental import pallas as pl
from jax.experimental.pallas import tpu as pltpu

# ----- model / shape constants (ConvModel_2 with in_channel=2, L=914) -----
K1, K2, K3 = 3, 7, 9
STRIDE3 = 3
POOL = 100
BN_EPS = 1e-5

N = 2
C0 = 2
C1, C2, C3 = 6 * C0, 16 * C0, 24 * C0          # 12, 32, 48
L = 914
L1 = L - (K1 - 1)                               # 912
L2 = L1 - (K2 - 1)                              # 906 valid conv2 rows / batch
L3 = (L2 - K3) // STRIDE3 + 1                   # 300 conv3 rows / batch
P = L3 // POOL                                  # 3 pool windows / batch

# ----- phase-packed geometry: h2 row u = 3*t + r  ->  packed row t, lane group r -----
TPB = 304                       # packed rows per batch (304*3 = 912 h2 rows >= L2)
F1 = (K1 + K2 - 1) * C0         # 18  combined conv1+conv2 im2col width (one phase)
F1P = STRIDE3 * F1              # 54  phase-packed im2col width
W1C = K2 * C1                   # 84  conv2 LHS width (one phase)
W1CP = STRIDE3 * W1C            # 252 phase-packed conv1 output width
C2P = STRIDE3 * C2              # 96  phase-packed h2 width (dense-ish lanes)
CH = 152                        # conv1/conv2 chunk in packed rows; 2 chunks / batch
H2STR = TPB + 8                 # 312 per-batch row stride of the packed-h2 scratch
XPAD = STRIDE3 * TPB + 10       # 922 padded x length used by the im2col

# Invariants that keep pad-derived garbage out of BN stats / pooling:
#  * packed h2 rows >= 302 (built from zero-padded x) and the zeroed scratch tail rows
#    [TPB, TPB+8) only feed h3 rows >= L3 = 300,
#  * BN sums mask rows >= L3; the P pooling windows cover rows [0, P*POOL) ⊆ [0, L3).
assert STRIDE3 * TPB >= L2                       # every valid h2 row is represented
assert L3 + (K3 // STRIDE3 - 1) <= TPB           # valid conv3 rows read only real data
assert TPB + (K3 // STRIDE3 - 1) < H2STR         # conv3 never reads past a batch strip
assert P * POOL <= L3 <= TPB
assert TPB % 8 == 0 and CH % 8 == 0 and TPB % CH == 0 and H2STR % 8 == 0
assert 3 * (TPB - 1) + 10 < XPAD


def conv_model2_kernel(xp_ref, w1_ref, b1_ref, w2_ref, b2_ref, w3_ref, b3_ref,
                       gamma_ref, beta_ref, wl_ref, bl_ref, out_ref,
                       h2p_scr, h3_scr):
    f32 = jnp.float32
    w1 = w1_ref[...]                      # (54, 252) phase-blockdiag banded conv1 wt
    b1 = b1_ref[...]                      # (1, 252)
    w2 = w2_ref[...]                      # (252, 96) phase-blockdiag conv2 weight
    b2 = b2_ref[...]                      # (1, 96)
    b3 = b3_ref[...]                      # (1, 48)

    # Zero the per-batch tail pad rows of the packed-h2 scratch: conv3 (taps j=1,2)
    # reads up to packed row TPB+1 of each 312-row strip; those reads must be defined.
    zpad = jnp.zeros((H2STR - TPB, C2P), f32)
    for n in range(N):
        h2p_scr[pl.ds(n * H2STR + TPB, H2STR - TPB), :] = zpad

    # ---------- conv1 + ReLU + conv2 + ReLU: two dense matmuls per chunk ----------
    # xp row t of a batch holds the x window feeding h2 rows 3t, 3t+1, 3t+2; the
    # block-banded / block-diagonal weights emit h2 already phase-packed
    # (h2p[t, r*C2+c] = h2[3t+r, c]), so there are no tap concats, strided loads or
    # reshapes anywhere, and the scratch stores are 96-lane dense.
    for c in range(N * TPB // CH):
        n, off = c // (TPB // CH), (c % (TPB // CH)) * CH
        xe = xp_ref[pl.ds(c * CH, CH), :]                                  # (152, 54)
        t1 = jnp.maximum(jnp.dot(xe, w1, preferred_element_type=f32) + b1, 0.0)
        h2 = jnp.maximum(jnp.dot(t1, w2, preferred_element_type=f32) + b2, 0.0)
        h2p_scr[pl.ds(n * H2STR + off, CH), :] = h2                        # (152, 96)

    # ---------- conv3 (k=9, stride=3): 3 dense (TPB,96)@(96,48) matmuls / batch ----
    # h3[t] = b3 + sum_j packed[t+j] @ W3_j.  BatchNorm sums are accumulated as
    # (8, C3) sublane partials with plain VPU adds; the single cross-sublane
    # reduction happens once after the loop.
    s1p = jnp.zeros((8, C3), f32)
    s2p = jnp.zeros((8, C3), f32)
    valid = jax.lax.broadcasted_iota(jnp.int32, (TPB, C3), 0) < L3
    for n in range(N):
        base = n * H2STR
        acc = jnp.dot(h2p_scr[pl.ds(base + 0, TPB), :], w3_ref[0],
                      preferred_element_type=f32)
        acc = acc + jnp.dot(h2p_scr[pl.ds(base + 1, TPB), :], w3_ref[1],
                            preferred_element_type=f32)
        acc = acc + jnp.dot(h2p_scr[pl.ds(base + 2, TPB), :], w3_ref[2],
                            preferred_element_type=f32)
        h3 = acc + b3                                                      # (304, 48)
        v = jnp.where(valid, h3, 0.0)          # rows >= 300 are pad-derived garbage
        vv = v * v
        for blk in range(TPB // 8):            # static aligned slices -> pure VPU adds
            s1p = s1p + v[8 * blk:8 * blk + 8, :]
            s2p = s2p + vv[8 * blk:8 * blk + 8, :]
        h3_scr[pl.ds(n * TPB, TPB), :] = h3

    s1 = jnp.sum(s1p, axis=0, keepdims=True)                               # (1, C3)
    s2 = jnp.sum(s2p, axis=0, keepdims=True)

    # -------- BatchNorm folded into one per-channel scale/shift (batch stats) ------
    inv_cnt = 1.0 / float(N * L3)
    mean = s1 * inv_cnt
    var = s2 * inv_cnt - mean * mean
    scale = gamma_ref[...] * jax.lax.rsqrt(var + BN_EPS)                   # (1, C3)
    shift = beta_ref[...] - mean * scale                                   # (1, C3)

    # -------- MaxPool1d(100,100) + Linear(P*C3 -> 1) as a VPU reduction ------------
    wl = wl_ref[...]                                                       # (P, C3)
    bl = bl_ref[...]                                                       # (1, 1)
    for n in range(N):
        o = bl
        for p in range(P):
            win = h3_scr[pl.ds(n * TPB + p * POOL, POOL), :]               # (100, C3)
            pooled = jnp.max(win * scale + shift, axis=0, keepdims=True)   # (1, C3)
            o = o + jnp.sum(pooled * wl[p:p + 1, :], axis=-1, keepdims=True)
        out_ref[pl.ds(n, 1), :] = o


def _block_diag3(m):
    r, c = m.shape
    out = jnp.zeros((STRIDE3 * r, STRIDE3 * c), m.dtype)
    for i in range(STRIDE3):
        out = out.at[i * r:(i + 1) * r, i * c:(i + 1) * c].set(m)
    return out


def prepare_params(params):
    """One-time re-layout of the PyTorch parameters into the kernel's packed formats
    (hoisted out of the per-call path)."""
    w1_pt, b1, w2_pt, b2, w3_pt, b3, gamma, beta, wl_pt, bl = params

    # conv1 folded into conv2's tap packing: block-banded (18, 84) weight, so one
    # matmul over the combined 9-tap im2col of x yields the conv2 LHS directly.
    w1m = jnp.transpose(w1_pt, (2, 1, 0)).reshape(K1 * C0, C1)          # [k1*C0+ci, co]
    w1rep = jnp.zeros((F1, W1C), jnp.float32)
    for k2 in range(K2):
        w1rep = w1rep.at[k2 * C0:k2 * C0 + K1 * C0,
                         k2 * C1:(k2 + 1) * C1].set(w1m)
    b1rep = jnp.tile(b1.reshape(1, C1), (1, K2))                        # (1, 84)

    # phase packing (3 conv-output rows per packed row) -> block-diagonal x3
    w1bd = _block_diag3(w1rep)                                          # (54, 252)
    b1bd = jnp.tile(b1rep, (1, STRIDE3))                                # (1, 252)
    w2m = jnp.transpose(w2_pt, (2, 1, 0)).reshape(K2 * C1, C2)          # (84, 32)
    w2bd = _block_diag3(w2m)                                            # (252, 96)
    b2bd = jnp.tile(b2.reshape(1, C2), (1, STRIDE3))                    # (1, 96)

    # conv3 weight keyed by tap j with phase-packed contraction index r*C2+c
    w3m = jnp.transpose(w3_pt, (2, 1, 0)).reshape(K3 // STRIDE3, STRIDE3, C2, C3)
    w3m = w3m.reshape(K3 // STRIDE3, STRIDE3 * C2, C3)                  # (3, 96, 48)

    # PyTorch .view flattens the pooled (C3, P) features channel-major (c*P + p);
    # the kernel pools window-major, so re-order the Linear weight to (P, C3).
    wlr = jnp.transpose(wl_pt.reshape(C3, P))                           # (P, C3)

    return (w1bd, b1bd, w2bd, b2bd, w3m, b3.reshape(1, C3),
            gamma.reshape(1, C3), beta.reshape(1, C3), wlr, bl.reshape(1, 1))


def conv_model2_forward(x_ncl, prepped):
    """x_ncl: PyTorch-layout input (N, C0, L). prepped: prepare_params output."""
    assert x_ncl.shape == (N, C0, L)
    w1bd, b1bd, w2bd, b2bd, w3m, b3r, gr, br, wlr, blr = prepped

    # Combined, phase-packed im2col of the input (only per-call XLA work):
    #   xp[n*TPB + t, r*F1 + j*C0 + ci] = x[n, ci, 3*t + r + j]
    x_nlc = jnp.transpose(x_ncl, (0, 2, 1))                             # (N, L, C0)
    x_pad = jnp.pad(x_nlc, ((0, 0), (0, XPAD - L), (0, 0)))             # (N, 922, C0)
    cols = []
    for r in range(STRIDE3):
        for j in range(K1 + K2 - 1):
            s = r + j
            cols.append(jax.lax.slice_in_dim(x_pad, s, s + STRIDE3 * TPB,
                                             stride=STRIDE3, axis=1))   # (N, 304, 2)
    xp = jnp.concatenate(cols, axis=-1).reshape(N * TPB, F1P)           # (608, 54)

    flops = (2 * N * TPB * (F1P * W1CP + W1CP * C2P)        # conv1+conv2 (as issued)
             + 2 * N * (K3 // STRIDE3) * TPB * C2P * C3)    # conv3
    bytes_accessed = 4 * (xp.size + w1bd.size + b1bd.size + w2bd.size + b2bd.size
                          + w3m.size + wlr.size + 3 * C3 + 1 + N)

    vmem = pl.BlockSpec(memory_space=pltpu.MemorySpace.VMEM)
    return pl.pallas_call(
        conv_model2_kernel,
        out_shape=jax.ShapeDtypeStruct((N, 1), jnp.float32),
        in_specs=[vmem] * 11,
        out_specs=vmem,
        scratch_shapes=[pltpu.VMEM((N * H2STR, C2P), jnp.float32),
                        pltpu.VMEM((N * TPB, C3), jnp.float32)],
        cost_estimate=pl.CostEstimate(flops=int(flops), transcendentals=C3,
                                      bytes_accessed=int(bytes_accessed)),
    )(xp, w1bd, b1bd, w2bd, b2bd, w3m, b3r, gr, br, wlr, blr)


def reference_forward(x_ncl, params):
    """Plain-JAX reference with PyTorch semantics (NCL layout)."""
    w1_pt, b1, w2_pt, b2, w3_pt, b3, gamma, beta, wl_pt, bl = params

    def conv1d(x, w, b, stride=1):
        y = jax.lax.conv_general_dilated(
            x, w, window_strides=(stride,), padding="VALID",
            dimension_numbers=("NCH", "OIH", "NCH"))
        return y + b[None, :, None]

    h = jax.nn.relu(conv1d(x_ncl, w1_pt, b1))
    h = jax.nn.relu(conv1d(h, w2_pt, b2))
    h = conv1d(h, w3_pt, b3, stride=STRIDE3)
    mu = jnp.mean(h, axis=(0, 2), keepdims=True)
    var = jnp.mean((h - mu) ** 2, axis=(0, 2), keepdims=True)
    h = (h - mu) / jnp.sqrt(var + BN_EPS) * gamma[None, :, None] + beta[None, :, None]
    n, c3, l3 = h.shape
    p = l3 // POOL
    h = h[:, :, :p * POOL].reshape(n, c3, p, POOL).max(axis=-1)   # (N, C3, P)
    feat = h.reshape(n, c3 * p)                                   # channel-major .view
    return feat @ wl_pt.T + bl[None, :]


if __name__ == "__main__":
    # L = 914 makes MaxPool1d(100,100) yield exactly 3 windows, matching the model's
    # .view(-1, in_channel*24*3) / Linear(in_channel*24*3, 1).
    key = jax.random.PRNGKey(0)
    ks = jax.random.split(key, 11)
    w1_pt = 0.1 * jax.random.normal(ks[0], (C1, C0, K1), jnp.float32)
    b1 = 0.1 * jax.random.normal(ks[1], (C1,), jnp.float32)
    w2_pt = 0.1 * jax.random.normal(ks[2], (C2, C1, K2), jnp.float32)
    b2 = 0.1 * jax.random.normal(ks[3], (C2,), jnp.float32)
    w3_pt = 0.1 * jax.random.normal(ks[4], (C3, C2, K3), jnp.float32)
    b3 = 0.1 * jax.random.normal(ks[5], (C3,), jnp.float32)
    gamma = 1.0 + 0.1 * jax.random.normal(ks[6], (C3,), jnp.float32)
    beta = 0.1 * jax.random.normal(ks[7], (C3,), jnp.float32)
    wl_pt = 0.1 * jax.random.normal(ks[8], (1, C3 * P), jnp.float32)
    bl = 0.1 * jax.random.normal(ks[9], (1,), jnp.float32)
    x = jax.random.normal(ks[10], (N, C0, L), jnp.float32)

    params = (w1_pt, b1, w2_pt, b2, w3_pt, b3, gamma, beta, wl_pt, bl)

    prepped = prepare_params(params)                 # one-time weight re-layout
    fwd = jax.jit(conv_model2_forward)

    out = jax.block_until_ready(fwd(x, prepped))
    ref = jax.block_until_ready(reference_forward(x, params))

    assert out.shape == (N, 1), out.shape
    assert jnp.allclose(out, ref, atol=2e-3, rtol=2e-3), (out, ref)
    print("KERNEL_OK")
</pallas_src>

<mosaic_0001>
module attributes {stable_mosaic.version = 11 : i64} {
  func.func @conv_model2_kernel(%arg0: memref<608x54xf32, #tpu.memory_space<vmem>>, %arg1: memref<54x252xf32, #tpu.memory_space<vmem>>, %arg2: memref<1x252xf32, #tpu.memory_space<vmem>>, %arg3: memref<252x96xf32, #tpu.memory_space<vmem>>, %arg4: memref<1x96xf32, #tpu.memory_space<vmem>>, %arg5: memref<3x96x48xf32, #tpu.memory_space<vmem>>, %arg6: memref<1x48xf32, #tpu.memory_space<vmem>>, %arg7: memref<1x48xf32, #tpu.memory_space<vmem>>, %arg8: memref<1x48xf32, #tpu.memory_space<vmem>>, %arg9: memref<3x48xf32, #tpu.memory_space<vmem>>, %arg10: memref<1x1xf32, #tpu.memory_space<vmem>>, %arg11: memref<2x1xf32, #tpu.memory_space<vmem>>, %arg12: memref<624x96xf32, #tpu.memory_space<vmem>>, %arg13: memref<608x48xf32, #tpu.memory_space<vmem>>) attributes {dimension_semantics = [], scalar_prefetch = 0 : i64, scratch_operands = 2 : i64, tpu.core_type = #tpu.core_type<tc>} {
    %c0 = arith.constant 0 : index
    %c0_0 = arith.constant 0 : index
    %0 = vector.load %arg1[%c0, %c0_0] : memref<54x252xf32, #tpu.memory_space<vmem>>, vector<54x252xf32>
    %c0_1 = arith.constant 0 : index
    %c0_2 = arith.constant 0 : index
    %1 = vector.load %arg2[%c0_1, %c0_2] : memref<1x252xf32, #tpu.memory_space<vmem>>, vector<1x252xf32>
    %c0_3 = arith.constant 0 : index
    %c0_4 = arith.constant 0 : index
    %2 = vector.load %arg3[%c0_3, %c0_4] : memref<252x96xf32, #tpu.memory_space<vmem>>, vector<252x96xf32>
    %c0_5 = arith.constant 0 : index
    %c0_6 = arith.constant 0 : index
    %3 = vector.load %arg4[%c0_5, %c0_6] : memref<1x96xf32, #tpu.memory_space<vmem>>, vector<1x96xf32>
    %c0_7 = arith.constant 0 : index
    %c0_8 = arith.constant 0 : index
    %4 = vector.load %arg6[%c0_7, %c0_8] : memref<1x48xf32, #tpu.memory_space<vmem>>, vector<1x48xf32>
    %cst = arith.constant 0.000000e+00 : f32
    %5 = vector.broadcast %cst : f32 to vector<8x96xf32>
    %c304 = arith.constant 304 : index
    %c0_9 = arith.constant 0 : index
    %6 = vector.load %arg12[%c304, %c0_9] : memref<624x96xf32, #tpu.memory_space<vmem>>, vector<8x96xf32>
    tpu.vector_store %arg12[%c304, %c0_9], %5 {strides = array<i32>} : memref<624x96xf32, #tpu.memory_space<vmem>>, vector<8x96xf32>,
    %c616 = arith.constant 616 : index
    %c0_10 = arith.constant 0 : index
    %7 = vector.load %arg12[%c616, %c0_10] : memref<624x96xf32, #tpu.memory_space<vmem>>, vector<8x96xf32>
    tpu.vector_store %arg12[%c616, %c0_10], %5 {strides = array<i32>} : memref<624x96xf32, #tpu.memory_space<vmem>>, vector<8x96xf32>,
    %c0_11 = arith.constant 0 : index
    %c0_12 = arith.constant 0 : index
    %8 = vector.load %arg0[%c0_11, %c0_12] : memref<608x54xf32, #tpu.memory_space<vmem>>, vector<152x54xf32>
    %cst_13 = arith.constant dense<0.000000e+00> : vector<152x252xf32>
    %9 = tpu.matmul %8, %0, %cst_13 {dimension_numbers = #tpu.dot_dimension_numbers<[1], [0], [0], [1], [0, 0, 1, 1], [], []>} : vector<152x54xf32>, vector<54x252xf32>, vector<152x252xf32> -> vector<152x252xf32>
    %10 = vector.broadcast %1 : vector<1x252xf32> to vector<152x252xf32>
    %11 = arith.addf %9, %10 : vector<152x252xf32>
    %cst_14 = arith.constant 0.000000e+00 : f32
    %12 = vector.broadcast %cst_14 : f32 to vector<152x252xf32>
    %13 = arith.maximumf %11, %12 : vector<152x252xf32>
    %cst_15 = arith.constant dense<0.000000e+00> : vector<152x96xf32>
    %14 = tpu.matmul %13, %2, %cst_15 {dimension_numbers = #tpu.dot_dimension_numbers<[1], [0], [0], [1], [0, 0, 1, 1], [], []>} : vector<152x252xf32>, vector<252x96xf32>, vector<152x96xf32> -> vector<152x96xf32>
    %15 = vector.broadcast %3 : vector<1x96xf32> to vector<152x96xf32>
    %16 = arith.addf %14, %15 : vector<152x96xf32>
    %cst_16 = arith.constant 0.000000e+00 : f32
    %17 = vector.broadcast %cst_16 : f32 to vector<152x96xf32>
    %18 = arith.maximumf %16, %17 : vector<152x96xf32>
    %c0_17 = arith.constant 0 : index
    %c0_18 = arith.constant 0 : index
    %19 = vector.load %arg12[%c0_17, %c0_18] : memref<624x96xf32, #tpu.memory_space<vmem>>, vector<152x96xf32>
    tpu.vector_store %arg12[%c0_17, %c0_18], %18 {strides = array<i32>} : memref<624x96xf32, #tpu.memory_space<vmem>>, vector<152x96xf32>,
    %c152 = arith.constant 152 : index
    %c0_19 = arith.constant 0 : index
    %20 = vector.load %arg0[%c152, %c0_19] : memref<608x54xf32, #tpu.memory_space<vmem>>, vector<152x54xf32>
    %cst_20 = arith.constant dense<0.000000e+00> : vector<152x252xf32>
    %21 = tpu.matmul %20, %0, %cst_20 {dimension_numbers = #tpu.dot_dimension_numbers<[1], [0], [0], [1], [0, 0, 1, 1], [], []>} : vector<152x54xf32>, vector<54x252xf32>, vector<152x252xf32> -> vector<152x252xf32>
    %22 = vector.broadcast %1 : vector<1x252xf32> to vector<152x252xf32>
    %23 = arith.addf %21, %22 : vector<152x252xf32>
    %cst_21 = arith.constant 0.000000e+00 : f32
    %24 = vector.broadcast %cst_21 : f32 to vector<152x252xf32>
    %25 = arith.maximumf %23, %24 : vector<152x252xf32>
    %cst_22 = arith.constant dense<0.000000e+00> : vector<152x96xf32>
    %26 = tpu.matmul %25, %2, %cst_22 {dimension_numbers = #tpu.dot_dimension_numbers<[1], [0], [0], [1], [0, 0, 1, 1], [], []>} : vector<152x252xf32>, vector<252x96xf32>, vector<152x96xf32> -> vector<152x96xf32>
    %27 = vector.broadcast %3 : vector<1x96xf32> to vector<152x96xf32>
    %28 = arith.addf %26, %27 : vector<152x96xf32>
    %cst_23 = arith.constant 0.000000e+00 : f32
    %29 = vector.broadcast %cst_23 : f32 to vector<152x96xf32>
    %30 = arith.maximumf %28, %29 : vector<152x96xf32>
    %c152_24 = arith.constant 152 : index
    %c0_25 = arith.constant 0 : index
    %31 = vector.load %arg12[%c152_24, %c0_25] : memref<624x96xf32, #tpu.memory_space<vmem>>, vector<152x96xf32>
    tpu.vector_store %arg12[%c152_24, %c0_25], %30 {strides = array<i32>} : memref<624x96xf32, #tpu.memory_space<vmem>>, vector<152x96xf32>,
    %c304_26 = arith.constant 304 : index
    %c0_27 = arith.constant 0 : index
    %32 = vector.load %arg0[%c304_26, %c0_27] : memref<608x54xf32, #tpu.memory_space<vmem>>, vector<152x54xf32>
    %cst_28 = arith.constant dense<0.000000e+00> : vector<152x252xf32>
    %33 = tpu.matmul %32, %0, %cst_28 {dimension_numbers = #tpu.dot_dimension_numbers<[1], [0], [0], [1], [0, 0, 1, 1], [], []>} : vector<152x54xf32>, vector<54x252xf32>, vector<152x252xf32> -> vector<152x252xf32>
    %34 = vector.broadcast %1 : vector<1x252xf32> to vector<152x252xf32>
    %35 = arith.addf %33, %34 : vector<152x252xf32>
    %cst_29 = arith.constant 0.000000e+00 : f32
    %36 = vector.broadcast %cst_29 : f32 to vector<152x252xf32>
    %37 = arith.maximumf %35, %36 : vector<152x252xf32>
    %cst_30 = arith.constant dense<0.000000e+00> : vector<152x96xf32>
    %38 = tpu.matmul %37, %2, %cst_30 {dimension_numbers = #tpu.dot_dimension_numbers<[1], [0], [0], [1], [0, 0, 1, 1], [], []>} : vector<152x252xf32>, vector<252x96xf32>, vector<152x96xf32> -> vector<152x96xf32>
    %39 = vector.broadcast %3 : vector<1x96xf32> to vector<152x96xf32>
    %40 = arith.addf %38, %39 : vector<152x96xf32>
    %cst_31 = arith.constant 0.000000e+00 : f32
    %41 = vector.broadcast %cst_31 : f32 to vector<152x96xf32>
    %42 = arith.maximumf %40, %41 : vector<152x96xf32>
    %c312 = arith.constant 312 : index
    %c0_32 = arith.constant 0 : index
    %43 = vector.load %arg12[%c312, %c0_32] : memref<624x96xf32, #tpu.memory_space<vmem>>, vector<152x96xf32>
    tpu.vector_store %arg12[%c312, %c0_32], %42 {strides = array<i32>} : memref<624x96xf32, #tpu.memory_space<vmem>>, vector<152x96xf32>,
    %c456 = arith.constant 456 : index
    %c0_33 = arith.constant 0 : index
    %44 = vector.load %arg0[%c456, %c0_33] : memref<608x54xf32, #tpu.memory_space<vmem>>, vector<152x54xf32>
    %cst_34 = arith.constant dense<0.000000e+00> : vector<152x252xf32>
    %45 = tpu.matmul %44, %0, %cst_34 {dimension_numbers = #tpu.dot_dimension_numbers<[1], [0], [0], [1], [0, 0, 1, 1], [], []>} : vector<152x54xf32>, vector<54x252xf32>, vector<152x252xf32> -> vector<152x252xf32>
    %46 = vector.broadcast %1 : vector<1x252xf32> to vector<152x252xf32>
    %47 = arith.addf %45, %46 : vector<152x252xf32>
    %cst_35 = arith.constant 0.000000e+00 : f32
    %48 = vector.broadcast %cst_35 : f32 to vector<152x252xf32>
    %49 = arith.maximumf %47, %48 : vector<152x252xf32>
    %cst_36 = arith.constant dense<0.000000e+00> : vector<152x96xf32>
    %50 = tpu.matmul %49, %2, %cst_36 {dimension_numbers = #tpu.dot_dimension_numbers<[1], [0], [0], [1], [0, 0, 1, 1], [], []>} : vector<152x252xf32>, vector<252x96xf32>, vector<152x96xf32> -> vector<152x96xf32>
    %51 = vector.broadcast %3 : vector<1x96xf32> to vector<152x96xf32>
    %52 = arith.addf %50, %51 : vector<152x96xf32>
    %cst_37 = arith.constant 0.000000e+00 : f32
    %53 = vector.broadcast %cst_37 : f32 to vector<152x96xf32>
    %54 = arith.maximumf %52, %53 : vector<152x96xf32>
    %c464 = arith.constant 464 : index
    %c0_38 = arith.constant 0 : index
    %55 = vector.load %arg12[%c464, %c0_38] : memref<624x96xf32, #tpu.memory_space<vmem>>, vector<152x96xf32>
    tpu.vector_store %arg12[%c464, %c0_38], %54 {strides = array<i32>} : memref<624x96xf32, #tpu.memory_space<vmem>>, vector<152x96xf32>,
    %cst_39 = arith.constant 0.000000e+00 : f32
    %56 = vector.broadcast %cst_39 : f32 to vector<8x48xf32>
    %cst_40 = arith.constant 0.000000e+00 : f32
    %57 = vector.broadcast %cst_40 : f32 to vector<8x48xf32>
    %58 = tpu.iota {dimensions = array<i32: 0>} : vector<304x48xi32>
    %c300_i32 = arith.constant 300 : i32
    %59 = vector.broadcast %c300_i32 : i32 to vector<304x48xi32>
    %60 = arith.cmpi slt, %58, %59 : vector<304x48xi32>
    %c0_41 = arith.constant 0 : index
    %c0_42 = arith.constant 0 : index
    %61 = vector.load %arg12[%c0_41, %c0_42] : memref<624x96xf32, #tpu.memory_space<vmem>>, vector<304x96xf32>
    %c0_43 = arith.constant 0 : index
    %c0_44 = arith.constant 0 : index
    %c0_45 = arith.constant 0 : index
    %62 = vector.load %arg5[%c0_43, %c0_44, %c0_45] : memref<3x96x48xf32, #tpu.memory_space<vmem>>, vector<1x96x48xf32>
    %63 = vector.shape_cast %62 : vector<1x96x48xf32> to vector<96x48xf32>
    %cst_46 = arith.constant dense<0.000000e+00> : vector<304x48xf32>
    %64 = tpu.matmul %61, %63, %cst_46 {dimension_numbers = #tpu.dot_dimension_numbers<[1], [0], [0], [1], [0, 0, 1, 1], [], []>} : vector<304x96xf32>, vector<96x48xf32>, vector<304x48xf32> -> vector<304x48xf32>
    %c1 = arith.constant 1 : index
    %c0_47 = arith.constant 0 : index
    %65 = vector.load %arg12[%c1, %c0_47] : memref<624x96xf32, #tpu.memory_space<vmem>>, vector<304x96xf32>
    %c1_48 = arith.constant 1 : index
    %c0_49 = arith.constant 0 : index
    %c0_50 = arith.constant 0 : index
    %66 = vector.load %arg5[%c1_48, %c0_49, %c0_50] : memref<3x96x48xf32, #tpu.memory_space<vmem>>, vector<1x96x48xf32>
    %67 = vector.shape_cast %66 : vector<1x96x48xf32> to vector<96x48xf32>
    %cst_51 = arith.constant dense<0.000000e+00> : vector<304x48xf32>
    %68 = tpu.matmul %65, %67, %cst_51 {dimension_numbers = #tpu.dot_dimension_numbers<[1], [0], [0], [1], [0, 0, 1, 1], [], []>} : vector<304x96xf32>, vector<96x48xf32>, vector<304x48xf32> -> vector<304x48xf32>
    %69 = arith.addf %64, %68 : vector<304x48xf32>
    %c2 = arith.constant 2 : index
    %c0_52 = arith.constant 0 : index
    %70 = vector.load %arg12[%c2, %c0_52] : memref<624x96xf32, #tpu.memory_space<vmem>>, vector<304x96xf32>
    %c2_53 = arith.constant 2 : index
    %c0_54 = arith.constant 0 : index
    %c0_55 = arith.constant 0 : index
    %71 = vector.load %arg5[%c2_53, %c0_54, %c0_55] : memref<3x96x48xf32, #tpu.memory_space<vmem>>, vector<1x96x48xf32>
    %72 = vector.shape_cast %71 : vector<1x96x48xf32> to vector<96x48xf32>
    %cst_56 = arith.constant dense<0.000000e+00> : vector<304x48xf32>
    %73 = tpu.matmul %70, %72, %cst_56 {dimension_numbers = #tpu.dot_dimension_numbers<[1], [0], [0], [1], [0, 0, 1, 1], [], []>} : vector<304x96xf32>, vector<96x48xf32>, vector<304x48xf32> -> vector<304x48xf32>
    %74 = arith.addf %69, %73 : vector<304x48xf32>
    %75 = vector.broadcast %4 : vector<1x48xf32> to vector<304x48xf32>
    %76 = arith.addf %74, %75 : vector<304x48xf32>
    %cst_57 = arith.constant 0.000000e+00 : f32
    %77 = vector.broadcast %cst_57 : f32 to vector<304x48xf32>
    %78 = arith.select %60, %76, %77 : vector<304x48xi1>, vector<304x48xf32>
    %79 = arith.mulf %78, %78 : vector<304x48xf32>
    %80 = vector.extract_strided_slice %78 {offsets = [0, 0], sizes = [8, 48], strides = [1, 1]} : vector<304x48xf32> to vector<8x48xf32>
    %81 = arith.addf %56, %80 : vector<8x48xf32>
    %82 = vector.extract_strided_slice %79 {offsets = [0, 0], sizes = [8, 48], strides = [1, 1]} : vector<304x48xf32> to vector<8x48xf32>
    %83 = arith.addf %57, %82 : vector<8x48xf32>
    %84 = vector.extract_strided_slice %78 {offsets = [8, 0], sizes = [8, 48], strides = [1, 1]} : vector<304x48xf32> to vector<8x48xf32>
    %85 = arith.addf %81, %84 : vector<8x48xf32>
    %86 = vector.extract_strided_slice %79 {offsets = [8, 0], sizes = [8, 48], strides = [1, 1]} : vector<304x48xf32> to vector<8x48xf32>
    %87 = arith.addf %83, %86 : vector<8x48xf32>
    %88 = vector.extract_strided_slice %78 {offsets = [16, 0], sizes = [8, 48], strides = [1, 1]} : vector<304x48xf32> to vector<8x48xf32>
    %89 = arith.addf %85, %88 : vector<8x48xf32>
    %90 = vector.extract_strided_slice %79 {offsets = [16, 0], sizes = [8, 48], strides = [1, 1]} : vector<304x48xf32> to vector<8x48xf32>
    %91 = arith.addf %87, %90 : vector<8x48xf32>
    %92 = vector.extract_strided_slice %78 {offsets = [24, 0], sizes = [8, 48], strides = [1, 1]} : vector<304x48xf32> to vector<8x48xf32>
    %93 = arith.addf %89, %92 : vector<8x48xf32>
    %94 = vector.extract_strided_slice %79 {offsets = [24, 0], sizes = [8, 48], strides = [1, 1]} : vector<304x48xf32> to vector<8x48xf32>
    %95 = arith.addf %91, %94 : vector<8x48xf32>
    %96 = vector.extract_strided_slice %78 {offsets = [32, 0], sizes = [8, 48], strides = [1, 1]} : vector<304x48xf32> to vector<8x48xf32>
    %97 = arith.addf %93, %96 : vector<8x48xf32>
    %98 = vector.extract_strided_slice %79 {offsets = [32, 0], sizes = [8, 48], strides = [1, 1]} : vector<304x48xf32> to vector<8x48xf32>
    %99 = arith.addf %95, %98 : vector<8x48xf32>
    %100 = vector.extract_strided_slice %78 {offsets = [40, 0], sizes = [8, 48], strides = [1, 1]} : vector<304x48xf32> to vector<8x48xf32>
    %101 = arith.addf %97, %100 : vector<8x48xf32>
    %102 = vector.extract_strided_slice %79 {offsets = [40, 0], sizes = [8, 48], strides = [1, 1]} : vector<304x48xf32> to vector<8x48xf32>
    %103 = arith.addf %99, %102 : vector<8x48xf32>
    %104 = vector.extract_strided_slice %78 {offsets = [48, 0], sizes = [8, 48], strides = [1, 1]} : vector<304x48xf32> to vector<8x48xf32>
    %105 = arith.addf %101, %104 : vector<8x48xf32>
    %106 = vector.extract_strided_slice %79 {offsets = [48, 0], sizes = [8, 48], strides = [1, 1]} : vector<304x48xf32> to vector<8x48xf32>
    %107 = arith.addf %103, %106 : vector<8x48xf32>
    %108 = vector.extract_strided_slice %78 {offsets = [56, 0], sizes = [8, 48], strides = [1, 1]} : vector<304x48xf32> to vector<8x48xf32>
    %109 = arith.addf %105, %108 : vector<8x48xf32>
    %110 = vector.extract_strided_slice %79 {offsets = [56, 0], sizes = [8, 48], strides = [1, 1]} : vector<304x48xf32> to vector<8x48xf32>
    %111 = arith.addf %107, %110 : vector<8x48xf32>
    %112 = vector.extract_strided_slice %78 {offsets = [64, 0], sizes = [8, 48], strides = [1, 1]} : vector<304x48xf32> to vector<8x48xf32>
    %113 = arith.addf %109, %112 : vector<8x48xf32>
    %114 = vector.extract_strided_slice %79 {offsets = [64, 0], sizes = [8, 48], strides = [1, 1]} : vector<304x48xf32> to vector<8x48xf32>
    %115 = arith.addf %111, %114 : vector<8x48xf32>
    %116 = vector.extract_strided_slice %78 {offsets = [72, 0], sizes = [8, 48], strides = [1, 1]} : vector<304x48xf32> to vector<8x48xf32>
    %117 = arith.addf %113, %116 : vector<8x48xf32>
    %118 = vector.extract_strided_slice %79 {offsets = [72, 0], sizes = [8, 48], strides = [1, 1]} : vector<304x48xf32> to vector<8x48xf32>
    %119 = arith.addf %115, %118 : vector<8x48xf32>
    %120 = vector.extract_strided_slice %78 {offsets = [80, 0], sizes = [8, 48], strides = [1, 1]} : vector<304x48xf32> to vector<8x48xf32>
    %121 = arith.addf %117, %120 : vector<8x48xf32>
    %122 = vector.extract_strided_slice %79 {offsets = [80, 0], sizes = [8, 48], strides = [1, 1]} : vector<304x48xf32> to vector<8x48xf32>
    %123 = arith.addf %119, %122 : vector<8x48xf32>
    %124 = vector.extract_strided_slice %78 {offsets = [88, 0], sizes = [8, 48], strides = [1, 1]} : vector<304x48xf32> to vector<8x48xf32>
    %125 = arith.addf %121, %124 : vector<8x48xf32>
    %126 = vector.extract_strided_slice %79 {offsets = [88, 0], sizes = [8, 48], strides = [1, 1]} : vector<304x48xf32> to vector<8x48xf32>
    %127 = arith.addf %123, %126 : vector<8x48xf32>
    %128 = vector.extract_strided_slice %78 {offsets = [96, 0], sizes = [8, 48], strides = [1, 1]} : vector<304x48xf32> to vector<8x48xf32>
    %129 = arith.addf %125, %128 : vector<8x48xf32>
    %130 = vector.extract_strided_slice %79 {offsets = [96, 0], sizes = [8, 48], strides = [1, 1]} : vector<304x48xf32> to vector<8x48xf32>
    %131 = arith.addf %127, %130 : vector<8x48xf32>
    %132 = vector.extract_strided_slice %78 {offsets = [104, 0], sizes = [8, 48], strides = [1, 1]} : vector<304x48xf32> to vector<8x48xf32>
    %133 = arith.addf %129, %132 : vector<8x48xf32>
    %134 = vector.extract_strided_slice %79 {offsets = [104, 0], sizes = [8, 48], strides = [1, 1]} : vector<304x48xf32> to vector<8x48xf32>
    %135 = arith.addf %131, %134 : vector<8x48xf32>
    %136 = vector.extract_strided_slice %78 {offsets = [112, 0], sizes = [8, 48], strides = [1, 1]} : vector<304x48xf32> to vector<8x48xf32>
    %137 = arith.addf %133, %136 : vector<8x48xf32>
    %138 = vector.extract_strided_slice %79 {offsets = [112, 0], sizes = [8, 48], strides = [1, 1]} : vector<304x48xf32> to vector<8x48xf32>
    %139 = arith.addf %135, %138 : vector<8x48xf32>
    %140 = vector.extract_strided_slice %78 {offsets = [120, 0], sizes = [8, 48], strides = [1, 1]} : vector<304x48xf32> to vector<8x48xf32>
    %141 = arith.addf %137, %140 : vector<8x48xf32>
    %142 = vector.extract_strided_slice %79 {offsets = [120, 0], sizes = [8, 48], strides = [1, 1]} : vector<304x48xf32> to vector<8x48xf32>
    %143 = arith.addf %139, %142 : vector<8x48xf32>
    %144 = vector.extract_strided_slice %78 {offsets = [128, 0], sizes = [8, 48], strides = [1, 1]} : vector<304x48xf32> to vector<8x48xf32>
    %145 = arith.addf %141, %144 : vector<8x48xf32>
    %146 = vector.extract_strided_slice %79 {offsets = [128, 0], sizes = [8, 48], strides = [1, 1]} : vector<304x48xf32> to vector<8x48xf32>
    %147 = arith.addf %143, %146 : vector<8x48xf32>
    %148 = vector.extract_strided_slice %78 {offsets = [136, 0], sizes = [8, 48], strides = [1, 1]} : vector<304x48xf32> to vector<8x48xf32>
    %149 = arith.addf %145, %148 : vector<8x48xf32>
    %150 = vector.extract_strided_slice %79 {offsets = [136, 0], sizes = [8, 48], strides = [1, 1]} : vector<304x48xf32> to vector<8x48xf32>
    %151 = arith.addf %147, %150 : vector<8x48xf32>
    %152 = vector.extract_strided_slice %78 {offsets = [144, 0], sizes = [8, 48], strides = [1, 1]} : vector<304x48xf32> to vector<8x48xf32>
    %153 = arith.addf %149, %152 : vector<8x48xf32>
    %154 = vector.extract_strided_slice %79 {offsets = [144, 0], sizes = [8, 48], strides = [1, 1]} : vector<304x48xf32> to vector<8x48xf32>
    %155 = arith.addf %151, %154 : vector<8x48xf32>
    %156 = vector.extract_strided_slice %78 {offsets = [152, 0], sizes = [8, 48], strides = [1, 1]} : vector<304x48xf32> to vector<8x48xf32>
    %157 = arith.addf %153, %156 : vector<8x48xf32>
    %158 = vector.extract_strided_slice %79 {offsets = [152, 0], sizes = [8, 48], strides = [1, 1]} : vector<304x48xf32> to vector<8x48xf32>
    %159 = arith.addf %155, %158 : vector<8x48xf32>
    %160 = vector.extract_strided_slice %78 {offsets = [160, 0], sizes = [8, 48], strides = [1, 1]} : vector<304x48xf32> to vector<8x48xf32>
    %161 = arith.addf %157, %160 : vector<8x48xf32>
    %162 = vector.extract_strided_slice %79 {offsets = [160, 0], sizes = [8, 48], strides = [1, 1]} : vector<304x48xf32> to vector<8x48xf32>
    %163 = arith.addf %159, %162 : vector<8x48xf32>
    %164 = vector.extract_strided_slice %78 {offsets = [168, 0], sizes = [8, 48], strides = [1, 1]} : vector<304x48xf32> to vector<8x48xf32>
    %165 = arith.addf %161, %164 : vector<8x48xf32>
    %166 = vector.extract_strided_slice %79 {offsets = [168, 0], sizes = [8, 48], strides = [1, 1]} : vector<304x48xf32> to vector<8x48xf32>
    %167 = arith.addf %163, %166 : vector<8x48xf32>
    %168 = vector.extract_strided_slice %78 {offsets = [176, 0], sizes = [8, 48], strides = [1, 1]} : vector<304x48xf32> to vector<8x48xf32>
    %169 = arith.addf %165, %168 : vector<8x48xf32>
    %170 = vector.extract_strided_slice %79 {offsets = [176, 0], sizes = [8, 48], strides = [1, 1]} : vector<304x48xf32> to vector<8x48xf32>
    %171 = arith.addf %167, %170 : vector<8x48xf32>
    %172 = vector.extract_strided_slice %78 {offsets = [184, 0], sizes = [8, 48], strides = [1, 1]} : vector<304x48xf32> to vector<8x48xf32>
    %173 = arith.addf %169, %172 : vector<8x48xf32>
    %174 = vector.extract_strided_slice %79 {offsets = [184, 0], sizes = [8, 48], strides = [1, 1]} : vector<304x48xf32> to vector<8x48xf32>
    %175 = arith.addf %171, %174 : vector<8x48xf32>
    %176 = vector.extract_strided_slice %78 {offsets = [192, 0], sizes = [8, 48], strides = [1, 1]} : vector<304x48xf32> to vector<8x48xf32>
    %177 = arith.addf %173, %176 : vector<8x48xf32>
    %178 = vector.extract_strided_slice %79 {offsets = [192, 0], sizes = [8, 48], strides = [1, 1]} : vector<304x48xf32> to vector<8x48xf32>
    %179 = arith.addf %175, %178 : vector<8x48xf32>
    %180 = vector.extract_strided_slice %78 {offsets = [200, 0], sizes = [8, 48], strides = [1, 1]} : vector<304x48xf32> to vector<8x48xf32>
    %181 = arith.addf %177, %180 : vector<8x48xf32>
    %182 = vector.extract_strided_slice %79 {offsets = [200, 0], sizes = [8, 48], strides = [1, 1]} : vector<304x48xf32> to vector<8x48xf32>
    %183 = arith.addf %179, %182 : vector<8x48xf32>
    %184 = vector.extract_strided_slice %78 {offsets = [208, 0], sizes = [8, 48], strides = [1, 1]} : vector<304x48xf32> to vector<8x48xf32>
    %185 = arith.addf %181, %184 : vector<8x48xf32>
    %186 = vector.extract_strided_slice %79 {offsets = [208, 0], sizes = [8, 48], strides = [1, 1]} : vector<304x48xf32> to vector<8x48xf32>
    %187 = arith.addf %183, %186 : vector<8x48xf32>
    %188 = vector.extract_strided_slice %78 {offsets = [216, 0], sizes = [8, 48], strides = [1, 1]} : vector<304x48xf32> to vector<8x48xf32>
    %189 = arith.addf %185, %188 : vector<8x48xf32>
    %190 = vector.extract_strided_slice %79 {offsets = [216, 0], sizes = [8, 48], strides = [1, 1]} : vector<304x48xf32> to vector<8x48xf32>
    %191 = arith.addf %187, %190 : vector<8x48xf32>
    %192 = vector.extract_strided_slice %78 {offsets = [224, 0], sizes = [8, 48], strides = [1, 1]} : vector<304x48xf32> to vector<8x48xf32>
    %193 = arith.addf %189, %192 : vector<8x48xf32>
    %194 = vector.extract_strided_slice %79 {offsets = [224, 0], sizes = [8, 48], strides = [1, 1]} : vector<304x48xf32> to vector<8x48xf32>
    %195 = arith.addf %191, %194 : vector<8x48xf32>
    %196 = vector.extract_strided_slice %78 {offsets = [232, 0], sizes = [8, 48], strides = [1, 1]} : vector<304x48xf32> to vector<8x48xf32>
    %197 = arith.addf %193, %196 : vector<8x48xf32>
    %198 = vector.extract_strided_slice %79 {offsets = [232, 0], sizes = [8, 48], strides = [1, 1]} : vector<304x48xf32> to vector<8x48xf32>
    %199 = arith.addf %195, %198 : vector<8x48xf32>
    %200 = vector.extract_strided_slice %78 {offsets = [240, 0], sizes = [8, 48], strides = [1, 1]} : vector<304x48xf32> to vector<8x48xf32>
    %201 = arith.addf %197, %200 : vector<8x48xf32>
    %202 = vector.extract_strided_slice %79 {offsets = [240, 0], sizes = [8, 48], strides = [1, 1]} : vector<304x48xf32> to vector<8x48xf32>
    %203 = arith.addf %199, %202 : vector<8x48xf32>
    %204 = vector.extract_strided_slice %78 {offsets = [248, 0], sizes = [8, 48], strides = [1, 1]} : vector<304x48xf32> to vector<8x48xf32>
    %205 = arith.addf %201, %204 : vector<8x48xf32>
    %206 = vector.extract_strided_slice %79 {offsets = [248, 0], sizes = [8, 48], strides = [1, 1]} : vector<304x48xf32> to vector<8x48xf32>
    %207 = arith.addf %203, %206 : vector<8x48xf32>
    %208 = vector.extract_strided_slice %78 {offsets = [256, 0], sizes = [8, 48], strides = [1, 1]} : vector<304x48xf32> to vector<8x48xf32>
    %209 = arith.addf %205, %208 : vector<8x48xf32>
    %210 = vector.extract_strided_slice %79 {offsets = [256, 0], sizes = [8, 48], strides = [1, 1]} : vector<304x48xf32> to vector<8x48xf32>
    %211 = arith.addf %207, %210 : vector<8x48xf32>
    %212 = vector.extract_strided_slice %78 {offsets = [264, 0], sizes = [8, 48], strides = [1, 1]} : vector<304x48xf32> to vector<8x48xf32>
    %213 = arith.addf %209, %212 : vector<8x48xf32>
    %214 = vector.extract_strided_slice %79 {offsets = [264, 0], sizes = [8, 48], strides = [1, 1]} : vector<304x48xf32> to vector<8x48xf32>
    %215 = arith.addf %211, %214 : vector<8x48xf32>
    %216 = vector.extract_strided_slice %78 {offsets = [272, 0], sizes = [8, 48], strides = [1, 1]} : vector<304x48xf32> to vector<8x48xf32>
    %217 = arith.addf %213, %216 : vector<8x48xf32>
    %218 = vector.extract_strided_slice %79 {offsets = [272, 0], sizes = [8, 48], strides = [1, 1]} : vector<304x48xf32> to vector<8x48xf32>
    %219 = arith.addf %215, %218 : vector<8x48xf32>
    %220 = vector.extract_strided_slice %78 {offsets = [280, 0], sizes = [8, 48], strides = [1, 1]} : vector<304x48xf32> to vector<8x48xf32>
    %221 = arith.addf %217, %220 : vector<8x48xf32>
    %222 = vector.extract_strided_slice %79 {offsets = [280, 0], sizes = [8, 48], strides = [1, 1]} : vector<304x48xf32> to vector<8x48xf32>
    %223 = arith.addf %219, %222 : vector<8x48xf32>
    %224 = vector.extract_strided_slice %78 {offsets = [288, 0], sizes = [8, 48], strides = [1, 1]} : vector<304x48xf32> to vector<8x48xf32>
    %225 = arith.addf %221, %224 : vector<8x48xf32>
    %226 = vector.extract_strided_slice %79 {offsets = [288, 0], sizes = [8, 48], strides = [1, 1]} : vector<304x48xf32> to vector<8x48xf32>
    %227 = arith.addf %223, %226 : vector<8x48xf32>
    %228 = vector.extract_strided_slice %78 {offsets = [296, 0], sizes = [8, 48], strides = [1, 1]} : vector<304x48xf32> to vector<8x48xf32>
    %229 = arith.addf %225, %228 : vector<8x48xf32>
    %230 = vector.extract_strided_slice %79 {offsets = [296, 0], sizes = [8, 48], strides = [1, 1]} : vector<304x48xf32> to vector<8x48xf32>
    %231 = arith.addf %227, %230 : vector<8x48xf32>
    %c0_58 = arith.constant 0 : index
    %c0_59 = arith.constant 0 : index
    %232 = vector.load %arg13[%c0_58, %c0_59] : memref<608x48xf32, #tpu.memory_space<vmem>>, vector<304x48xf32>
    tpu.vector_store %arg13[%c0_58, %c0_59], %76 {strides = array<i32>} : memref<608x48xf32, #tpu.memory_space<vmem>>, vector<304x48xf32>,
    %c312_60 = arith.constant 312 : index
    %c0_61 = arith.constant 0 : index
    %233 = vector.load %arg12[%c312_60, %c0_61] : memref<624x96xf32, #tpu.memory_space<vmem>>, vector<304x96xf32>
    %c0_62 = arith.constant 0 : index
    %c0_63 = arith.constant 0 : index
    %c0_64 = arith.constant 0 : index
    %234 = vector.load %arg5[%c0_62, %c0_63, %c0_64] : memref<3x96x48xf32, #tpu.memory_space<vmem>>, vector<1x96x48xf32>
    %235 = vector.shape_cast %234 : vector<1x96x48xf32> to vector<96x48xf32>
    %cst_65 = arith.constant dense<0.000000e+00> : vector<304x48xf32>
    %236 = tpu.matmul %233, %235, %cst_65 {dimension_numbers = #tpu.dot_dimension_numbers<[1], [0], [0], [1], [0, 0, 1, 1], [], []>} : vector<304x96xf32>, vector<96x48xf32>, vector<304x48xf32> -> vector<304x48xf32>
    %c313 = arith.constant 313 : index
    %c0_66 = arith.constant 0 : index
    %237 = vector.load %arg12[%c313, %c0_66] : memref<624x96xf32, #tpu.memory_space<vmem>>, vector<304x96xf32>
    %c1_67 = arith.constant 1 : index
    %c0_68 = arith.constant 0 : index
    %c0_69 = arith.constant 0 : index
    %238 = vector.load %arg5[%c1_67, %c0_68, %c0_69] : memref<3x96x48xf32, #tpu.memory_space<vmem>>, vector<1x96x48xf32>
    %239 = vector.shape_cast %238 : vector<1x96x48xf32> to vector<96x48xf32>
    %cst_70 = arith.constant dense<0.000000e+00> : vector<304x48xf32>
    %240 = tpu.matmul %237, %239, %cst_70 {dimension_numbers = #tpu.dot_dimension_numbers<[1], [0], [0], [1], [0, 0, 1, 1], [], []>} : vector<304x96xf32>, vector<96x48xf32>, vector<304x48xf32> -> vector<304x48xf32>
    %241 = arith.addf %236, %240 : vector<304x48xf32>
    %c314 = arith.constant 314 : index
    %c0_71 = arith.constant 0 : index
    %242 = vector.load %arg12[%c314, %c0_71] : memref<624x96xf32, #tpu.memory_space<vmem>>, vector<304x96xf32>
    %c2_72 = arith.constant 2 : index
    %c0_73 = arith.constant 0 : index
    %c0_74 = arith.constant 0 : index
    %243 = vector.load %arg5[%c2_72, %c0_73, %c0_74] : memref<3x96x48xf32, #tpu.memory_space<vmem>>, vector<1x96x48xf32>
    %244 = vector.shape_cast %243 : vector<1x96x48xf32> to vector<96x48xf32>
    %cst_75 = arith.constant dense<0.000000e+00> : vector<304x48xf32>
    %245 = tpu.matmul %242, %244, %cst_75 {dimension_numbers = #tpu.dot_dimension_numbers<[1], [0], [0], [1], [0, 0, 1, 1], [], []>} : vector<304x96xf32>, vector<96x48xf32>, vector<304x48xf32> -> vector<304x48xf32>
    %246 = arith.addf %241, %245 : vector<304x48xf32>
    %247 = vector.broadcast %4 : vector<1x48xf32> to vector<304x48xf32>
    %248 = arith.addf %246, %247 : vector<304x48xf32>
    %cst_76 = arith.constant 0.000000e+00 : f32
    %249 = vector.broadcast %cst_76 : f32 to vector<304x48xf32>
    %250 = arith.select %60, %248, %249 : vector<304x48xi1>, vector<304x48xf32>
    %251 = arith.mulf %250, %250 : vector<304x48xf32>
    %252 = vector.extract_strided_slice %250 {offsets = [0, 0], sizes = [8, 48], strides = [1, 1]} : vector<304x48xf32> to vector<8x48xf32>
    %253 = arith.addf %229, %252 : vector<8x48xf32>
    %254 = vector.extract_strided_slice %251 {offsets = [0, 0], sizes = [8, 48], strides = [1, 1]} : vector<304x48xf32> to vector<8x48xf32>
    %255 = arith.addf %231, %254 : vector<8x48xf32>
    %256 = vector.extract_strided_slice %250 {offsets = [8, 0], sizes = [8, 48], strides = [1, 1]} : vector<304x48xf32> to vector<8x48xf32>
    %257 = arith.addf %253, %256 : vector<8x48xf32>
    %258 = vector.extract_strided_slice %251 {offsets = [8, 0], sizes = [8, 48], strides = [1, 1]} : vector<304x48xf32> to vector<8x48xf32>
    %259 = arith.addf %255, %258 : vector<8x48xf32>
    %260 = vector.extract_strided_slice %250 {offsets = [16, 0], sizes = [8, 48], strides = [1, 1]} : vector<304x48xf32> to vector<8x48xf32>
    %261 = arith.addf %257, %260 : vector<8x48xf32>
    %262 = vector.extract_strided_slice %251 {offsets = [16, 0], sizes = [8, 48], strides = [1, 1]} : vector<304x48xf32> to vector<8x48xf32>
    %263 = arith.addf %259, %262 : vector<8x48xf32>
    %264 = vector.extract_strided_slice %250 {offsets = [24, 0], sizes = [8, 48], strides = [1, 1]} : vector<304x48xf32> to vector<8x48xf32>
    %265 = arith.addf %261, %264 : vector<8x48xf32>
    %266 = vector.extract_strided_slice %251 {offsets = [24, 0], sizes = [8, 48], strides = [1, 1]} : vector<304x48xf32> to vector<8x48xf32>
    %267 = arith.addf %263, %266 : vector<8x48xf32>
    %268 = vector.extract_strided_slice %250 {offsets = [32, 0], sizes = [8, 48], strides = [1, 1]} : vector<304x48xf32> to vector<8x48xf32>
    %269 = arith.addf %265, %268 : vector<8x48xf32>
    %270 = vector.extract_strided_slice %251 {offsets = [32, 0], sizes = [8, 48], strides = [1, 1]} : vector<304x48xf32> to vector<8x48xf32>
    %271 = arith.addf %267, %270 : vector<8x48xf32>
    %272 = vector.extract_strided_slice %250 {offsets = [40, 0], sizes = [8, 48], strides = [1, 1]} : vector<304x48xf32> to vector<8x48xf32>
    %273 = arith.addf %269, %272 : vector<8x48xf32>
    %274 = vector.extract_strided_slice %251 {offsets = [40, 0], sizes = [8, 48], strides = [1, 1]} : vector<304x48xf32> to vector<8x48xf32>
    %275 = arith.addf %271, %274 : vector<8x48xf32>
    %276 = vector.extract_strided_slice %250 {offsets = [48, 0], sizes = [8, 48], strides = [1, 1]} : vector<304x48xf32> to vector<8x48xf32>
    %277 = arith.addf %273, %276 : vector<8x48xf32>
    %278 = vector.extract_strided_slice %251 {offsets = [48, 0], sizes = [8, 48], strides = [1, 1]} : vector<304x48xf32> to vector<8x48xf32>
    %279 = arith.addf %275, %278 : vector<8x48xf32>
    %280 = vector.extract_strided_slice %250 {offsets = [56, 0], sizes = [8, 48], strides = [1, 1]} : vector<304x48xf32> to vector<8x48xf32>
    %281 = arith.addf %277, %280 : vector<8x48xf32>
    %282 = vector.extract_strided_slice %251 {offsets = [56, 0], sizes = [8, 48], strides = [1, 1]} : vector<304x48xf32> to vector<8x48xf32>
    %283 = arith.addf %279, %282 : vector<8x48xf32>
    %284 = vector.extract_strided_slice %250 {offsets = [64, 0], sizes = [8, 48], strides = [1, 1]} : vector<304x48xf32> to vector<8x48xf32>
    %285 = arith.addf %281, %284 : vector<8x48xf32>
    %286 = vector.extract_strided_slice %251 {offsets = [64, 0], sizes = [8, 48], strides = [1, 1]} : vector<304x48xf32> to vector<8x48xf32>
    %287 = arith.addf %283, %286 : vector<8x48xf32>
    %288 = vector.extract_strided_slice %250 {offsets = [72, 0], sizes = [8, 48], strides = [1, 1]} : vector<304x48xf32> to vector<8x48xf32>
    %289 = arith.addf %285, %288 : vector<8x48xf32>
    %290 = vector.extract_strided_slice %251 {offsets = [72, 0], sizes = [8, 48], strides = [1, 1]} : vector<304x48xf32> to vector<8x48xf32>
    %291 = arith.addf %287, %290 : vector<8x48xf32>
    %292 = vector.extract_strided_slice %250 {offsets = [80, 0], sizes = [8, 48], strides = [1, 1]} : vector<304x48xf32> to vector<8x48xf32>
    %293 = arith.addf %289, %292 : vector<8x48xf32>
    %294 = vector.extract_strided_slice %251 {offsets = [80, 0], sizes = [8, 48], strides = [1, 1]} : vector<304x48xf32> to vector<8x48xf32>
    %295 = arith.addf %291, %294 : vector<8x48xf32>
    %296 = vector.extract_strided_slice %250 {offsets = [88, 0], sizes = [8, 48], strides = [1, 1]} : vector<304x48xf32> to vector<8x48xf32>
    %297 = arith.addf %293, %296 : vector<8x48xf32>
    %298 = vector.extract_strided_slice %251 {offsets = [88, 0], sizes = [8, 48], strides = [1, 1]} : vector<304x48xf32> to vector<8x48xf32>
    %299 = arith.addf %295, %298 : vector<8x48xf32>
    %300 = vector.extract_strided_slice %250 {offsets = [96, 0], sizes = [8, 48], strides = [1, 1]} : vector<304x48xf32> to vector<8x48xf32>
    %301 = arith.addf %297, %300 : vector<8x48xf32>
    %302 = vector.extract_strided_slice %251 {offsets = [96, 0], sizes = [8, 48], strides = [1, 1]} : vector<304x48xf32> to vector<8x48xf32>
    %303 = arith.addf %299, %302 : vector<8x48xf32>
    %304 = vector.extract_strided_slice %250 {offsets = [104, 0], sizes = [8, 48], strides = [1, 1]} : vector<304x48xf32> to vector<8x48xf32>
    %305 = arith.addf %301, %304 : vector<8x48xf32>
    %306 = vector.extract_strided_slice %251 {offsets = [104, 0], sizes = [8, 48], strides = [1, 1]} : vector<304x48xf32> to vector<8x48xf32>
    %307 = arith.addf %303, %306 : vector<8x48xf32>
    %308 = vector.extract_strided_slice %250 {offsets = [112, 0], sizes = [8, 48], strides = [1, 1]} : vector<304x48xf32> to vector<8x48xf32>
    %309 = arith.addf %305, %308 : vector<8x48xf32>
    %310 = vector.extract_strided_slice %251 {offsets = [112, 0], sizes = [8, 48], strides = [1, 1]} : vector<304x48xf32> to vector<8x48xf32>
    %311 = arith.addf %307, %310 : vector<8x48xf32>
    %312 = vector.extract_strided_slice %250 {offsets = [120, 0], sizes = [8, 48], strides = [1, 1]} : vector<304x48xf32> to vector<8x48xf32>
    %313 = arith.addf %309, %312 : vector<8x48xf32>
    %314 = vector.extract_strided_slice %251 {offsets = [120, 0], sizes = [8, 48], strides = [1, 1]} : vector<304x48xf32> to vector<8x48xf32>
    %315 = arith.addf %311, %314 : vector<8x48xf32>
    %316 = vector.extract_strided_slice %250 {offsets = [128, 0], sizes = [8, 48], strides = [1, 1]} : vector<304x48xf32> to vector<8x48xf32>
    %317 = arith.addf %313, %316 : vector<8x48xf32>
    %318 = vector.extract_strided_slice %251 {offsets = [128, 0], sizes = [8, 48], strides = [1, 1]} : vector<304x48xf32> to vector<8x48xf32>
    %319 = arith.addf %315, %318 : vector<8x48xf32>
    %320 = vector.extract_strided_slice %250 {offsets = [136, 0], sizes = [8, 48], strides = [1, 1]} : vector<304x48xf32> to vector<8x48xf32>
    %321 = arith.addf %317, %320 : vector<8x48xf32>
    %322 = vector.extract_strided_slice %251 {offsets = [136, 0], sizes = [8, 48], strides = [1, 1]} : vector<304x48xf32> to vector<8x48xf32>
    %323 = arith.addf %319, %322 : vector<8x48xf32>
    %324 = vector.extract_strided_slice %250 {offsets = [144, 0], sizes = [8, 48], strides = [1, 1]} : vector<304x48xf32> to vector<8x48xf32>
    %325 = arith.addf %321, %324 : vector<8x48xf32>
    %326 = vector.extract_strided_slice %251 {offsets = [144, 0], sizes = [8, 48], strides = [1, 1]} : vector<304x48xf32> to vector<8x48xf32>
    %327 = arith.addf %323, %326 : vector<8x48xf32>
    %328 = vector.extract_strided_slice %250 {offsets = [152, 0], sizes = [8, 48], strides = [1, 1]} : vector<304x48xf32> to vector<8x48xf32>
    %329 = arith.addf %325, %328 : vector<8x48xf32>
    %330 = vector.extract_strided_slice %251 {offsets = [152, 0], sizes = [8, 48], strides = [1, 1]} : vector<304x48xf32> to vector<8x48xf32>
    %331 = arith.addf %327, %330 : vector<8x48xf32>
    %332 = vector.extract_strided_slice %250 {offsets = [160, 0], sizes = [8, 48], strides = [1, 1]} : vector<304x48xf32> to vector<8x48xf32>
    %333 = arith.addf %329, %332 : vector<8x48xf32>
    %334 = vector.extract_strided_slice %251 {offsets = [160, 0], sizes = [8, 48], strides = [1, 1]} : vector<304x48xf32> to vector<8x48xf32>
    %335 = arith.addf %331, %334 : vector<8x48xf32>
    %336 = vector.extract_strided_slice %250 {offsets = [168, 0], sizes = [8, 48], strides = [1, 1]} : vector<304x48xf32> to vector<8x48xf32>
    %337 = arith.addf %333, %336 : vector<8x48xf32>
    %338 = vector.extract_strided_slice %251 {offsets = [168, 0], sizes = [8, 48], strides = [1, 1]} : vector<304x48xf32> to vector<8x48xf32>
    %339 = arith.addf %335, %338 : vector<8x48xf32>
    %340 = vector.extract_strided_slice %250 {offsets = [176, 0], sizes = [8, 48], strides = [1, 1]} : vector<304x48xf32> to vector<8x48xf32>
    %341 = arith.addf %337, %340 : vector<8x48xf32>
    %342 = vector.extract_strided_slice %251 {offsets = [176, 0], sizes = [8, 48], strides = [1, 1]} : vector<304x48xf32> to vector<8x48xf32>
    %343 = arith.addf %339, %342 : vector<8x48xf32>
    %344 = vector.extract_strided_slice %250 {offsets = [184, 0], sizes = [8, 48], strides = [1, 1]} : vector<304x48xf32> to vector<8x48xf32>
    %345 = arith.addf %341, %344 : vector<8x48xf32>
    %346 = vector.extract_strided_slice %251 {offsets = [184, 0], sizes = [8, 48], strides = [1, 1]} : vector<304x48xf32> to vector<8x48xf32>
    %347 = arith.addf %343, %346 : vector<8x48xf32>
    %348 = vector.extract_strided_slice %250 {offsets = [192, 0], sizes = [8, 48], strides = [1, 1]} : vector<304x48xf32> to vector<8x48xf32>
    %349 = arith.addf %345, %348 : vector<8x48xf32>
    %350 = vector.extract_strided_slice %251 {offsets = [192, 0], sizes = [8, 48], strides = [1, 1]} : vector<304x48xf32> to vector<8x48xf32>
    %351 = arith.addf %347, %350 : vector<8x48xf32>
    %352 = vector.extract_strided_slice %250 {offsets = [200, 0], sizes = [8, 48], strides = [1, 1]} : vector<304x48xf32> to vector<8x48xf32>
    %353 = arith.addf %349, %352 : vector<8x48xf32>
    %354 = vector.extract_strided_slice %251 {offsets = [200, 0], sizes = [8, 48], strides = [1, 1]} : vector<304x48xf32> to vector<8x48xf32>
    %355 = arith.addf %351, %354 : vector<8x48xf32>
    %356 = vector.extract_strided_slice %250 {offsets = [208, 0], sizes = [8, 48], strides = [1, 1]} : vector<304x48xf32> to vector<8x48xf32>
    %357 = arith.addf %353, %356 : vector<8x48xf32>
    %358 = vector.extract_strided_slice %251 {offsets = [208, 0], sizes = [8, 48], strides = [1, 1]} : vector<304x48xf32> to vector<8x48xf32>
    %359 = arith.addf %355, %358 : vector<8x48xf32>
    %360 = vector.extract_strided_slice %250 {offsets = [216, 0], sizes = [8, 48], strides = [1, 1]} : vector<304x48xf32> to vector<8x48xf32>
    %361 = arith.addf %357, %360 : vector<8x48xf32>
    %362 = vector.extract_strided_slice %251 {offsets = [216, 0], sizes = [8, 48], strides = [1, 1]} : vector<304x48xf32> to vector<8x48xf32>
    %363 = arith.addf %359, %362 : vector<8x48xf32>
    %364 = vector.extract_strided_slice %250 {offsets = [224, 0], sizes = [8, 48], strides = [1, 1]} : vector<304x48xf32> to vector<8x48xf32>
    %365 = arith.addf %361, %364 : vector<8x48xf32>
    %366 = vector.extract_strided_slice %251 {offsets = [224, 0], sizes = [8, 48], strides = [1, 1]} : vector<304x48xf32> to vector<8x48xf32>
    %367 = arith.addf %363, %366 : vector<8x48xf32>
    %368 = vector.extract_strided_slice %250 {offsets = [232, 0], sizes = [8, 48], strides = [1, 1]} : vector<304x48xf32> to vector<8x48xf32>
    %369 = arith.addf %365, %368 : vector<8x48xf32>
    %370 = vector.extract_strided_slice %251 {offsets = [232, 0], sizes = [8, 48], strides = [1, 1]} : vector<304x48xf32> to vector<8x48xf32>
    %371 = arith.addf %367, %370 : vector<8x48xf32>
    %372 = vector.extract_strided_slice %250 {offsets = [240, 0], sizes = [8, 48], strides = [1, 1]} : vector<304x48xf32> to vector<8x48xf32>
    %373 = arith.addf %369, %372 : vector<8x48xf32>
    %374 = vector.extract_strided_slice %251 {offsets = [240, 0], sizes = [8, 48], strides = [1, 1]} : vector<304x48xf32> to vector<8x48xf32>
    %375 = arith.addf %371, %374 : vector<8x48xf32>
    %376 = vector.extract_strided_slice %250 {offsets = [248, 0], sizes = [8, 48], strides = [1, 1]} : vector<304x48xf32> to vector<8x48xf32>
    %377 = arith.addf %373, %376 : vector<8x48xf32>
    %378 = vector.extract_strided_slice %251 {offsets = [248, 0], sizes = [8, 48], strides = [1, 1]} : vector<304x48xf32> to vector<8x48xf32>
    %379 = arith.addf %375, %378 : vector<8x48xf32>
    %380 = vector.extract_strided_slice %250 {offsets = [256, 0], sizes = [8, 48], strides = [1, 1]} : vector<304x48xf32> to vector<8x48xf32>
    %381 = arith.addf %377, %380 : vector<8x48xf32>
    %382 = vector.extract_strided_slice %251 {offsets = [256, 0], sizes = [8, 48], strides = [1, 1]} : vector<304x48xf32> to vector<8x48xf32>
    %383 = arith.addf %379, %382 : vector<8x48xf32>
    %384 = vector.extract_strided_slice %250 {offsets = [264, 0], sizes = [8, 48], strides = [1, 1]} : vector<304x48xf32> to vector<8x48xf32>
    %385 = arith.addf %381, %384 : vector<8x48xf32>
    %386 = vector.extract_strided_slice %251 {offsets = [264, 0], sizes = [8, 48], strides = [1, 1]} : vector<304x48xf32> to vector<8x48xf32>
    %387 = arith.addf %383, %386 : vector<8x48xf32>
    %388 = vector.extract_strided_slice %250 {offsets = [272, 0], sizes = [8, 48], strides = [1, 1]} : vector<304x48xf32> to vector<8x48xf32>
    %389 = arith.addf %385, %388 : vector<8x48xf32>
    %390 = vector.extract_strided_slice %251 {offsets = [272, 0], sizes = [8, 48], strides = [1, 1]} : vector<304x48xf32> to vector<8x48xf32>
    %391 = arith.addf %387, %390 : vector<8x48xf32>
    %392 = vector.extract_strided_slice %250 {offsets = [280, 0], sizes = [8, 48], strides = [1, 1]} : vector<304x48xf32> to vector<8x48xf32>
    %393 = arith.addf %389, %392 : vector<8x48xf32>
    %394 = vector.extract_strided_slice %251 {offsets = [280, 0], sizes = [8, 48], strides = [1, 1]} : vector<304x48xf32> to vector<8x48xf32>
    %395 = arith.addf %391, %394 : vector<8x48xf32>
    %396 = vector.extract_strided_slice %250 {offsets = [288, 0], sizes = [8, 48], strides = [1, 1]} : vector<304x48xf32> to vector<8x48xf32>
    %397 = arith.addf %393, %396 : vector<8x48xf32>
    %398 = vector.extract_strided_slice %251 {offsets = [288, 0], sizes = [8, 48], strides = [1, 1]} : vector<304x48xf32> to vector<8x48xf32>
    %399 = arith.addf %395, %398 : vector<8x48xf32>
    %400 = vector.extract_strided_slice %250 {offsets = [296, 0], sizes = [8, 48], strides = [1, 1]} : vector<304x48xf32> to vector<8x48xf32>
    %401 = arith.addf %397, %400 : vector<8x48xf32>
    %402 = vector.extract_strided_slice %251 {offsets = [296, 0], sizes = [8, 48], strides = [1, 1]} : vector<304x48xf32> to vector<8x48xf32>
    %403 = arith.addf %399, %402 : vector<8x48xf32>
    %c304_77 = arith.constant 304 : index
    %c0_78 = arith.constant 0 : index
    %404 = vector.load %arg13[%c304_77, %c0_78] : memref<608x48xf32, #tpu.memory_space<vmem>>, vector<304x48xf32>
    tpu.vector_store %arg13[%c304_77, %c0_78], %248 {strides = array<i32>} : memref<608x48xf32, #tpu.memory_space<vmem>>, vector<304x48xf32>,
    %cst_79 = arith.constant dense<0.000000e+00> : vector<48xf32>
    %405 = vector.multi_reduction <add>, %401, %cst_79 [0] : vector<8x48xf32> to vector<48xf32>
    %406 = vector.shape_cast %405 : vector<48xf32> to vector<1x48xf32>
    %cst_80 = arith.constant dense<0.000000e+00> : vector<48xf32>
    %407 = vector.multi_reduction <add>, %403, %cst_80 [0] : vector<8x48xf32> to vector<48xf32>
    %408 = vector.shape_cast %407 : vector<48xf32> to vector<1x48xf32>
    %cst_81 = arith.constant 0.00166666671 : f32
    %409 = vector.broadcast %cst_81 : f32 to vector<1x48xf32>
    %410 = arith.mulf %406, %409 : vector<1x48xf32>
    %cst_82 = arith.constant 0.00166666671 : f32
    %411 = vector.broadcast %cst_82 : f32 to vector<1x48xf32>
    %412 = arith.mulf %408, %411 : vector<1x48xf32>
    %413 = arith.mulf %410, %410 : vector<1x48xf32>
    %414 = arith.subf %412, %413 : vector<1x48xf32>
    %c0_83 = arith.constant 0 : index
    %c0_84 = arith.constant 0 : index
    %415 = vector.load %arg7[%c0_83, %c0_84] : memref<1x48xf32, #tpu.memory_space<vmem>>, vector<1x48xf32>
    %cst_85 = arith.constant 9.99999974E-6 : f32
    %416 = vector.broadcast %cst_85 : f32 to vector<1x48xf32>
    %417 = arith.addf %414, %416 : vector<1x48xf32>
    %418 = math.rsqrt %417 : vector<1x48xf32>
    %419 = arith.mulf %415, %418 : vector<1x48xf32>
    %c0_86 = arith.constant 0 : index
    %c0_87 = arith.constant 0 : index
    %420 = vector.load %arg8[%c0_86, %c0_87] : memref<1x48xf32, #tpu.memory_space<vmem>>, vector<1x48xf32>
    %421 = arith.mulf %410, %419 : vector<1x48xf32>
    %422 = arith.subf %420, %421 : vector<1x48xf32>
    %c0_88 = arith.constant 0 : index
    %c0_89 = arith.constant 0 : index
    %423 = vector.load %arg9[%c0_88, %c0_89] : memref<3x48xf32, #tpu.memory_space<vmem>>, vector<3x48xf32>
    %c0_90 = arith.constant 0 : index
    %c0_91 = arith.constant 0 : index
    %424 = vector.load %arg10[%c0_90, %c0_91] : memref<1x1xf32, #tpu.memory_space<vmem>>, vector<1x1xf32>
    %c0_92 = arith.constant 0 : index
    %c0_93 = arith.constant 0 : index
    %425 = vector.load %arg13[%c0_92, %c0_93] : memref<608x48xf32, #tpu.memory_space<vmem>>, vector<100x48xf32>
    %426 = vector.broadcast %419 : vector<1x48xf32> to vector<100x48xf32>
    %427 = arith.mulf %425, %426 : vector<100x48xf32>
    %428 = vector.broadcast %422 : vector<1x48xf32> to vector<100x48xf32>
    %429 = arith.addf %427, %428 : vector<100x48xf32>
    %cst_94 = arith.constant dense<0xFF800000> : vector<48xf32>
    %430 = vector.multi_reduction <maximumf>, %429, %cst_94 [0] : vector<100x48xf32> to vector<48xf32>
    %431 = vector.shape_cast %430 : vector<48xf32> to vector<1x48xf32>
    %432 = vector.extract_strided_slice %423 {offsets = [0, 0], sizes = [1, 48], strides = [1, 1]} : vector<3x48xf32> to vector<1x48xf32>
    %433 = arith.mulf %431, %432 : vector<1x48xf32>
    %cst_95 = arith.constant dense<0.000000e+00> : vector<1xf32>
    %434 = vector.multi_reduction <add>, %433, %cst_95 [1] : vector<1x48xf32> to vector<1xf32>
    %435 = vector.shape_cast %434 : vector<1xf32> to vector<1x1xf32>
    %436 = arith.addf %424, %435 : vector<1x1xf32>
    %c100 = arith.constant 100 : index
    %c0_96 = arith.constant 0 : index
    %437 = vector.load %arg13[%c100, %c0_96] : memref<608x48xf32, #tpu.memory_space<vmem>>, vector<100x48xf32>
    %438 = vector.broadcast %419 : vector<1x48xf32> to vector<100x48xf32>
    %439 = arith.mulf %437, %438 : vector<100x48xf32>
    %440 = vector.broadcast %422 : vector<1x48xf32> to vector<100x48xf32>
    %441 = arith.addf %439, %440 : vector<100x48xf32>
    %cst_97 = arith.constant dense<0xFF800000> : vector<48xf32>
    %442 = vector.multi_reduction <maximumf>, %441, %cst_97 [0] : vector<100x48xf32> to vector<48xf32>
    %443 = vector.shape_cast %442 : vector<48xf32> to vector<1x48xf32>
    %444 = vector.extract_strided_slice %423 {offsets = [1, 0], sizes = [1, 48], strides = [1, 1]} : vector<3x48xf32> to vector<1x48xf32>
    %445 = arith.mulf %443, %444 : vector<1x48xf32>
    %cst_98 = arith.constant dense<0.000000e+00> : vector<1xf32>
    %446 = vector.multi_reduction <add>, %445, %cst_98 [1] : vector<1x48xf32> to vector<1xf32>
    %447 = vector.shape_cast %446 : vector<1xf32> to vector<1x1xf32>
    %448 = arith.addf %436, %447 : vector<1x1xf32>
    %c200 = arith.constant 200 : index
    %c0_99 = arith.constant 0 : index
    %449 = vector.load %arg13[%c200, %c0_99] : memref<608x48xf32, #tpu.memory_space<vmem>>, vector<100x48xf32>
    %450 = vector.broadcast %419 : vector<1x48xf32> to vector<100x48xf32>
    %451 = arith.mulf %449, %450 : vector<100x48xf32>
    %452 = vector.broadcast %422 : vector<1x48xf32> to vector<100x48xf32>
    %453 = arith.addf %451, %452 : vector<100x48xf32>
    %cst_100 = arith.constant dense<0xFF800000> : vector<48xf32>
    %454 = vector.multi_reduction <maximumf>, %453, %cst_100 [0] : vector<100x48xf32> to vector<48xf32>
    %455 = vector.shape_cast %454 : vector<48xf32> to vector<1x48xf32>
    %456 = vector.extract_strided_slice %423 {offsets = [2, 0], sizes = [1, 48], strides = [1, 1]} : vector<3x48xf32> to vector<1x48xf32>
    %457 = arith.mulf %455, %456 : vector<1x48xf32>
    %cst_101 = arith.constant dense<0.000000e+00> : vector<1xf32>
    %458 = vector.multi_reduction <add>, %457, %cst_101 [1] : vector<1x48xf32> to vector<1xf32>
    %459 = vector.shape_cast %458 : vector<1xf32> to vector<1x1xf32>
    %460 = arith.addf %448, %459 : vector<1x1xf32>
    %c0_102 = arith.constant 0 : index
    %c0_103 = arith.constant 0 : index
    %461 = vector.load %arg11[%c0_102, %c0_103] : memref<2x1xf32, #tpu.memory_space<vmem>>, vector<1x1xf32>
    tpu.vector_store %arg11[%c0_102, %c0_103], %460 {strides = array<i32>} : memref<2x1xf32, #tpu.memory_space<vmem>>, vector<1x1xf32>,
    %c304_104 = arith.constant 304 : index
    %c0_105 = arith.constant 0 : index
    %462 = vector.load %arg13[%c304_104, %c0_105] : memref<608x48xf32, #tpu.memory_space<vmem>>, vector<100x48xf32>
    %463 = vector.broadcast %419 : vector<1x48xf32> to vector<100x48xf32>
    %464 = arith.mulf %462, %463 : vector<100x48xf32>
    %465 = vector.broadcast %422 : vector<1x48xf32> to vector<100x48xf32>
    %466 = arith.addf %464, %465 : vector<100x48xf32>
    %cst_106 = arith.constant dense<0xFF800000> : vector<48xf32>
    %467 = vector.multi_reduction <maximumf>, %466, %cst_106 [0] : vector<100x48xf32> to vector<48xf32>
    %468 = vector.shape_cast %467 : vector<48xf32> to vector<1x48xf32>
    %469 = vector.extract_strided_slice %423 {offsets = [0, 0], sizes = [1, 48], strides = [1, 1]} : vector<3x48xf32> to vector<1x48xf32>
    %470 = arith.mulf %468, %469 : vector<1x48xf32>
    %cst_107 = arith.constant dense<0.000000e+00> : vector<1xf32>
    %471 = vector.multi_reduction <add>, %470, %cst_107 [1] : vector<1x48xf32> to vector<1xf32>
    %472 = vector.shape_cast %471 : vector<1xf32> to vector<1x1xf32>
    %473 = arith.addf %424, %472 : vector<1x1xf32>
    %c404 = arith.constant 404 : index
    %c0_108 = arith.constant 0 : index
    %474 = vector.load %arg13[%c404, %c0_108] : memref<608x48xf32, #tpu.memory_space<vmem>>, vector<100x48xf32>
    %475 = vector.broadcast %419 : vector<1x48xf32> to vector<100x48xf32>
    %476 = arith.mulf %474, %475 : vector<100x48xf32>
    %477 = vector.broadcast %422 : vector<1x48xf32> to vector<100x48xf32>
    %478 = arith.addf %476, %477 : vector<100x48xf32>
    %cst_109 = arith.constant dense<0xFF800000> : vector<48xf32>
    %479 = vector.multi_reduction <maximumf>, %478, %cst_109 [0] : vector<100x48xf32> to vector<48xf32>
    %480 = vector.shape_cast %479 : vector<48xf32> to vector<1x48xf32>
    %481 = vector.extract_strided_slice %423 {offsets = [1, 0], sizes = [1, 48], strides = [1, 1]} : vector<3x48xf32> to vector<1x48xf32>
    %482 = arith.mulf %480, %481 : vector<1x48xf32>
    %cst_110 = arith.constant dense<0.000000e+00> : vector<1xf32>
    %483 = vector.multi_reduction <add>, %482, %cst_110 [1] : vector<1x48xf32> to vector<1xf32>
    %484 = vector.shape_cast %483 : vector<1xf32> to vector<1x1xf32>
    %485 = arith.addf %473, %484 : vector<1x1xf32>
    %c504 = arith.constant 504 : index
    %c0_111 = arith.constant 0 : index
    %486 = vector.load %arg13[%c504, %c0_111] : memref<608x48xf32, #tpu.memory_space<vmem>>, vector<100x48xf32>
    %487 = vector.broadcast %419 : vector<1x48xf32> to vector<100x48xf32>
    %488 = arith.mulf %486, %487 : vector<100x48xf32>
    %489 = vector.broadcast %422 : vector<1x48xf32> to vector<100x48xf32>
    %490 = arith.addf %488, %489 : vector<100x48xf32>
    %cst_112 = arith.constant dense<0xFF800000> : vector<48xf32>
    %491 = vector.multi_reduction <maximumf>, %490, %cst_112 [0] : vector<100x48xf32> to vector<48xf32>
    %492 = vector.shape_cast %491 : vector<48xf32> to vector<1x48xf32>
    %493 = vector.extract_strided_slice %423 {offsets = [2, 0], sizes = [1, 48], strides = [1, 1]} : vector<3x48xf32> to vector<1x48xf32>
    %494 = arith.mulf %492, %493 : vector<1x48xf32>
    %cst_113 = arith.constant dense<0.000000e+00> : vector<1xf32>
    %495 = vector.multi_reduction <add>, %494, %cst_113 [1] : vector<1x48xf32> to vector<1xf32>
    %496 = vector.shape_cast %495 : vector<1xf32> to vector<1x1xf32>
    %497 = arith.addf %485, %496 : vector<1x1xf32>
    %c1_114 = arith.constant 1 : index
    %c0_115 = arith.constant 0 : index
    %498 = vector.load %arg11[%c1_114, %c0_115] : memref<2x1xf32, #tpu.memory_space<vmem>>, vector<1x1xf32>
    tpu.vector_store %arg11[%c1_114, %c0_115], %497 {strides = array<i32>} : memref<2x1xf32, #tpu.memory_space<vmem>>, vector<1x1xf32>,
    return
  }
}

</mosaic_0001>

<bundles_post_ra>
// kernel: conv_model2_forward.1
= control target key start
LH: loop header
LB: loop body
LE: loop exit
PB: predicated region body
PF: predicated region fallthrough
CT: control target
= control target key end

     0   :  { %v7776_v3 = vmov 0.0   ;;  %vm180_vm0 = vcmask 1045504   ;;  %vm122_vm1 = vcmask 441344   ;;  %v7777_v32 = vmov 0.0|0.0   ;;  %s9914_s1 = inlined_call_operand.vmem [shape: f32[54,252], index: 1, kind: input, shape index: {}]   ;;  %s9915_s0 = inlined_call_operand.vmem [shape: f32[608,54], index: 0, kind: input, shape index: {}]   ;;  %s9916_s3 = inlined_call_operand.vmem [shape: f32[252,96], index: 3, kind: input, shape index: {}]   ;;  %s9917_s2 = inlined_call_operand.vmem [shape: f32[1,252], index: 2, kind: input, shape index: {}]   ;;  %s9918_s5 = inlined_call_operand.vmem [shape: f32[3,96,48], index: 5, kind: input, shape index: {}]   ;;  %s9919_s4 = inlined_call_operand.vmem [shape: f32[1,96], index: 4, kind: input, shape index: {}]   ;;  %s9920_s6 = inlined_call_operand.vmem [shape: f32[1,48], index: 6, kind: input, shape index: {}]   ;;  %s9921_s10 = inlined_call_operand.<no memory space> [shape: f32[1,1], index: 10, kind: input, shape index: {}]   ;;  %s9922_s7 = inlined_call_operand.vmem [shape: f32[1,48], index: 7, kind: input, shape index: {}]   ;;  %s9923_s8 = inlined_call_operand.vmem [shape: f32[1,48], index: 8, kind: input, shape index: {}]   ;;  %s9924_s9 = inlined_call_operand.vmem [shape: f32[3,48], index: 9, kind: input, shape index: {}]   ;;  %s9925_s11 = inlined_call_operand.vmem [shape: f32[2,1], index: 11, kind: output, shape index: {}]  }
   0x1   :  { %v41_v0 = vld [vmem:[%s9914_s1 + $0x8] sm:$0xff]  ;;  %v43_v1 = vld [vmem:[%s9914_s1 + $0x18] sm:$0xff]  ;;  %v40_v2 = vld [vmem:[%s9914_s1] sm:$0xff]  ;;  %251 = vmatprep.mubr.f32.mxu0 %v7776_v3  ;;  %7210 = vmatprep.subr.bf16.mxu1 %v7777_v32  ;;  %vm468_vm2 = vcmask 1043456   ;;  %vm7778_vm3 = vmmov 1   ;;  %vm410_vm5 = vcmask 1014784  }
   0x2   :  { %v7849_v4 = vpack.c.bf16 %v43_v1, %v41_v0  ;;  %v42_v5 = vld [vmem:[%s9914_s1 + $0x10] sm:$0xff]  ;;  %v45_v6 = vld [vmem:[%s9914_s1 + $0x28] sm:$0xff]  ;;  %v47_v7 = vld [vmem:[%s9914_s1 + $0x38] sm:$0xff]  ;;  %vm89_vm6 = vcmask 785408   ;;  %vm3884_vm7 = vcmask 392192   ;;  %vm5544_vm9 = vcmask 388096  }
   0x3   :  { %v7860_v8 = vpack.c.bf16 %v42_v5, %v40_v2  ;;  %v7862_v9 = vpack.c.bf16 %v47_v7, %v45_v6  ;;  %v44_v10 = vld [vmem:[%s9914_s1 + $0x20] sm:$0xff]  ;;  %v46_v11 = vld [vmem:[%s9914_s1 + $0x30] sm:$0xff]  ;;  %v49_v12 = vld [vmem:[%s9914_s1 + $0x48] sm:$0xff]  ;;  %90 = vst.msk [vmem:[#allocation2 + $0x130] sm:$0xff] %vm89_vm6, %v7776_v3  ;;  %vm5557_vm10 = vcmask 385024   ;;  %vm5633_vm11 = vcmask 386049  }
   0x4   :  { %7199 = vmatprep.subr.bf16.mxu0 %v7849_v4  ;;  %v51_v13 = vld [vmem:[%s9914_s1 + $0x58] sm:$0xff]  ;;  %v7878_v14 = vpack.c.bf16 %v46_v11, %v44_v10  ;;  %v48_v16 = vld [vmem:[%s9914_s1 + $0x40] sm:$0xff]  ;;  %v50_v17 = vld [vmem:[%s9914_s1 + $0x50] sm:$0xff]  ;;  %91 = vst.msk [vmem:[#allocation2 + $0x268] sm:$0xff] %vm89_vm6, %v7776_v3  ;;  %vm5715_vm12 = vcmask 387074   ;;  %vm5726_vm13 = vcmask 0  }
   0x5   :  { %7201 = vmatpush1.bf16.msra.mxu0 %v7860_v8  ;;  %v7881_v15 = vpack.c.bf16 %v51_v13, %v49_v12  ;;  %v7890_v18 = vpack.c.bf16 %v50_v17, %v48_v16  ;;  %v7896_v19 = vld [vmem:[%s9914_s1 + $0x68] sm:$0x3f]  ;;  %v7904_v20 = vld [vmem:[%s9914_s1 + $0x60] sm:$0x3f]  ;;  %v94_v23 = vld [vmem:[%s9915_s0 + $0x10] sm:$0xff] }
   0x6   :  { %7203 = vmatprep.subr.bf16.mxu0 %v7862_v9  ;;  %v92_v21 = vld [vmem:[%s9915_s0] sm:$0xff]  ;;  %v93_v22 = vld [vmem:[%s9915_s0 + $0x8] sm:$0xff]  ;;  %v95_v24 = vld [vmem:[%s9915_s0 + $0x18] sm:$0xff] }
   0x7   :  { %v96_v25 = vld [vmem:[%s9915_s0 + $0x20] sm:$0xff]  ;;  %v97_v26 = vld [vmem:[%s9915_s0 + $0x28] sm:$0xff]  ;;  %v98_v27 = vld [vmem:[%s9915_s0 + $0x30] sm:$0xff] }
   0x8   :  { %v55_v28 = vld [vmem:[%s9916_s3] sm:$0xff]  ;;  %v56_v29 = vld [vmem:[%s9916_s3 + $0x8] sm:$0xff]  ;;  %v99_v30 = vld [vmem:[%s9915_s0 + $0x38] sm:$0xff] }
   0x9   :  { %7205 = vmatpush1.bf16.msra.mxu0 %v7878_v14  ;;  %v7963_v31 = vpack.c.bf16 %v56_v29, %v55_v28  ;;  %v57_v33 = vld [vmem:[%s9916_s3 + $0x10] sm:$0xff]  ;;  %v58_v34 = vld [vmem:[%s9916_s3 + $0x18] sm:$0xff]  ;;  %v100_v35 = vld [vmem:[%s9915_s0 + $0x40] sm:$0xff] }
   0xa   :  { %7207 = vmatprep.subr.bf16.mxu0 %v7881_v15  ;;  %v7979_v36 = vpack.c.bf16 %v58_v34, %v57_v33  ;;  %v59_v37 = vld [vmem:[%s9916_s3 + $0x20] sm:$0xff]  ;;  %v60_v38 = vld [vmem:[%s9916_s3 + $0x28] sm:$0xff]  ;;  %v61_v41 = vld [vmem:[%s9916_s3 + $0x30] sm:$0xff] }
   0xb   :  { %7212 = vmatpush1.bf16.msra.mxu1 %v7963_v31  ;;  %v101_v39 = vld [vmem:[%s9915_s0 + $0x48] sm:$0xff]  ;;  %v7994_v40 = vpack.c.bf16 %v60_v38, %v59_v37  ;;  %v62_v42 = vld [vmem:[%s9916_s3 + $0x38] sm:$0xff]  ;;  %v102_v43 = vld [vmem:[%s9915_s0 + $0x50] sm:$0xff] }
   0xc   :  { %7213 = vmatprep.subr.bf16.mxu1 %v7777_v32  ;;  %v8009_v44 = vpack.c.bf16 %v62_v42, %v61_v41  ;;  %v63_v45 = vld [vmem:[%s9916_s3 + $0x40] sm:$0xff]  ;;  %v64_v46 = vld [vmem:[%s9916_s3 + $0x48] sm:$0xff]  ;;  %v103_v47 = vld [vmem:[%s9915_s0 + $0x58] sm:$0xff] }
   0xd   :  { %7209 = vmatpush1.bf16.msra.mxu0 %v7890_v18  ;;  %v8024_v48 = vpack.c.bf16 %v64_v46, %v63_v45  ;;  %v65_v49 = vld [vmem:[%s9916_s3 + $0x50] sm:$0xff]  ;;  %v66_v50 = vld [vmem:[%s9916_s3 + $0x58] sm:$0xff]  ;;  %v104_v51 = vld [vmem:[%s9915_s0 + $0x60] sm:$0xff] }
   0xe   :  { %5970 = vmatprep.subr.msk.mxu0 %vm180_vm0, %v7896_v19  ;;  %v8039_v52 = vpack.c.bf16 %v66_v50, %v65_v49  ;;  %v67_v53 = vld [vmem:[%s9916_s3 + $0x60] sm:$0xff]  ;;  %v68_v54 = vld [vmem:[%s9916_s3 + $0x68] sm:$0xff]  ;;  %v69_v57 = vld [vmem:[%s9916_s3 + $0x70] sm:$0xff] }
   0xf   :  { %7215 = vmatpush1.bf16.msra.mxu1 %v7979_v36  ;;  %v105_v55 = vld [vmem:[%s9915_s0 + $0x68] sm:$0xff]  ;;  %v8054_v56 = vpack.c.bf16 %v68_v54, %v67_v53  ;;  %v70_v58 = vld [vmem:[%s9916_s3 + $0x78] sm:$0xff]  ;;  %v106_v59 = vld [vmem:[%s9915_s0 + $0x70] sm:$0xff] }
  0x10   :  { %7216 = vmatprep.subr.bf16.mxu1 %v7777_v32  ;;  %v8069_v60 = vpack.c.bf16 %v70_v58, %v69_v57  ;;  %v71_v61 = vld [vmem:[%s9916_s3 + $0x80] sm:$0xff]  ;;  %v72_v62 = vld [vmem:[%s9916_s3 + $0x88] sm:$0xff]  ;;  %v107_v63 = vld [vmem:[%s9915_s0 + $0x78] sm:$0xff] }
  0x11   :  { %5971 = vmatpush1.msk.msra.mxu0 %vm180_vm0, %v7904_v20  ;;  %v8084_v0 = vpack.c.bf16 %v72_v62, %v71_v61  ;;  %v73_v1 = vld [vmem:[%s9916_s3 + $0x90] sm:$0xff]  ;;  %v74_v2 = vld [vmem:[%s9916_s3 + $0x98] sm:$0xff]  ;;  %v108_v5 = vld [vmem:[%s9915_s0 + $0x80] sm:$0xff] }
  0x12   :  { %5972 = vmatmul.mubr.msk.f32.vlgmr.msra.gmra.mrb[0].mxu0 %vm122_vm1, %v92_v21  ;;  %7260 = vmatprep.subr.bf16.mxu0 %v7849_v4  ;;  %v8099_v6 = vpack.c.bf16 %v74_v2, %v73_v1  ;;  %v75_v7 = vld [vmem:[%s9916_s3 + $0xa0] sm:$0xff]  ;;  %v76_v10 = vld [vmem:[%s9916_s3 + $0xa8] sm:$0xff]  ;;  %v77_v13 = vld [vmem:[%s9916_s3 + $0xb0] sm:$0xff] }
  0x13   :  { %7262 = vmatpush1.bf16.msra.mxu0 %v7860_v8  ;;  %257 = vmatprep.mubr.f32.mxu0 %v7776_v3  ;;  %v109_v11 = vld [vmem:[%s9915_s0 + $0x88] sm:$0xff]  ;;  %v8114_v12 = vpack.c.bf16 %v76_v10, %v75_v7  ;;  %v78_v16 = vld [vmem:[%s9916_s3 + $0xb8] sm:$0xff]  ;;  %v110_v17 = vld [vmem:[%s9915_s0 + $0x90] sm:$0xff]  ;;  %v112_v7 = vlaneseq }
  0x14   :  { %7264 = vmatprep.subr.bf16.mxu0 %v7862_v9  ;;  %7218 = vmatpush1.bf16.msra.mxu1 %v7994_v40  ;;  %v8129_v21 = vpack.c.bf16 %v78_v16, %v77_v13  ;;  %v671_v28 = vld [vmem:[%s9915_s0 + $0xa0] sm:$0xff]  ;;  %v84_v33 = vld [vmem:[%s9916_s3 + $0xe8] sm:$0xff]  ;;  %v85_v37 = vld [vmem:[%s9916_s3 + $0xf0] sm:$0xff] }
  0x15   :  { %7219 = vmatprep.subr.bf16.mxu1 %v7777_v32  ;;  %v672_v34 = vld [vmem:[%s9915_s0 + $0xa8] sm:$0xff]  ;;  %v86_v38 = vld [vmem:[%s9916_s3 + $0xf8] sm:$0xf]  ;;  %vm8198_vm4 = vmpackc.low %vm468_vm2, %vm7778_vm3 }
  0x16   :  { %5973 = vmatmul.mubr.msk.f32.gmra.mrb[2].mxu0 %vm122_vm1, %v93_v22  ;;  %v79_v22 = vld [vmem:[%s9916_s3 + $0xc0] sm:$0xff]  ;;  %v8194_v41 = vpack.c.bf16 %v86_v38, %v85_v37  ;;  %v676_v46 = vld [vmem:[%s9915_s0 + $0xc8] sm:$0xff]  ;;  %v682_v53 = vld [vmem:[%s9915_s0 + $0xf8] sm:$0xff] }
  0x17   :  { %263 = vmatprep.mubr.f32.mxu0 %v7776_v3  ;;  %7266 = vmatpush1.bf16.msra.mxu0 %v7878_v14  ;;  %v675_v45 = vld [vmem:[%s9915_s0 + $0xc0] sm:$0xff]  ;;  %v680_v50 = vld [vmem:[%s9915_s0 + $0xe8] sm:$0xff]  ;;  %v685_v57 = vld [vmem:[%s9915_s0 + $0x110] sm:$0xff] }
  0x18   :  { %7268 = vmatprep.subr.bf16.mxu0 %v7881_v15  ;;  %7221 = vmatpush1.bf16.msra.mxu1 %v8009_v44  ;;  %v679_v49 = vld [vmem:[%s9915_s0 + $0xe0] sm:$0xff]  ;;  %v686_v58 = vld [vmem:[%s9915_s0 + $0x118] sm:$0xff]  ;;  %v688_v61 = vld [vmem:[%s9915_s0 + $0x128] sm:$0xff] }
  0x19   :  { %7222 = vmatprep.subr.bf16.mxu1 %v7777_v32  ;;  %v683_v54 = vld [vmem:[%s9915_s0 + $0x100] sm:$0xff]  ;;  %v1218_v62 = vld [vmem:[%s9915_s0 + $0x130] sm:$0xff]  ;;  %v1231_v13 = vld [vmem:[%s9915_s0 + $0x198] sm:$0xff] }
  0x1a   :  { %5974 = vmatmul.mubr.msk.f32.gmra.mrb[4].mxu0 %vm122_vm1, %v94_v23  ;;  %v80_v23 = vld [vmem:[%s9916_s3 + $0xc8] sm:$0xff]  ;;  %v1220_v1 = vld [vmem:[%s9915_s0 + $0x140] sm:$0xff]  ;;  %v1230_v10 = vld [vmem:[%s9915_s0 + $0x190] sm:$0xff] }
  0x1b   :  { %269 = vmatprep.mubr.f32.mxu0 %v7776_v3  ;;  %7270 = vmatpush1.bf16.msra.mxu0 %v7890_v18  ;;  %v1228_v2 = vld [vmem:[%s9915_s0 + $0x180] sm:$0xff]  ;;  %v1234_v37 = vld [vmem:[%s9915_s0 + $0x1b0] sm:$0xff] }
  0x1c   :  { %6012 = vmatprep.subr.msk.mxu0 %vm180_vm0, %v7896_v19  ;;  %7224 = vmatpush1.bf16.msra.mxu1 %v8024_v48 }
  0x1d   :  { %7225 = vmatprep.subr.bf16.mxu1 %v7777_v32 }
  0x1e   :  { %5975 = vmatmul.mubr.msk.f32.gmra.mrb[6].mxu0 %vm122_vm1, %v95_v24  ;;  %v670_v24 = vld [vmem:[%s9915_s0 + $0x98] sm:$0xff] }
  0x1f   :  { %275 = vmatprep.mubr.f32.mxu0 %v7776_v3  ;;  %6013 = vmatpush1.msk.msra.mxu0 %vm180_vm0, %v7904_v20 }
  0x20   :  { %7321 = vmatprep.subr.bf16.mxu0 %v7849_v4  ;;  %7227 = vmatpush1.bf16.msra.mxu1 %v8039_v52 }
  0x21   :  { %7228 = vmatprep.subr.bf16.mxu1 %v7777_v32 }
  0x22   :  { %5976 = vmatmul.mubr.msk.f32.gmra.mrb[8].mxu0 %vm122_vm1, %v96_v25  ;;  %v8144_v25 = vpack.c.bf16 %v80_v23, %v79_v22  ;;  %v54_v22 = vld [vmem:[%s9917_s2] sm:$0x3] }
  0x23   :  { %281 = vmatprep.mubr.f32.mxu0 %v7776_v3 }
  0x24   :  { %7230 = vmatpush1.bf16.msra.mxu1 %v8054_v56 }
  0x25   :  { %7231 = vmatprep.subr.bf16.mxu1 %v7777_v32 }
  0x26   :  { %5977 = vmatmul.mubr.msk.f32.gmra.mrb[10].mxu0 %vm122_vm1, %v97_v26  ;;  %v81_v26 = vld [vmem:[%s9916_s3 + $0xd0] sm:$0xff] }
  0x27   :  { %287 = vmatprep.mubr.f32.mxu0 %v7776_v3 }
  0x28   :  { %7233 = vmatpush1.bf16.msra.mxu1 %v8069_v60 }
  0x29   :  { %7234 = vmatprep.subr.bf16.mxu1 %v7777_v32 }
  0x2a   :  { %5978 = vmatmul.mubr.msk.f32.gmra.mrb[12].mxu0 %vm122_vm1, %v98_v27  ;;  %v82_v27 = vld [vmem:[%s9916_s3 + $0xd8] sm:$0xff] }
  0x2b   :  { %293 = vmatprep.mubr.f32.mxu0 %v7776_v3  ;;  %v8160_v29 = vpack.c.bf16 %v82_v27, %v81_v26  ;;  %v1233_v27 = vld [vmem:[%s9915_s0 + $0x1a8] sm:$0xff] }
  0x2c   :  { %7236 = vmatpush1.bf16.msra.mxu1 %v8084_v0 }
  0x2d   :  { %7237 = vmatprep.subr.bf16.mxu1 %v7777_v32 }
  0x2e   :  { %5979 = vmatmul.mubr.msk.f32.gmra.mrb[14].mxu0 %vm122_vm1, %v99_v30  ;;  %v83_v30 = vld [vmem:[%s9916_s3 + $0xe0] sm:$0xff] }
  0x2f   :  { %299 = vmatprep.mubr.f32.mxu0 %v7776_v3 }
  0x30   :  { %7239 = vmatpush1.bf16.msra.mxu1 %v8099_v6 }
  0x31   :  { %7240 = vmatprep.subr.bf16.mxu1 %v7777_v32 }
  0x32   :  { %5980 = vmatmul.mubr.msk.f32.gmra.mrb[16].mxu0 %vm122_vm1, %v100_v35  ;;  %v8177_v35 = vpack.c.bf16 %v84_v33, %v83_v30 }
  0x33   :  { %305 = vmatprep.mubr.f32.mxu0 %v7776_v3 }
  0x34   :  { %7242 = vmatpush1.bf16.msra.mxu1 %v8114_v12 }
  0x35   :  { %7243 = vmatprep.subr.bf16.mxu1 %v7777_v32 }
  0x36   :  { %5981 = vmatmul.mubr.msk.f32.gmra.mrb[18].mxu0 %vm122_vm1, %v101_v39  ;;  %v673_v39 = vld [vmem:[%s9915_s0 + $0xb0] sm:$0xff] }
  0x37   :  { %311 = vmatprep.mubr.f32.mxu0 %v7776_v3 }
  0x38   :  { %7245 = vmatpush1.bf16.msra.mxu1 %v8129_v21 }
  0x39   :  { %7246 = vmatprep.subr.bf16.mxu1 %v7777_v32 }
  0x3a   :  { %5982 = vmatmul.mubr.msk.f32.gmra.mrb[20].mxu0 %vm122_vm1, %v102_v43  ;;  %v674_v43 = vld [vmem:[%s9915_s0 + $0xb8] sm:$0xff] }
  0x3b   :  { %317 = vmatprep.mubr.f32.mxu0 %v7776_v3 }
  0x3c   :  { %7248 = vmatpush1.bf16.msra.mxu1 %v8144_v25 }
  0x3d   :  { %7249 = vmatprep.subr.bf16.mxu1 %v7777_v32 }
  0x3e   :  { %5983 = vmatmul.mubr.msk.f32.gmra.mrb[22].mxu0 %vm122_vm1, %v103_v47  ;;  %v678_v47 = vld [vmem:[%s9915_s0 + $0xd8] sm:$0xff] }
  0x3f   :  { %323 = vmatprep.mubr.f32.mxu0 %v7776_v3 }
  0x40   :  { %7251 = vmatpush1.bf16.msra.mxu1 %v8160_v29 }
  0x41   :  { %7252 = vmatprep.subr.bf16.mxu1 %v7777_v32 }
  0x42   :  { %5984 = vmatmul.mubr.msk.f32.gmra.mrb[24].mxu0 %vm122_vm1, %v104_v51  ;;  %v681_v51 = vld [vmem:[%s9915_s0 + $0xf0] sm:$0xff] }
  0x43   :  { %329 = vmatprep.mubr.f32.mxu0 %v7776_v3 }
  0x44   :  { %7254 = vmatpush1.bf16.msra.mxu1 %v8177_v35 }
  0x45   :  { %7255 = vmatprep.subr.bf16.mxu1 %v7777_v32 }
  0x46   :  { %5985 = vmatmul.mubr.msk.f32.gmra.mrb[26].mxu0 %vm122_vm1, %v105_v55  ;;  %v684_v55 = vld [vmem:[%s9915_s0 + $0x108] sm:$0xff] }
  0x47   :  { %335 = vmatprep.mubr.f32.mxu0 %v7776_v3 }
  0x48   :  { %7258 = vmatpush1.bf16.msk.msra.mxu1 %vm8198_vm4, %v8194_v41 }
  0x49   :  { %7271 = vmatprep.subr.bf16.mxu1 %v7777_v32 }
  0x4a   :  { %5986 = vmatmul.mubr.msk.f32.gmra.mrb[28].mxu0 %vm122_vm1, %v106_v59  ;;  %v687_v59 = vld [vmem:[%s9915_s0 + $0x120] sm:$0xff] }
  0x4b   :  { %341 = vmatprep.mubr.f32.mxu0 %v7776_v3 }
  0x4e   :  { %5987 = vmatmul.mubr.msk.f32.gmra.mrb[30].mxu0 %vm122_vm1, %v107_v63  ;;  %v1219_v63 = vld [vmem:[%s9915_s0 + $0x138] sm:$0xff] }
  0x4f   :  { %347 = vmatprep.mubr.f32.mxu0 %v7776_v3 }
  0x52   :  { %5988 = vmatmul.mubr.msk.f32.gmra.mrb[32].mxu0 %vm122_vm1, %v108_v5  ;;  %v1229_v5 = vld [vmem:[%s9915_s0 + $0x188] sm:$0xff] }
  0x53   :  { %353 = vmatprep.mubr.f32.mxu0 %v7776_v3 }
  0x56   :  { %5989 = vmatmul.mubr.msk.f32.gmra.mrb[34].mxu0 %vm122_vm1, %v109_v11  ;;  %v8360_v11 = vshrl.u32 %v112_v7, 7 }
  0x57   :  { %359 = vmatprep.mubr.f32.mxu0 %v7776_v3 }
  0x58   :  { %v8368_v16 = vsub.s32 0, %v8360_v11  ;;  %v8378_v23 = vsub.s32 1, %v8360_v11 }
  0x5a   :  { %5990 = vmatmul.mubr.msk.f32.gmra.mrb[36].mxu0 %vm122_vm1, %v110_v17  ;;  %v1232_v17 = vld [vmem:[%s9915_s0 + $0x1a0] sm:$0xff]  ;;  %v8386_v26 = vrot.slane %v54_v22, %v8378_v23 }
  0x5b   :  { %810 = vmatprep.mubr.f32.mxu0 %v7776_v3 }
  0x5e   :  { %6014 = vmatmul.mubr.msk.f32.vlgmr.msra.gmra.mrb[38].mxu0 %vm122_vm1, %v670_v24  ;;  %v8382_v24 = vrot.slane %v54_v22, %v8368_v16 }
  0x5f   :  { %7323 = vmatpush1.bf16.msra.mxu0 %v7860_v8  ;;  %816 = vmatprep.mubr.f32.mxu0 %v7776_v3 }
  0x60   :  { %7325 = vmatprep.subr.bf16.mxu0 %v7862_v9 }
  0x62   :  { %6015 = vmatmul.mubr.msk.f32.gmra.mrb[40].mxu0 %vm122_vm1, %v671_v28 }
  0x63   :  { %822 = vmatprep.mubr.f32.mxu0 %v7776_v3  ;;  %7327 = vmatpush1.bf16.msra.mxu0 %v7878_v14 }
  0x64   :  { %7329 = vmatprep.subr.bf16.mxu0 %v7881_v15 }
  0x66   :  { %6016 = vmatmul.mubr.msk.f32.gmra.mrb[42].mxu0 %vm122_vm1, %v672_v34 }
  0x67   :  { %828 = vmatprep.mubr.f32.mxu0 %v7776_v3  ;;  %7331 = vmatpush1.bf16.msra.mxu0 %v7890_v18 }
  0x68   :  { %6053 = vmatprep.subr.msk.mxu0 %vm180_vm0, %v7896_v19 }
  0x6a   :  { %6017 = vmatmul.mubr.msk.f32.gmra.mrb[44].mxu0 %vm122_vm1, %v673_v39 }
  0x6b   :  { %834 = vmatprep.mubr.f32.mxu0 %v7776_v3  ;;  %6054 = vmatpush1.msk.msra.mxu0 %vm180_vm0, %v7904_v20 }
  0x6c   :  { %7382 = vmatprep.subr.bf16.mxu0 %v7849_v4  ;;  %v677_v4 = vld [vmem:[%s9915_s0 + $0xd0] sm:$0xff] }
  0x6e   :  { %6018 = vmatmul.mubr.msk.f32.gmra.mrb[46].mxu0 %vm122_vm1, %v674_v43 }
  0x6f   :  { %840 = vmatprep.mubr.f32.mxu0 %v7776_v3 }
  0x72   :  { %6019 = vmatmul.mubr.msk.f32.gmra.mrb[48].mxu0 %vm122_vm1, %v675_v45 }
  0x73   :  { %846 = vmatprep.mubr.f32.mxu0 %v7776_v3 }
  0x76   :  { %6020 = vmatmul.mubr.msk.f32.gmra.mrb[50].mxu0 %vm122_vm1, %v676_v46 }
  0x77   :  { %852 = vmatprep.mubr.f32.mxu0 %v7776_v3 }
  0x7a   :  { %6021 = vmatmul.mubr.msk.f32.gmra.mrb[52].mxu0 %vm122_vm1, %v677_v4 }
  0x7b   :  { %858 = vmatprep.mubr.f32.mxu0 %v7776_v3 }
  0x7e   :  { %6022 = vmatmul.mubr.msk.f32.gmra.mrb[54].mxu0 %vm122_vm1, %v678_v47  ;;  %v1235_v47 = vld [vmem:[%s9915_s0 + $0x1b8] sm:$0xff] }
  0x7f   :  { %864 = vmatprep.mubr.f32.mxu0 %v7776_v3 }
  0x82   :  { %6023 = vmatmul.mubr.msk.f32.gmra.mrb[56].mxu0 %vm122_vm1, %v679_v49 }
  0x83   :  { %870 = vmatprep.mubr.f32.mxu0 %v7776_v3 }
  0x86   :  { %6024 = vmatmul.mubr.msk.f32.gmra.mrb[58].mxu0 %vm122_vm1, %v680_v50 }
  0x87   :  { %876 = vmatprep.mubr.f32.mxu0 %v7776_v3 }
  0x8a   :  { %6025 = vmatmul.mubr.msk.f32.gmra.mrb[60].mxu0 %vm122_vm1, %v681_v51 }
  0x8b   :  { %882 = vmatprep.mubr.f32.mxu0 %v7776_v3 }
  0x8e   :  { %6026 = vmatmul.mubr.msk.f32.gmra.mrb[62].mxu0 %vm122_vm1, %v682_v53 }
  0x8f   :  { %888 = vmatprep.mubr.f32.mxu0 %v7776_v3 }
  0x92   :  { %6027 = vmatmul.mubr.msk.f32.gmra.mrb[64].mxu0 %vm122_vm1, %v683_v54 }
  0x93   :  { %894 = vmatprep.mubr.f32.mxu0 %v7776_v3 }
  0x96   :  { %6028 = vmatmul.mubr.msk.f32.gmra.mrb[66].mxu0 %vm122_vm1, %v684_v55 }
  0x97   :  { %900 = vmatprep.mubr.f32.mxu0 %v7776_v3 }
  0x9a   :  { %6029 = vmatmul.mubr.msk.f32.gmra.mrb[68].mxu0 %vm122_vm1, %v685_v57  ;;  %v1236_v57 = vld [vmem:[%s9915_s0 + $0x1c0] sm:$0xff] }
  0x9b   :  { %906 = vmatprep.mubr.f32.mxu0 %v7776_v3 }
  0x9e   :  { %6030 = vmatmul.mubr.msk.f32.gmra.mrb[70].mxu0 %vm122_vm1, %v686_v58 }
  0x9f   :  { %912 = vmatprep.mubr.f32.mxu0 %v7776_v3 }
  0xa2   :  { %6031 = vmatmul.mubr.msk.f32.gmra.mrb[72].mxu0 %vm122_vm1, %v687_v59 }
  0xa3   :  { %918 = vmatprep.mubr.f32.mxu0 %v7776_v3 }
  0xa6   :  { %6032 = vmatmul.mubr.msk.f32.gmra.mrb[74].mxu0 %vm122_vm1, %v688_v61 }
  0xa7   :  { %1358 = vmatprep.mubr.f32.mxu0 %v7776_v3 }
  0xaa   :  { %6055 = vmatmul.mubr.msk.f32.vlgmr.msra.gmra.mrb[76].mxu0 %vm122_vm1, %v1218_v62 }
  0xab   :  { %7384 = vmatpush1.bf16.msra.mxu0 %v7860_v8  ;;  %1364 = vmatprep.mubr.f32.mxu0 %v7776_v3  ;;  %v1221_v8 = vld [vmem:[%s9915_s0 + $0x148] sm:$0xff] }
  0xac   :  { %7386 = vmatprep.subr.bf16.mxu0 %v7862_v9  ;;  %v1222_v9 = vld [vmem:[%s9915_s0 + $0x150] sm:$0xff] }
  0xae   :  { %6056 = vmatmul.mubr.msk.f32.gmra.mrb[78].mxu0 %vm122_vm1, %v1219_v63 }
  0xaf   :  { %1370 = vmatprep.mubr.f32.mxu0 %v7776_v3  ;;  %7388 = vmatpush1.bf16.msra.mxu0 %v7878_v14  ;;  %v1223_v14 = vld [vmem:[%s9915_s0 + $0x158] sm:$0xff] }
  0xb0   :  { %7390 = vmatprep.subr.bf16.mxu0 %v7881_v15  ;;  %v1224_v15 = vld [vmem:[%s9915_s0 + $0x160] sm:$0xff] }
  0xb2   :  { %6057 = vmatmul.mubr.msk.f32.gmra.mrb[80].mxu0 %vm122_vm1, %v1220_v1 }
  0xb3   :  { %1376 = vmatprep.mubr.f32.mxu0 %v7776_v3  ;;  %7392 = vmatpush1.bf16.msra.mxu0 %v7890_v18  ;;  %v1225_v18 = vld [vmem:[%s9915_s0 + $0x168] sm:$0xff] }
  0xb4   :  { %6094 = vmatprep.subr.msk.mxu0 %vm180_vm0, %v7896_v19  ;;  %v1226_v19 = vld [vmem:[%s9915_s0 + $0x170] sm:$0xff] }
  0xb6   :  { %6058 = vmatmul.mubr.msk.f32.gmra.mrb[82].mxu0 %vm122_vm1, %v1221_v8  ;;  %v1766_v8 = vld [vmem:[%s9915_s0 + $0x1c8] sm:$0xff] }
  0xb7   :  { %1382 = vmatprep.mubr.f32.mxu0 %v7776_v3  ;;  %6095 = vmatpush1.msk.msra.mxu0 %vm180_vm0, %v7904_v20  ;;  %v1227_v20 = vld [vmem:[%s9915_s0 + $0x178] sm:$0xff] }
  0xb8   :  { %7393 = vmatprep.subr.bf16.mxu0 %v7777_v32 }
  0xba   :  { %6059 = vmatmul.mubr.msk.f32.gmra.mrb[84].mxu0 %vm122_vm1, %v1222_v9 }
  0xbb   :  { %1388 = vmatprep.mubr.f32.mxu0 %v7776_v3 }
  0xbe   :  { %6060 = vmatmul.mubr.msk.f32.gmra.mrb[86].mxu0 %vm122_vm1, %v1223_v14 }
  0xbf   :  { %1394 = vmatprep.mubr.f32.mxu0 %v7776_v3 }
  0xc2   :  { %6061 = vmatmul.mubr.msk.f32.gmra.mrb[88].mxu0 %vm122_vm1, %v1224_v15 }
  0xc3   :  { %1400 = vmatprep.mubr.f32.mxu0 %v7776_v3 }
  0xc6   :  { %6062 = vmatmul.mubr.msk.f32.gmra.mrb[90].mxu0 %vm122_vm1, %v1225_v18 }
  0xc7   :  { %1406 = vmatprep.mubr.f32.mxu0 %v7776_v3 }
  0xca   :  { %6063 = vmatmul.mubr.msk.f32.gmra.mrb[92].mxu0 %vm122_vm1, %v1226_v19 }
  0xcb   :  { %1412 = vmatprep.mubr.f32.mxu0 %v7776_v3 }
  0xce   :  { %6064 = vmatmul.mubr.msk.f32.gmra.mrb[94].mxu0 %vm122_vm1, %v1227_v20 }
  0xcf   :  { %1418 = vmatprep.mubr.f32.mxu0 %v7776_v3 }
  0xd2   :  { %6065 = vmatmul.mubr.msk.f32.gmra.mrb[96].mxu0 %vm122_vm1, %v1228_v2  ;;  %v1767_v2 = vld [vmem:[%s9915_s0 + $0x1d0] sm:$0xff] }
  0xd3   :  { %1424 = vmatprep.mubr.f32.mxu0 %v7776_v3 }
  0xd6   :  { %6066 = vmatmul.mubr.msk.f32.gmra.mrb[98].mxu0 %vm122_vm1, %v1229_v5 }
  0xd7   :  { %1430 = vmatprep.mubr.f32.mxu0 %v7776_v3 }
  0xda   :  { %6067 = vmatmul.mubr.msk.f32.gmra.mrb[100].mxu0 %vm122_vm1, %v1230_v10 }
  0xdb   :  { %1436 = vmatprep.mubr.f32.mxu0 %v7776_v3 }
  0xde   :  { %6068 = vmatmul.mubr.msk.f32.gmra.mrb[102].mxu0 %vm122_vm1, %v1231_v13 }
  0xdf   :  { %1442 = vmatprep.mubr.f32.mxu0 %v7776_v3 }
  0xe2   :  { %6069 = vmatmul.mubr.msk.f32.gmra.mrb[104].mxu0 %vm122_vm1, %v1232_v17 }
  0xe3   :  { %1448 = vmatprep.mubr.f32.mxu0 %v7776_v3 }
  0xe5   :  { %v253_v28 = vpop.f32.mrb[0].mxu0 }
  0xe6   :  { %v254_v30 = vadd.f32 %v253_v28, %v8382_v24  ;;  %v255_v33 = vpop.f32.mrb[1].mxu0  ;;  %6070 = vmatmul.mubr.msk.f32.gmra.mrb[106].mxu0 %vm122_vm1, %v1233_v27  ;;  %v1768_v27 = vld [vmem:[%s9915_s0 + $0x1d8] sm:$0xff] }
  0xe7   :  { %v256_v34 = vadd.f32 %v255_v33, %v8386_v26  ;;  %1454 = vmatprep.mubr.f32.mxu0 %v7776_v3 }
  0xe8   :  { %v366_v43 = vmax.f32 %v254_v30, 0.0 }
  0xe9   :  { %v367_v38 = vmax.f32 %v256_v34, 0.0  ;;  %v259_v39 = vpop.f32.mrb[2].mxu0 }
  0xea   :  { %v260_v45 = vadd.f32 %v259_v39, %v8382_v24  ;;  %v261_v46 = vpop.f32.mrb[3].mxu0  ;;  %6071 = vmatmul.mubr.msk.f32.gmra.mrb[108].mxu0 %vm122_vm1, %v1234_v37  ;;  %v1769_v39 = vld [vmem:[%s9915_s0 + $0x1e0] sm:$0xff] }
  0xeb   :  { %v262_v4 = vadd.f32 %v261_v46, %v8386_v26  ;;  %5993 = vmatprep.mubr.msk.f32.mxu1 %vm410_vm5, %v367_v38  ;;  %1460 = vmatprep.mubr.f32.mxu0 %v7776_v3 }
  0xec   :  { %537 = vmatmul.mubr.f32.vlgmr.msra.gmra.mrb[0].mxu1 %v366_v43  ;;  %v368_v51 = vmax.f32 %v260_v45, 0.0 }
  0xed   :  { %v369_v49 = vmax.f32 %v262_v4, 0.0  ;;  %v265_v50 = vpop.f32.mrb[4].mxu0  ;;  %7273 = vmatpush1.bf16.msra.mxu1 %v7963_v31 }
  0xee   :  { %v266_v53 = vadd.f32 %v265_v50, %v8382_v24  ;;  %v267_v54 = vpop.f32.mrb[5].mxu0  ;;  %6072 = vmatmul.mubr.msk.f32.gmra.mrb[110].mxu0 %vm122_vm1, %v1235_v47  ;;  %7274 = vmatprep.subr.bf16.mxu1 %v7777_v32  ;;  %v1770_v50 = vld [vmem:[%s9915_s0 + $0x1e8] sm:$0xff] }
  0xef   :  { %v268_v55 = vadd.f32 %v267_v54, %v8386_v26  ;;  %5994 = vmatprep.mubr.msk.f32.mxu1 %vm410_vm5, %v369_v49  ;;  %1466 = vmatprep.mubr.f32.mxu0 %v7776_v3 }
  0xf0   :  { %542 = vmatmul.mubr.f32.gmra.mrb[2].mxu1 %v368_v51  ;;  %v370_v61 = vmax.f32 %v266_v53, 0.0 }
  0xf1   :  { %v371_v58 = vmax.f32 %v268_v55, 0.0  ;;  %v271_v59 = vpop.f32.mrb[6].mxu0  ;;  %7276 = vmatpush1.bf16.msra.mxu1 %v7979_v36 }
  0xf2   :  { %v272_v62 = vadd.f32 %v271_v59, %v8382_v24  ;;  %v273_v63 = vpop.f32.mrb[7].mxu0  ;;  %6073 = vmatmul.mubr.msk.f32.gmra.mrb[112].mxu0 %vm122_vm1, %v1236_v57  ;;  %7277 = vmatprep.subr.bf16.mxu1 %v7777_v32  ;;  %v1771_v59 = vld [vmem:[%s9915_s0 + $0x1f0] sm:$0xff] }
  0xf3   :  { %v274_v1 = vadd.f32 %v273_v63, %v8386_v26  ;;  %5995 = vmatprep.mubr.msk.f32.mxu1 %vm410_vm5, %v371_v58  ;;  %1906 = vmatprep.mubr.f32.mxu0 %v7776_v3 }
  0xf4   :  { %547 = vmatmul.mubr.f32.gmra.mrb[4].mxu1 %v370_v61  ;;  %v372_v15 = vmax.f32 %v272_v62, 0.0 }
  0xf5   :  { %v373_v9 = vmax.f32 %v274_v1, 0.0  ;;  %v277_v14 = vpop.f32.mrb[8].mxu0  ;;  %7279 = vmatpush1.bf16.msra.mxu1 %v7994_v40 }
  0xf6   :  { %v278_v18 = vadd.f32 %v277_v14, %v8382_v24  ;;  %v279_v19 = vpop.f32.mrb[9].mxu0  ;;  %6096 = vmatmul.mubr.msk.f32.vlgmr.msra.gmra.mrb[114].mxu0 %vm122_vm1, %v1766_v8  ;;  %7280 = vmatprep.subr.bf16.mxu1 %v7777_v32  ;;  %v1772_v14 = vld [vmem:[%s9915_s0 + $0x1f8] sm:$0xff] }
  0xf7   :  { %v280_v20 = vadd.f32 %v279_v19, %v8386_v26  ;;  %5996 = vmatprep.mubr.msk.f32.mxu1 %vm410_vm5, %v373_v9  ;;  %1912 = vmatprep.mubr.f32.mxu0 %v7776_v3 }
  0xf8   :  { %552 = vmatmul.mubr.f32.gmra.mrb[6].mxu1 %v372_v15  ;;  %7395 = vmatpush1.bf16.msra.mxu0 %v7963_v31  ;;  %v374_v10 = vmax.f32 %v278_v18, 0.0 }
  0xf9   :  { %v375_v5 = vmax.f32 %v280_v20, 0.0  ;;  %v283_v7 = vpop.f32.mrb[10].mxu0  ;;  %7282 = vmatpush1.bf16.msra.mxu1 %v8009_v44  ;;  %7396 = vmatprep.subr.bf16.mxu0 %v7777_v32 }
  0xfa   :  { %v284_v13 = vadd.f32 %v283_v7, %v8382_v24  ;;  %v285_v17 = vpop.f32.mrb[11].mxu0  ;;  %6097 = vmatmul.mubr.msk.f32.gmra.mrb[116].mxu0 %vm122_vm1, %v1767_v2  ;;  %7283 = vmatprep.subr.bf16.mxu1 %v7777_v32  ;;  %v1773_v7 = vld [vmem:[%s9915_s0 + $0x200] sm:$0xff] }
  0xfb   :  { %v286_v22 = vadd.f32 %v285_v17, %v8386_v26  ;;  %5997 = vmatprep.mubr.msk.f32.mxu1 %vm410_vm5, %v375_v5  ;;  %1918 = vmatprep.mubr.f32.mxu0 %v7776_v3 }
  0xfc   :  { %557 = vmatmul.mubr.f32.gmra.mrb[8].mxu1 %v374_v10  ;;  %7398 = vmatpush1.bf16.msra.mxu0 %v7979_v36  ;;  %v376_v33 = vmax.f32 %v284_v13, 0.0 }
  0xfd   :  { %v377_v28 = vmax.f32 %v286_v22, 0.0  ;;  %v289_v30 = vpop.f32.mrb[12].mxu0  ;;  %7285 = vmatpush1.bf16.msra.mxu1 %v8024_v48  ;;  %7399 = vmatprep.subr.bf16.mxu0 %v7777_v32 }
  0xfe   :  { %v290_v34 = vadd.f32 %v289_v30, %v8382_v24  ;;  %v291_v37 = vpop.f32.mrb[13].mxu0  ;;  %6098 = vmatmul.mubr.msk.f32.gmra.mrb[118].mxu0 %vm122_vm1, %v1768_v27  ;;  %7286 = vmatprep.subr.bf16.mxu1 %v7777_v32  ;;  %v1774_v30 = vld [vmem:[%s9915_s0 + $0x208] sm:$0xff] }
  0xff   :  { %v292_v38 = vadd.f32 %v291_v37, %v8386_v26  ;;  %5998 = vmatprep.mubr.msk.f32.mxu1 %vm410_vm5, %v377_v28  ;;  %1924 = vmatprep.mubr.f32.mxu0 %v7776_v3 }
 0x100   :  { %562 = vmatmul.mubr.f32.gmra.mrb[10].mxu1 %v376_v33  ;;  %7401 = vmatpush1.bf16.msra.mxu0 %v7994_v40  ;;  %v378_v46 = vmax.f32 %v290_v34, 0.0 }
 0x101   :  { %v379_v43 = vmax.f32 %v292_v38, 0.0  ;;  %v295_v45 = vpop.f32.mrb[14].mxu0  ;;  %7288 = vmatpush1.bf16.msra.mxu1 %v8039_v52  ;;  %7402 = vmatprep.subr.bf16.mxu0 %v7777_v32 }
 0x102   :  { %v296_v4 = vadd.f32 %v295_v45, %v8382_v24  ;;  %v297_v47 = vpop.f32.mrb[15].mxu0  ;;  %6099 = vmatmul.mubr.msk.f32.gmra.mrb[120].mxu0 %vm122_vm1, %v1769_v39  ;;  %7289 = vmatprep.subr.bf16.mxu1 %v7777_v32  ;;  %v1775_v45 = vld [vmem:[%s9915_s0 + $0x210] sm:$0xff] }
 0x103   :  { %v298_v49 = vadd.f32 %v297_v47, %v8386_v26  ;;  %5999 = vmatprep.mubr.msk.f32.mxu1 %vm410_vm5, %v379_v43  ;;  %1930 = vmatprep.mubr.f32.mxu0 %v7776_v3 }
 0x104   :  { %567 = vmatmul.mubr.f32.gmra.mrb[12].mxu1 %v378_v46  ;;  %7404 = vmatpush1.bf16.msra.mxu0 %v8009_v44  ;;  %v380_v54 = vmax.f32 %v296_v4, 0.0 }
 0x105   :  { %v381_v51 = vmax.f32 %v298_v49, 0.0  ;;  %v301_v53 = vpop.f32.mrb[16].mxu0  ;;  %7291 = vmatpush1.bf16.msra.mxu1 %v8054_v56  ;;  %7405 = vmatprep.subr.bf16.mxu0 %v7777_v32 }
 0x106   :  { %v302_v55 = vadd.f32 %v301_v53, %v8382_v24  ;;  %v303_v57 = vpop.f32.mrb[17].mxu0  ;;  %6100 = vmatmul.mubr.msk.f32.gmra.mrb[122].mxu0 %vm122_vm1, %v1770_v50  ;;  %7292 = vmatprep.subr.bf16.mxu1 %v7777_v32  ;;  %v1776_v53 = vld [vmem:[%s9915_s0 + $0x218] sm:$0xff] }
 0x107   :  { %v304_v58 = vadd.f32 %v303_v57, %v8386_v26  ;;  %6000 = vmatprep.mubr.msk.f32.mxu1 %vm410_vm5, %v381_v51  ;;  %1936 = vmatprep.mubr.f32.mxu0 %v7776_v3 }
 0x108   :  { %572 = vmatmul.mubr.f32.gmra.mrb[14].mxu1 %v380_v54  ;;  %7407 = vmatpush1.bf16.msra.mxu0 %v8024_v48  ;;  %v382_v63 = vmax.f32 %v302_v55, 0.0 }
 0x109   :  { %v383_v61 = vmax.f32 %v304_v58, 0.0  ;;  %v307_v62 = vpop.f32.mrb[18].mxu0  ;;  %7294 = vmatpush1.bf16.msra.mxu1 %v8069_v60  ;;  %7408 = vmatprep.subr.bf16.mxu0 %v7777_v32 }
 0x10a   :  { %v308_v1 = vadd.f32 %v307_v62, %v8382_v24  ;;  %v309_v8 = vpop.f32.mrb[19].mxu0  ;;  %6101 = vmatmul.mubr.msk.f32.gmra.mrb[124].mxu0 %vm122_vm1, %v1771_v59  ;;  %7295 = vmatprep.subr.bf16.mxu1 %v7777_v32  ;;  %v1777_v62 = vld [vmem:[%s9915_s0 + $0x220] sm:$0xff] }
 0x10b   :  { %v310_v9 = vadd.f32 %v309_v8, %v8386_v26  ;;  %6001 = vmatprep.mubr.msk.f32.mxu1 %vm410_vm5, %v383_v61  ;;  %1942 = vmatprep.mubr.f32.mxu0 %v7776_v3 }
 0x10c   :  { %577 = vmatmul.mubr.f32.gmra.mrb[16].mxu1 %v382_v63  ;;  %7410 = vmatpush1.bf16.msra.mxu0 %v8039_v52  ;;  %v384_v19 = vmax.f32 %v308_v1, 0.0 }
 0x10d   :  { %v385_v15 = vmax.f32 %v310_v9, 0.0  ;;  %v313_v18 = vpop.f32.mrb[20].mxu0  ;;  %7297 = vmatpush1.bf16.msra.mxu1 %v8084_v0  ;;  %7411 = vmatprep.subr.bf16.mxu0 %v7777_v32 }
 0x10e   :  { %v314_v20 = vadd.f32 %v313_v18, %v8382_v24  ;;  %v315_v2 = vpop.f32.mrb[21].mxu0  ;;  %6102 = vmatmul.mubr.msk.f32.gmra.mrb[126].mxu0 %vm122_vm1, %v1772_v14  ;;  %7298 = vmatprep.subr.bf16.mxu1 %v7777_v32  ;;  %v1778_v18 = vld [vmem:[%s9915_s0 + $0x228] sm:$0xff] }
 0x10f   :  { %v316_v5 = vadd.f32 %v315_v2, %v8386_v26  ;;  %6002 = vmatprep.mubr.msk.f32.mxu1 %vm410_vm5, %v385_v15  ;;  %1948 = vmatprep.mubr.f32.mxu0 %v7776_v3 }
 0x110   :  { %582 = vmatmul.mubr.f32.gmra.mrb[18].mxu1 %v384_v19  ;;  %7413 = vmatpush1.bf16.msra.mxu0 %v8054_v56  ;;  %v386_v17 = vmax.f32 %v314_v20, 0.0 }
 0x111   :  { %v387_v10 = vmax.f32 %v316_v5, 0.0  ;;  %v319_v13 = vpop.f32.mrb[22].mxu0  ;;  %7300 = vmatpush1.bf16.msra.mxu1 %v8099_v6  ;;  %7414 = vmatprep.subr.bf16.mxu0 %v7777_v32 }
 0x112   :  { %v320_v22 = vadd.f32 %v319_v13, %v8382_v24  ;;  %v321_v27 = vpop.f32.mrb[23].mxu0  ;;  %6103 = vmatmul.mubr.msk.f32.gmra.mrb[128].mxu0 %vm122_vm1, %v1773_v7  ;;  %7301 = vmatprep.subr.bf16.mxu1 %v7777_v32  ;;  %v1779_v13 = vld [vmem:[%s9915_s0 + $0x230] sm:$0xff] }
 0x113   :  { %v322_v28 = vadd.f32 %v321_v27, %v8386_v26  ;;  %6003 = vmatprep.mubr.msk.f32.mxu1 %vm410_vm5, %v387_v10  ;;  %1954 = vmatprep.mubr.f32.mxu0 %v7776_v3 }
 0x114   :  { %587 = vmatmul.mubr.f32.gmra.mrb[20].mxu1 %v386_v17  ;;  %7416 = vmatpush1.bf16.msra.mxu0 %v8069_v60  ;;  %v388_v37 = vmax.f32 %v320_v22, 0.0 }
 0x115   :  { %v389_v33 = vmax.f32 %v322_v28, 0.0  ;;  %v325_v34 = vpop.f32.mrb[24].mxu0  ;;  %7303 = vmatpush1.bf16.msra.mxu1 %v8114_v12  ;;  %7417 = vmatprep.subr.bf16.mxu0 %v7777_v32 }
 0x116   :  { %v326_v38 = vadd.f32 %v325_v34, %v8382_v24  ;;  %v327_v39 = vpop.f32.mrb[25].mxu0  ;;  %6104 = vmatmul.mubr.msk.f32.gmra.mrb[130].mxu0 %vm122_vm1, %v1774_v30  ;;  %7304 = vmatprep.subr.bf16.mxu1 %v7777_v32  ;;  %v1780_v34 = vld [vmem:[%s9915_s0 + $0x238] sm:$0xff] }
 0x117   :  { %v328_v43 = vadd.f32 %v327_v39, %v8386_v26  ;;  %6004 = vmatprep.mubr.msk.f32.mxu1 %vm410_vm5, %v389_v33  ;;  %1960 = vmatprep.mubr.f32.mxu0 %v7776_v3 }
 0x118   :  { %592 = vmatmul.mubr.f32.gmra.mrb[22].mxu1 %v388_v37  ;;  %7419 = vmatpush1.bf16.msra.mxu0 %v8084_v0  ;;  %v390_v47 = vmax.f32 %v326_v38, 0.0 }
 0x119   :  { %v391_v46 = vmax.f32 %v328_v43, 0.0  ;;  %v331_v4 = vpop.f32.mrb[26].mxu0  ;;  %7306 = vmatpush1.bf16.msra.mxu1 %v8129_v21  ;;  %7420 = vmatprep.subr.bf16.mxu0 %v7777_v32 }
 0x11a   :  { %v332_v49 = vadd.f32 %v331_v4, %v8382_v24  ;;  %v333_v50 = vpop.f32.mrb[27].mxu0  ;;  %6105 = vmatmul.mubr.msk.f32.gmra.mrb[132].mxu0 %vm122_vm1, %v1775_v45  ;;  %7307 = vmatprep.subr.bf16.mxu1 %v7777_v32  ;;  %v1781_v4 = vld [vmem:[%s9915_s0 + $0x240] sm:$0xff] }
 0x11b   :  { %v334_v51 = vadd.f32 %v333_v50, %v8386_v26  ;;  %6005 = vmatprep.mubr.msk.f32.mxu1 %vm410_vm5, %v391_v46  ;;  %1966 = vmatprep.mubr.f32.mxu0 %v7776_v3 }
 0x11c   :  { %597 = vmatmul.mubr.f32.gmra.mrb[24].mxu1 %v390_v47  ;;  %7422 = vmatpush1.bf16.msra.mxu0 %v8099_v6  ;;  %v392_v57 = vmax.f32 %v332_v49, 0.0 }
 0x11d   :  { %v393_v54 = vmax.f32 %v334_v51, 0.0  ;;  %v337_v55 = vpop.f32.mrb[28].mxu0  ;;  %7309 = vmatpush1.bf16.msra.mxu1 %v8144_v25  ;;  %7423 = vmatprep.subr.bf16.mxu0 %v7777_v32 }
 0x11e   :  { %v338_v58 = vadd.f32 %v337_v55, %v8382_v24  ;;  %v339_v59 = vpop.f32.mrb[29].mxu0  ;;  %6106 = vmatmul.mubr.msk.f32.gmra.mrb[134].mxu0 %vm122_vm1, %v1776_v53  ;;  %7310 = vmatprep.subr.bf16.mxu1 %v7777_v32  ;;  %v1782_v55 = vld [vmem:[%s9915_s0 + $0x248] sm:$0xff] }
 0x11f   :  { %v340_v61 = vadd.f32 %v339_v59, %v8386_v26  ;;  %6006 = vmatprep.mubr.msk.f32.mxu1 %vm410_vm5, %v393_v54  ;;  %1972 = vmatprep.mubr.f32.mxu0 %v7776_v3 }
 0x120   :  { %602 = vmatmul.mubr.f32.gmra.mrb[26].mxu1 %v392_v57  ;;  %7425 = vmatpush1.bf16.msra.mxu0 %v8114_v12  ;;  %v394_v8 = vmax.f32 %v338_v58, 0.0 }
 0x121   :  { %v395_v63 = vmax.f32 %v340_v61, 0.0  ;;  %v343_v1 = vpop.f32.mrb[30].mxu0  ;;  %7312 = vmatpush1.bf16.msra.mxu1 %v8160_v29  ;;  %7426 = vmatprep.subr.bf16.mxu0 %v7777_v32 }
 0x122   :  { %v344_v9 = vadd.f32 %v343_v1, %v8382_v24  ;;  %v345_v14 = vpop.f32.mrb[31].mxu0  ;;  %6107 = vmatmul.mubr.msk.f32.gmra.mrb[136].mxu0 %vm122_vm1, %v1777_v62  ;;  %7313 = vmatprep.subr.bf16.mxu1 %v7777_v32  ;;  %v1783_v1 = vld [vmem:[%s9915_s0 + $0x250] sm:$0xff] }
 0x123   :  { %v346_v15 = vadd.f32 %v345_v14, %v8386_v26  ;;  %6007 = vmatprep.mubr.msk.f32.mxu1 %vm410_vm5, %v395_v63  ;;  %1978 = vmatprep.mubr.f32.mxu0 %v7776_v3 }
 0x124   :  { %607 = vmatmul.mubr.f32.gmra.mrb[28].mxu1 %v394_v8  ;;  %7428 = vmatpush1.bf16.msra.mxu0 %v8129_v21  ;;  %v396_v2 = vmax.f32 %v344_v9, 0.0 }
 0x125   :  { %v397_v19 = vmax.f32 %v346_v15, 0.0  ;;  %v349_v20 = vpop.f32.mrb[32].mxu0  ;;  %7315 = vmatpush1.bf16.msra.mxu1 %v8177_v35  ;;  %7429 = vmatprep.subr.bf16.mxu0 %v7777_v32 }
 0x126   :  { %v350_v5 = vadd.f32 %v349_v20, %v8382_v24  ;;  %v351_v7 = vpop.f32.mrb[33].mxu0  ;;  %6108 = vmatmul.mubr.msk.f32.gmra.mrb[138].mxu0 %vm122_vm1, %v1778_v18  ;;  %7316 = vmatprep.subr.bf16.mxu1 %v7777_v32  ;;  %v1784_v20 = vld [vmem:[%s9915_s0 + $0x258] sm:$0xff] }
 0x127   :  { %v352_v10 = vadd.f32 %v351_v7, %v8386_v26  ;;  %6008 = vmatprep.mubr.msk.f32.mxu1 %vm410_vm5, %v397_v19  ;;  %1984 = vmatprep.mubr.f32.mxu0 %v7776_v3 }
 0x128   :  { %612 = vmatmul.mubr.f32.gmra.mrb[30].mxu1 %v396_v2  ;;  %7431 = vmatpush1.bf16.msra.mxu0 %v8144_v25  ;;  %v398_v27 = vmax.f32 %v350_v5, 0.0 }
 0x129   :  { %v399_v17 = vmax.f32 %v352_v10, 0.0  ;;  %v355_v22 = vpop.f32.mrb[34].mxu0  ;;  %7319 = vmatpush1.bf16.msk.msra.mxu1 %vm8198_vm4, %v8194_v41  ;;  %7432 = vmatprep.subr.bf16.mxu0 %v7777_v32 }
 0x12a   :  { %v356_v28 = vadd.f32 %v355_v22, %v8382_v24  ;;  %v357_v30 = vpop.f32.mrb[35].mxu0  ;;  %6109 = vmatmul.mubr.msk.f32.gmra.mrb[140].mxu0 %vm122_vm1, %v1779_v13  ;;  %7332 = vmatprep.subr.bf16.mxu1 %v7777_v32 }
 0x12b   :  { %v358_v33 = vadd.f32 %v357_v30, %v8386_v26  ;;  %6009 = vmatprep.mubr.msk.f32.mxu1 %vm410_vm5, %v399_v17  ;;  %1990 = vmatprep.mubr.f32.mxu0 %v7776_v3 }
 0x12c   :  { %617 = vmatmul.mubr.f32.gmra.mrb[32].mxu1 %v398_v27  ;;  %7434 = vmatpush1.bf16.msra.mxu0 %v8160_v29  ;;  %v400_v39 = vmax.f32 %v356_v28, 0.0 }
 0x12d   :  { %v401_v37 = vmax.f32 %v358_v33, 0.0  ;;  %v361_v38 = vpop.f32.mrb[36].mxu0  ;;  %7435 = vmatprep.subr.bf16.mxu0 %v7777_v32 }
 0x12e   :  { %v362_v43 = vadd.f32 %v361_v38, %v8382_v24  ;;  %v363_v45 = vpop.f32.mrb[37].mxu0  ;;  %6110 = vmatmul.mubr.msk.f32.gmra.mrb[142].mxu0 %vm122_vm1, %v1780_v34 }
 0x12f   :  { %v364_v46 = vadd.f32 %v363_v45, %v8386_v26  ;;  %6010 = vmatprep.mubr.msk.f32.mxu1 %vm410_vm5, %v401_v37  ;;  %1996 = vmatprep.mubr.f32.mxu0 %v7776_v3 }
 0x130   :  { %622 = vmatmul.mubr.f32.gmra.mrb[34].mxu1 %v400_v39  ;;  %7437 = vmatpush1.bf16.msra.mxu0 %v8177_v35  ;;  %v402_v50 = vmax.f32 %v362_v43, 0.0 }
 0x131   :  { %v403_v47 = vmax.f32 %v364_v46, 0.0  ;;  %v812_v49 = vpop.f32.mrb[38].mxu0  ;;  %7438 = vmatprep.subr.bf16.mxu0 %v7777_v32 }
 0x132   :  { %v813_v51 = vadd.f32 %v812_v49, %v8382_v24  ;;  %v814_v53 = vpop.f32.mrb[39].mxu0  ;;  %6111 = vmatmul.mubr.msk.f32.gmra.mrb[144].mxu0 %vm122_vm1, %v1781_v4 }
 0x133   :  { %v815_v54 = vadd.f32 %v814_v53, %v8386_v26  ;;  %6011 = vmatprep.mubr.msk.f32.mxu1 %vm410_vm5, %v403_v47  ;;  %2002 = vmatprep.mubr.f32.mxu0 %v7776_v3 }
 0x134   :  { %627 = vmatmul.mubr.f32.gmra.mrb[36].mxu1 %v402_v50  ;;  %7441 = vmatpush1.bf16.msk.msra.mxu0 %vm8198_vm4, %v8194_v41  ;;  %v925_v59 = vmax.f32 %v813_v51, 0.0 }
 0x135   :  { %v926_v57 = vmax.f32 %v815_v54, 0.0  ;;  %v818_v58 = vpop.f32.mrb[40].mxu0 }
 0x136   :  { %v819_v61 = vadd.f32 %v818_v58, %v8382_v24  ;;  %v820_v62 = vpop.f32.mrb[41].mxu0  ;;  %6112 = vmatmul.mubr.msk.f32.gmra.mrb[146].mxu0 %vm122_vm1, %v1782_v55  ;;  %v6135_v55 = vld [vmem:[%s9918_s5 + $0x60] sm:$0xff] }
 0x137   :  { %v821_v63 = vadd.f32 %v820_v62, %v8386_v26  ;;  %6034 = vmatprep.mubr.msk.f32.mxu1 %vm410_vm5, %v926_v57  ;;  %2008 = vmatprep.mubr.f32.mxu0 %v7776_v3  ;;  %v6136_v57 = vld [vmem:[%s9918_s5 + $0x68] sm:$0xff] }
 0x138   :  { %1085 = vmatmul.mubr.f32.vlgmr.msra.gmra.mrb[38].mxu1 %v925_v59  ;;  %v927_v14 = vmax.f32 %v819_v61, 0.0  ;;  %v8669_v62 = vpack.c.bf16 %v6136_v57, %v6135_v55 }
 0x139   :  { %v928_v8 = vmax.f32 %v821_v63, 0.0  ;;  %v824_v9 = vpop.f32.mrb[42].mxu0  ;;  %7334 = vmatpush1.bf16.msra.mxu1 %v7963_v31 }
 0x13a   :  { %v825_v15 = vadd.f32 %v824_v9, %v8382_v24  ;;  %v826_v18 = vpop.f32.mrb[43].mxu0  ;;  %6113 = vmatmul.mubr.msk.f32.gmra.mrb[148].mxu0 %vm122_vm1, %v1783_v1  ;;  %7335 = vmatprep.subr.bf16.mxu1 %v7777_v32 }
 0x13b   :  { %v827_v19 = vadd.f32 %v826_v18, %v8386_v26  ;;  %6035 = vmatprep.mubr.msk.f32.mxu1 %vm410_vm5, %v928_v8  ;;  %2014 = vmatprep.mubr.f32.mxu0 %v7776_v3 }
 0x13c   :  { %1090 = vmatmul.mubr.f32.gmra.mrb[40].mxu1 %v927_v14  ;;  %v929_v7 = vmax.f32 %v825_v15, 0.0  ;;  %7443 = vmatprep.subr.bf16.mxu0 %v8669_v62 }
 0x13d   :  { %v930_v2 = vmax.f32 %v827_v19, 0.0  ;;  %v830_v5 = vpop.f32.mrb[44].mxu0  ;;  %7337 = vmatpush1.bf16.msra.mxu1 %v7979_v36 }
 0x13e   :  { %v831_v10 = vadd.f32 %v830_v5, %v8382_v24  ;;  %v832_v13 = vpop.f32.mrb[45].mxu0  ;;  %6114 = vmatmul.mubr.msk.f32.gmra.mrb[150].mxu0 %vm122_vm1, %v1784_v20  ;;  %7338 = vmatprep.subr.bf16.mxu1 %v7777_v32 }
 0x13f   :  { %v833_v17 = vadd.f32 %v832_v13, %v8386_v26  ;;  %6036 = vmatprep.mubr.msk.f32.mxu1 %vm410_vm5, %v930_v2 }
 0x140   :  { %1095 = vmatmul.mubr.f32.gmra.mrb[42].mxu1 %v929_v7  ;;  %v931_v28 = vmax.f32 %v831_v10, 0.0 }
 0x141   :  { %v932_v22 = vmax.f32 %v833_v17, 0.0  ;;  %v836_v27 = vpop.f32.mrb[46].mxu0  ;;  %7340 = vmatpush1.bf16.msra.mxu1 %v7994_v40 }
 0x142   :  { %v837_v30 = vadd.f32 %v836_v27, %v8382_v24  ;;  %v838_v33 = vpop.f32.mrb[47].mxu0  ;;  %7341 = vmatprep.subr.bf16.mxu1 %v7777_v32 }
 0x143   :  { %v839_v34 = vadd.f32 %v838_v33, %v8386_v26  ;;  %6037 = vmatprep.mubr.msk.f32.mxu1 %vm410_vm5, %v932_v22 }
 0x144   :  { %1100 = vmatmul.mubr.f32.gmra.mrb[44].mxu1 %v931_v28  ;;  %v933_v39 = vmax.f32 %v837_v30, 0.0 }
 0x145   :  { %v934_v37 = vmax.f32 %v839_v34, 0.0  ;;  %v842_v38 = vpop.f32.mrb[48].mxu0  ;;  %7343 = vmatpush1.bf16.msra.mxu1 %v8009_v44 }
 0x146   :  { %v843_v43 = vadd.f32 %v842_v38, %v8382_v24  ;;  %v844_v45 = vpop.f32.mrb[49].mxu0  ;;  %7344 = vmatprep.subr.bf16.mxu1 %v7777_v32 }
 0x147   :  { %v845_v46 = vadd.f32 %v844_v45, %v8386_v26  ;;  %6038 = vmatprep.mubr.msk.f32.mxu1 %vm410_vm5, %v934_v37 }
 0x148   :  { %1105 = vmatmul.mubr.f32.gmra.mrb[46].mxu1 %v933_v39  ;;  %v935_v47 = vmax.f32 %v843_v43, 0.0 }
 0x149   :  { %v936_v3 = vmax.f32 %v845_v46, 0.0  ;;  %v848_v4 = vpop.f32.mrb[50].mxu0  ;;  %7346 = vmatpush1.bf16.msra.mxu1 %v8024_v48 }
 0x14a   :  { %v849_v49 = vadd.f32 %v848_v4, %v8382_v24  ;;  %v850_v50 = vpop.f32.mrb[51].mxu0  ;;  %7347 = vmatprep.subr.bf16.mxu1 %v7777_v32 }
 0x14b   :  { %v851_v51 = vadd.f32 %v850_v50, %v8386_v26  ;;  %6039 = vmatprep.mubr.msk.f32.mxu1 %vm410_vm5, %v936_v3 }
 0x14c   :  { %1110 = vmatmul.mubr.f32.gmra.mrb[48].mxu1 %v935_v47  ;;  %v937_v58 = vmax.f32 %v849_v49, 0.0 }
 0x14d   :  { %v938_v53 = vmax.f32 %v851_v51, 0.0  ;;  %v854_v54 = vpop.f32.mrb[52].mxu0  ;;  %7349 = vmatpush1.bf16.msra.mxu1 %v8039_v52 }
 0x14e   :  { %v855_v59 = vadd.f32 %v854_v54, %v8382_v24  ;;  %v856_v61 = vpop.f32.mrb[53].mxu0  ;;  %7350 = vmatprep.subr.bf16.mxu1 %v7777_v32 }
 0x14f   :  { %v857_v63 = vadd.f32 %v856_v61, %v8386_v26  ;;  %6040 = vmatprep.mubr.msk.f32.mxu1 %vm410_vm5, %v938_v53 }
 0x150   :  { %1115 = vmatmul.mubr.f32.gmra.mrb[50].mxu1 %v937_v58  ;;  %v939_v9 = vmax.f32 %v855_v59, 0.0 }
 0x151   :  { %v940_v1 = vmax.f32 %v857_v63, 0.0  ;;  %v860_v8 = vpop.f32.mrb[54].mxu0  ;;  %7352 = vmatpush1.bf16.msra.mxu1 %v8054_v56 }
 0x152   :  { %v861_v14 = vadd.f32 %v860_v8, %v8382_v24  ;;  %v862_v15 = vpop.f32.mrb[55].mxu0  ;;  %7353 = vmatprep.subr.bf16.mxu1 %v7777_v32 }
 0x153   :  { %v863_v18 = vadd.f32 %v862_v15, %v8386_v26  ;;  %6041 = vmatprep.mubr.msk.f32.mxu1 %vm410_vm5, %v940_v1 }
 0x154   :  { %1120 = vmatmul.mubr.f32.gmra.mrb[52].mxu1 %v939_v9  ;;  %v941_v2 = vmax.f32 %v861_v14, 0.0 }
 0x155   :  { %v942_v19 = vmax.f32 %v863_v18, 0.0  ;;  %v866_v20 = vpop.f32.mrb[56].mxu0  ;;  %7355 = vmatpush1.bf16.msra.mxu1 %v8069_v60 }
 0x156   :  { %v867_v5 = vadd.f32 %v866_v20, %v8382_v24  ;;  %v868_v7 = vpop.f32.mrb[57].mxu0  ;;  %7356 = vmatprep.subr.bf16.mxu1 %v7777_v32 }
 0x157   :  { %v869_v10 = vadd.f32 %v868_v7, %v8386_v26  ;;  %6042 = vmatprep.mubr.msk.f32.mxu1 %vm410_vm5, %v942_v19 }
 0x158   :  { %1125 = vmatmul.mubr.f32.gmra.mrb[54].mxu1 %v941_v2  ;;  %v943_v22 = vmax.f32 %v867_v5, 0.0 }
 0x159   :  { %v944_v13 = vmax.f32 %v869_v10, 0.0  ;;  %v872_v17 = vpop.f32.mrb[58].mxu0  ;;  %7358 = vmatpush1.bf16.msra.mxu1 %v8084_v0 }
 0x15a   :  { %v873_v27 = vadd.f32 %v872_v17, %v8382_v24  ;;  %v874_v28 = vpop.f32.mrb[59].mxu0  ;;  %7359 = vmatprep.subr.bf16.mxu1 %v7777_v32 }
 0x15b   :  { %v875_v30 = vadd.f32 %v874_v28, %v8386_v26  ;;  %6043 = vmatprep.mubr.msk.f32.mxu1 %vm410_vm5, %v944_v13 }
 0x15c   :  { %1130 = vmatmul.mubr.f32.gmra.mrb[56].mxu1 %v943_v22  ;;  %v945_v37 = vmax.f32 %v873_v27, 0.0 }
 0x15d   :  { %v946_v33 = vmax.f32 %v875_v30, 0.0  ;;  %v878_v34 = vpop.f32.mrb[60].mxu0  ;;  %7361 = vmatpush1.bf16.msra.mxu1 %v8099_v6 }
 0x15e   :  { %v879_v38 = vadd.f32 %v878_v34, %v8382_v24  ;;  %v880_v39 = vpop.f32.mrb[61].mxu0  ;;  %7362 = vmatprep.subr.bf16.mxu1 %v7777_v32 }
 0x15f   :  { %v881_v43 = vadd.f32 %v880_v39, %v8386_v26  ;;  %6044 = vmatprep.mubr.msk.f32.mxu1 %vm410_vm5, %v946_v33 }
 0x160   :  { %1135 = vmatmul.mubr.f32.gmra.mrb[58].mxu1 %v945_v37  ;;  %v947_v3 = vmax.f32 %v879_v38, 0.0 }
 0x161   :  { %v948_v45 = vmax.f32 %v881_v43, 0.0  ;;  %v884_v46 = vpop.f32.mrb[62].mxu0  ;;  %7364 = vmatpush1.bf16.msra.mxu1 %v8114_v12 }
 0x162   :  { %v885_v4 = vadd.f32 %v884_v46, %v8382_v24  ;;  %v886_v47 = vpop.f32.mrb[63].mxu0  ;;  %7365 = vmatprep.subr.bf16.mxu1 %v7777_v32 }
 0x163   :  { %v887_v49 = vadd.f32 %v886_v47, %v8386_v26  ;;  %6045 = vmatprep.mubr.msk.f32.mxu1 %vm410_vm5, %v948_v45 }
 0x164   :  { %1140 = vmatmul.mubr.f32.gmra.mrb[60].mxu1 %v947_v3  ;;  %v949_v53 = vmax.f32 %v885_v4, 0.0 }
 0x165   :  { %v950_v50 = vmax.f32 %v887_v49, 0.0  ;;  %v890_v51 = vpop.f32.mrb[64].mxu0  ;;  %7367 = vmatpush1.bf16.msra.mxu1 %v8129_v21 }
 0x166   :  { %v891_v54 = vadd.f32 %v890_v51, %v8382_v24  ;;  %v892_v55 = vpop.f32.mrb[65].mxu0  ;;  %7368 = vmatprep.subr.bf16.mxu1 %v7777_v32 }
 0x167   :  { %v893_v57 = vadd.f32 %v892_v55, %v8386_v26  ;;  %6046 = vmatprep.mubr.msk.f32.mxu1 %vm410_vm5, %v950_v50 }
 0x168   :  { %1145 = vmatmul.mubr.f32.gmra.mrb[62].mxu1 %v949_v53  ;;  %v951_v61 = vmax.f32 %v891_v54, 0.0 }
 0x169   :  { %v952_v58 = vmax.f32 %v893_v57, 0.0  ;;  %v896_v59 = vpop.f32.mrb[66].mxu0  ;;  %7370 = vmatpush1.bf16.msra.mxu1 %v8144_v25 }
 0x16a   :  { %v897_v63 = vadd.f32 %v896_v59, %v8382_v24  ;;  %v898_v1 = vpop.f32.mrb[67].mxu0  ;;  %7371 = vmatprep.subr.bf16.mxu1 %v7777_v32 }
 0x16b   :  { %v899_v8 = vadd.f32 %v898_v1, %v8386_v26  ;;  %6047 = vmatprep.mubr.msk.f32.mxu1 %vm410_vm5, %v952_v58 }
 0x16c   :  { %1150 = vmatmul.mubr.f32.gmra.mrb[64].mxu1 %v951_v61  ;;  %v953_v15 = vmax.f32 %v897_v63, 0.0 }
 0x16d   :  { %v954_v9 = vmax.f32 %v899_v8, 0.0  ;;  %v902_v14 = vpop.f32.mrb[68].mxu0  ;;  %7373 = vmatpush1.bf16.msra.mxu1 %v8160_v29 }
 0x16e   :  { %v903_v18 = vadd.f32 %v902_v14, %v8382_v24  ;;  %v904_v19 = vpop.f32.mrb[69].mxu0  ;;  %7374 = vmatprep.subr.bf16.mxu1 %v7777_v32 }
 0x16f   :  { %v905_v20 = vadd.f32 %v904_v19, %v8386_v26  ;;  %6048 = vmatprep.mubr.msk.f32.mxu1 %vm410_vm5, %v954_v9 }
 0x170   :  { %1155 = vmatmul.mubr.f32.gmra.mrb[66].mxu1 %v953_v15  ;;  %v955_v7 = vmax.f32 %v903_v18, 0.0 }
 0x171   :  { %v956_v2 = vmax.f32 %v905_v20, 0.0  ;;  %v908_v5 = vpop.f32.mrb[70].mxu0  ;;  %7376 = vmatpush1.bf16.msra.mxu1 %v8177_v35 }
 0x172   :  { %v909_v10 = vadd.f32 %v908_v5, %v8382_v24  ;;  %v910_v13 = vpop.f32.mrb[71].mxu0  ;;  %7377 = vmatprep.subr.bf16.mxu1 %v7777_v32 }
 0x173   :  { %v911_v17 = vadd.f32 %v910_v13, %v8386_v26  ;;  %6049 = vmatprep.mubr.msk.f32.mxu1 %vm410_vm5, %v956_v2 }
 0x174   :  { %1160 = vmatmul.mubr.f32.gmra.mrb[68].mxu1 %v955_v7  ;;  %v957_v28 = vmax.f32 %v909_v10, 0.0 }
 0x175   :  { %v958_v22 = vmax.f32 %v911_v17, 0.0  ;;  %v914_v27 = vpop.f32.mrb[72].mxu0  ;;  %7380 = vmatpush1.bf16.msk.msra.mxu1 %vm8198_vm4, %v8194_v41 }
 0x176   :  { %v915_v30 = vadd.f32 %v914_v27, %v8382_v24  ;;  %v916_v33 = vpop.f32.mrb[73].mxu0  ;;  %7586 = vmatprep.subr.bf16.mxu1 %v7777_v32 }
 0x177   :  { %v917_v34 = vadd.f32 %v916_v33, %v8386_v26  ;;  %6050 = vmatprep.mubr.msk.f32.mxu1 %vm410_vm5, %v958_v22 }
 0x178   :  { %1165 = vmatmul.mubr.f32.gmra.mrb[70].mxu1 %v957_v28  ;;  %v959_v39 = vmax.f32 %v915_v30, 0.0 }
 0x179   :  { %v960_v37 = vmax.f32 %v917_v34, 0.0  ;;  %v920_v38 = vpop.f32.mrb[74].mxu0 }
 0x17a   :  { %v921_v43 = vadd.f32 %v920_v38, %v8382_v24  ;;  %v922_v45 = vpop.f32.mrb[75].mxu0 }
 0x17b   :  { %v923_v46 = vadd.f32 %v922_v45, %v8386_v26  ;;  %6051 = vmatprep.mubr.msk.f32.mxu1 %vm410_vm5, %v960_v37 }
 0x17c   :  { %1170 = vmatmul.mubr.f32.gmra.mrb[72].mxu1 %v959_v39  ;;  %v961_v47 = vmax.f32 %v921_v43, 0.0 }
 0x17d   :  { %v962_v3 = vmax.f32 %v923_v46, 0.0  ;;  %v1360_v4 = vpop.f32.mrb[76].mxu0 }
 0x17e   :  { %v1361_v49 = vadd.f32 %v1360_v4, %v8382_v24  ;;  %v1362_v50 = vpop.f32.mrb[77].mxu0 }
 0x17f   :  { %v1363_v51 = vadd.f32 %v1362_v50, %v8386_v26  ;;  %6052 = vmatprep.mubr.msk.f32.mxu1 %vm410_vm5, %v962_v3 }
 0x180   :  { %1175 = vmatmul.mubr.f32.gmra.mrb[74].mxu1 %v961_v47  ;;  %v1473_v55 = vmax.f32 %v1361_v49, 0.0 }
 0x181   :  { %v1474_v53 = vmax.f32 %v1363_v51, 0.0  ;;  %v1366_v54 = vpop.f32.mrb[78].mxu0 }
 0x182   :  { %v1367_v57 = vadd.f32 %v1366_v54, %v8382_v24  ;;  %v1368_v58 = vpop.f32.mrb[79].mxu0 }
 0x183   :  { %v1369_v59 = vadd.f32 %v1368_v58, %v8386_v26  ;;  %6075 = vmatprep.mubr.msk.f32.mxu1 %vm410_vm5, %v1474_v53 }
 0x184   :  { %1633 = vmatmul.mubr.f32.vlgmr.msra.gmra.mrb[76].mxu1 %v1473_v55  ;;  %v1475_v1 = vmax.f32 %v1367_v57, 0.0 }
 0x185   :  { %v1476_v61 = vmax.f32 %v1369_v59, 0.0  ;;  %v1372_v63 = vpop.f32.mrb[80].mxu0  ;;  %7602 = vmatpush1.bf16.msra.mxu1 %v7963_v31 }
 0x186   :  { %v1373_v8 = vadd.f32 %v1372_v63, %v8382_v24  ;;  %v1374_v9 = vpop.f32.mrb[81].mxu0  ;;  %7587 = vmatprep.subr.bf16.mxu1 %v7777_v32 }
 0x187   :  { %v1375_v14 = vadd.f32 %v1374_v9, %v8386_v26  ;;  %6076 = vmatprep.mubr.msk.f32.mxu1 %vm410_vm5, %v1476_v61 }
 0x188   :  { %1638 = vmatmul.mubr.f32.gmra.mrb[78].mxu1 %v1475_v1  ;;  %v1477_v19 = vmax.f32 %v1373_v8, 0.0 }
 0x189   :  { %v1478_v15 = vmax.f32 %v1375_v14, 0.0  ;;  %v1378_v18 = vpop.f32.mrb[82].mxu0  ;;  %7603 = vmatpush1.bf16.msra.mxu1 %v7979_v36 }
 0x18a   :  { %v1379_v20 = vadd.f32 %v1378_v18, %v8382_v24  ;;  %v1380_v2 = vpop.f32.mrb[83].mxu0  ;;  %7588 = vmatprep.subr.bf16.mxu1 %v7777_v32 }
 0x18b   :  { %v1381_v31 = vadd.f32 %v1380_v2, %v8386_v26  ;;  %6077 = vmatprep.mubr.msk.f32.mxu1 %vm410_vm5, %v1478_v15 }
 0x18c   :  { %1643 = vmatmul.mubr.f32.gmra.mrb[80].mxu1 %v1477_v19  ;;  %v1479_v10 = vmax.f32 %v1379_v20, 0.0 }
 0x18d   :  { %v1480_v5 = vmax.f32 %v1381_v31, 0.0  ;;  %v1384_v7 = vpop.f32.mrb[84].mxu0  ;;  %7604 = vmatpush1.bf16.msra.mxu1 %v7994_v40 }
 0x18e   :  { %v1385_v13 = vadd.f32 %v1384_v7, %v8382_v24  ;;  %v1386_v17 = vpop.f32.mrb[85].mxu0  ;;  %7589 = vmatprep.subr.bf16.mxu1 %v7777_v32 }
 0x18f   :  { %v1387_v36 = vadd.f32 %v1386_v17, %v8386_v26  ;;  %6078 = vmatprep.mubr.msk.f32.mxu1 %vm410_vm5, %v1480_v5 }
 0x190   :  { %1648 = vmatmul.mubr.f32.gmra.mrb[82].mxu1 %v1479_v10  ;;  %v1481_v28 = vmax.f32 %v1385_v13, 0.0 }
 0x191   :  { %v1482_v22 = vmax.f32 %v1387_v36, 0.0  ;;  %v1390_v27 = vpop.f32.mrb[86].mxu0  ;;  %7605 = vmatpush1.bf16.msra.mxu1 %v8009_v44 }
 0x192   :  { %v1391_v30 = vadd.f32 %v1390_v27, %v8382_v24  ;;  %v1392_v33 = vpop.f32.mrb[87].mxu0  ;;  %7590 = vmatprep.subr.bf16.mxu1 %v7777_v32 }
 0x193   :  { %v1393_v40 = vadd.f32 %v1392_v33, %v8386_v26  ;;  %6079 = vmatprep.mubr.msk.f32.mxu1 %vm410_vm5, %v1482_v22 }
 0x194   :  { %1653 = vmatmul.mubr.f32.gmra.mrb[84].mxu1 %v1481_v28  ;;  %v1483_v38 = vmax.f32 %v1391_v30, 0.0 }
 0x195   :  { %v1484_v34 = vmax.f32 %v1393_v40, 0.0  ;;  %v1396_v37 = vpop.f32.mrb[88].mxu0  ;;  %7606 = vmatpush1.bf16.msra.mxu1 %v8024_v48 }
 0x196   :  { %v1397_v39 = vadd.f32 %v1396_v37, %v8382_v24  ;;  %v1398_v43 = vpop.f32.mrb[89].mxu0  ;;  %7591 = vmatprep.subr.bf16.mxu1 %v7777_v32 }
 0x197   :  { %v1399_v44 = vadd.f32 %v1398_v43, %v8386_v26  ;;  %6080 = vmatprep.mubr.msk.f32.mxu1 %vm410_vm5, %v1484_v34 }
 0x198   :  { %1658 = vmatmul.mubr.f32.gmra.mrb[86].mxu1 %v1483_v38  ;;  %v1485_v3 = vmax.f32 %v1397_v39, 0.0 }
 0x199   :  { %v1486_v45 = vmax.f32 %v1399_v44, 0.0  ;;  %v1402_v46 = vpop.f32.mrb[90].mxu0  ;;  %7607 = vmatpush1.bf16.msra.mxu1 %v8039_v52 }
 0x19a   :  { %v1403_v4 = vadd.f32 %v1402_v46, %v8382_v24  ;;  %v1404_v47 = vpop.f32.mrb[91].mxu0  ;;  %7592 = vmatprep.subr.bf16.mxu1 %v7777_v32 }
 0x19b   :  { %v1405_v48 = vadd.f32 %v1404_v47, %v8386_v26  ;;  %6081 = vmatprep.mubr.msk.f32.mxu1 %vm410_vm5, %v1486_v45 }
 0x19c   :  { %1663 = vmatmul.mubr.f32.gmra.mrb[88].mxu1 %v1485_v3  ;;  %v1487_v51 = vmax.f32 %v1403_v4, 0.0  ;;  %v8808_v4 = vld [vmem:[%s9919_s4] ss:$0 sm:$0xff] }
 0x19d   :  { %v1488_v49 = vmax.f32 %v1405_v48, 0.0  ;;  %v1408_v50 = vpop.f32.mrb[92].mxu0  ;;  %7608 = vmatpush1.bf16.msra.mxu1 %v8054_v56 }
 0x19e   :  { %v1409_v53 = vadd.f32 %v1408_v50, %v8382_v24  ;;  %v1410_v54 = vpop.f32.mrb[93].mxu0  ;;  %7593 = vmatprep.subr.bf16.mxu1 %v7777_v32 }
 0x19f   :  { %v1411_v52 = vadd.f32 %v1410_v54, %v8386_v26  ;;  %6082 = vmatprep.mubr.msk.f32.mxu1 %vm410_vm5, %v1488_v49 }
 0x1a0   :  { %1668 = vmatmul.mubr.f32.gmra.mrb[90].mxu1 %v1487_v51  ;;  %v1489_v58 = vmax.f32 %v1409_v53, 0.0 }
 0x1a1   :  { %v1490_v55 = vmax.f32 %v1411_v52, 0.0  ;;  %v1414_v57 = vpop.f32.mrb[94].mxu0  ;;  %7609 = vmatpush1.bf16.msra.mxu1 %v8069_v60 }
 0x1a2   :  { %v1415_v59 = vadd.f32 %v1414_v57, %v8382_v24  ;;  %v1416_v61 = vpop.f32.mrb[95].mxu0  ;;  %7594 = vmatprep.subr.bf16.mxu1 %v7777_v32 }
 0x1a3   :  { %v1417_v56 = vadd.f32 %v1416_v61, %v8386_v26  ;;  %6083 = vmatprep.mubr.msk.f32.mxu1 %vm410_vm5, %v1490_v55 }
 0x1a4   :  { %1673 = vmatmul.mubr.f32.gmra.mrb[92].mxu1 %v1489_v58  ;;  %v1491_v8 = vmax.f32 %v1415_v59, 0.0 }
 0x1a5   :  { %v1492_v63 = vmax.f32 %v1417_v56, 0.0  ;;  %v1420_v1 = vpop.f32.mrb[96].mxu0  ;;  %7610 = vmatpush1.bf16.msra.mxu1 %v8084_v0 }
 0x1a6   :  { %v1421_v9 = vadd.f32 %v1420_v1, %v8382_v24  ;;  %v1422_v14 = vpop.f32.mrb[97].mxu0  ;;  %7595 = vmatprep.subr.bf16.mxu1 %v7777_v32 }
 0x1a7   :  { %v1423_v60 = vadd.f32 %v1422_v14, %v8386_v26  ;;  %6084 = vmatprep.mubr.msk.f32.mxu1 %vm410_vm5, %v1492_v63 }
 0x1a8   :  { %1678 = vmatmul.mubr.f32.gmra.mrb[94].mxu1 %v1491_v8  ;;  %v1493_v19 = vmax.f32 %v1421_v9, 0.0 }
 0x1a9   :  { %v1494_v15 = vmax.f32 %v1423_v60, 0.0  ;;  %v1426_v18 = vpop.f32.mrb[98].mxu0  ;;  %7611 = vmatpush1.bf16.msra.mxu1 %v8099_v6 }
 0x1aa   :  { %v1427_v20 = vadd.f32 %v1426_v18, %v8382_v24  ;;  %v1428_v2 = vpop.f32.mrb[99].mxu0  ;;  %7596 = vmatprep.subr.bf16.mxu1 %v7777_v32 }
 0x1ab   :  { %v1429_v0 = vadd.f32 %v1428_v2, %v8386_v26  ;;  %6085 = vmatprep.mubr.msk.f32.mxu1 %vm410_vm5, %v1494_v15 }
 0x1ac   :  { %1683 = vmatmul.mubr.f32.gmra.mrb[96].mxu1 %v1493_v19  ;;  %v1495_v7 = vmax.f32 %v1427_v20, 0.0 }
 0x1ad   :  { %v1496_v31 = vmax.f32 %v1429_v0, 0.0  ;;  %v1432_v5 = vpop.f32.mrb[100].mxu0  ;;  %7612 = vmatpush1.bf16.msra.mxu1 %v8114_v12 }
 0x1ae   :  { %v1433_v10 = vadd.f32 %v1432_v5, %v8382_v24  ;;  %v1434_v13 = vpop.f32.mrb[101].mxu0  ;;  %7597 = vmatprep.subr.bf16.mxu1 %v7777_v32 }
 0x1af   :  { %v1435_v6 = vadd.f32 %v1434_v13, %v8386_v26  ;;  %6086 = vmatprep.mubr.msk.f32.mxu1 %vm410_vm5, %v1496_v31  ;;  %v6137_v13 = vld [vmem:[%s9918_s5 + $0x70] sm:$0xff] }
 0x1b0   :  { %1688 = vmatmul.mubr.f32.gmra.mrb[98].mxu1 %v1495_v7  ;;  %v1497_v22 = vmax.f32 %v1433_v10, 0.0 }
 0x1b1   :  { %v1498_v17 = vmax.f32 %v1435_v6, 0.0  ;;  %v1438_v36 = vpop.f32.mrb[102].mxu0  ;;  %7613 = vmatpush1.bf16.msra.mxu1 %v8129_v21  ;;  %v6138_v6 = vld [vmem:[%s9918_s5 + $0x78] sm:$0xff] }
 0x1b2   :  { %v1439_v27 = vadd.f32 %v1438_v36, %v8382_v24  ;;  %v1440_v28 = vpop.f32.mrb[103].mxu0  ;;  %7598 = vmatprep.subr.bf16.mxu1 %v7777_v32 }
 0x1b3   :  { %v1441_v12 = vadd.f32 %v1440_v28, %v8386_v26  ;;  %6087 = vmatprep.mubr.msk.f32.mxu1 %vm410_vm5, %v1498_v17 }
 0x1b4   :  { %1693 = vmatmul.mubr.f32.gmra.mrb[100].mxu1 %v1497_v22  ;;  %v1499_v40 = vmax.f32 %v1439_v27, 0.0 }
 0x1b5   :  { %v1500_v30 = vmax.f32 %v1441_v12, 0.0  ;;  %v1444_v33 = vpop.f32.mrb[104].mxu0  ;;  %7614 = vmatpush1.bf16.msra.mxu1 %v8144_v25 }
 0x1b6   :  { %v1445_v34 = vadd.f32 %v1444_v33, %v8382_v24  ;;  %v1446_v37 = vpop.f32.mrb[105].mxu0  ;;  %7599 = vmatprep.subr.bf16.mxu1 %v7777_v32 }
 0x1b7   :  { %v1447_v21 = vadd.f32 %v1446_v37, %v8386_v26  ;;  %6088 = vmatprep.mubr.msk.f32.mxu1 %vm410_vm5, %v1500_v30 }
 0x1b8   :  { %1698 = vmatmul.mubr.f32.gmra.mrb[102].mxu1 %v1499_v40  ;;  %v1501_v43 = vmax.f32 %v1445_v34, 0.0  ;;  %v8842_v40 = vpack.c.bf16 %v6138_v6, %v6137_v13 }
 0x1b9   :  { %v1502_v38 = vmax.f32 %v1447_v21, 0.0  ;;  %v1450_v39 = vpop.f32.mrb[106].mxu0  ;;  %7615 = vmatpush1.bf16.msra.mxu1 %v8160_v29  ;;  %v6139_v21 = vld [vmem:[%s9918_s5 + $0x80] sm:$0xff] }
 0x1ba   :  { %v1451_v44 = vadd.f32 %v1450_v39, %v8382_v24  ;;  %v1452_v45 = vpop.f32.mrb[107].mxu0  ;;  %7600 = vmatprep.subr.bf16.mxu1 %v7777_v32 }
 0x1bb   :  { %v1453_v25 = vadd.f32 %v1452_v45, %v8386_v26  ;;  %6089 = vmatprep.mubr.msk.f32.mxu1 %vm410_vm5, %v1502_v38  ;;  %v6140_v38 = vld [vmem:[%s9918_s5 + $0x88] sm:$0xff] }
 0x1bc   :  { %1703 = vmatmul.mubr.f32.gmra.mrb[104].mxu1 %v1501_v43  ;;  %v1503_v29 = vmax.f32 %v1451_v44, 0.0 }
 0x1bd   :  { %v1504_v46 = vmax.f32 %v1453_v25, 0.0  ;;  %v1456_v3 = vpop.f32.mrb[108].mxu0  ;;  %7616 = vmatpush1.bf16.msra.mxu1 %v8177_v35 }
 0x1be   :  { %v1457_v47 = vadd.f32 %v1456_v3, %v8382_v24  ;;  %v1458_v48 = vpop.f32.mrb[109].mxu0  ;;  %7601 = vmatprep.subr.bf16.mxu1 %v7777_v32 }
 0x1bf   :  { %v1459_v49 = vadd.f32 %v1458_v48, %v8386_v26  ;;  %v538_v50 = vpop.f32.mrb[0].mxu1  ;;  %6090 = vmatprep.mubr.msk.f32.mxu1 %vm410_vm5, %v1504_v46 }
 0x1c0   :  { %v539_v51 = vadd.f32 %v8808_v4, %v538_v50  ;;  %v540_v53 = vpop.f32.mrb[1].mxu1  ;;  %1708 = vmatmul.mubr.f32.gmra.mrb[106].mxu1 %v1503_v29  ;;  %v1505_v35 = vmax.f32 %v1457_v47, 0.0  ;;  %v8857_v47 = vpack.c.bf16 %v6140_v38, %v6139_v21  ;;  %v6141_v50 = vld [vmem:[%s9918_s5 + $0x90] sm:$0xff] }
 0x1c1   :  { %v1506_v54 = vmax.f32 %v1459_v49, 0.0  ;;  %v1462_v52 = vpop.f32.mrb[110].mxu0  ;;  %7617 = vmatpush1.bf16.msk.msra.mxu1 %vm8198_vm4, %v8194_v41 }
 0x1c2   :  { %v632_v55 = vmax.f32 %v539_v51, 0.0  ;;  %v1463_v57 = vadd.f32 %v1462_v52, %v8382_v24  ;;  %v1464_v32 = vpop.f32.mrb[111].mxu0  ;;  %7515 = vmatprep.subr.bf16.mxu1 %v8669_v62  ;;  %v6142_v51 = vld [vmem:[%s9918_s5 + $0x98] sm:$0xff] }
 0x1c3   :  { %v1465_v58 = vadd.f32 %v1464_v32, %v8386_v26  ;;  %v543_v59 = vpop.f32.mrb[2].mxu1  ;;  %6091 = vmatprep.mubr.msk.f32.mxu1 %vm410_vm5, %v1506_v54 }
 0x1c4   :  { %651 = vst.msk [vmem:[#allocation2] sm:$0xff] %vm89_vm6, %v632_v55  ;;  %v544_v61 = vadd.f32 %v8808_v4, %v543_v59  ;;  %v545_v56 = vpop.f32.mrb[3].mxu1  ;;  %1713 = vmatmul.mubr.f32.gmra.mrb[108].mxu1 %v1505_v35  ;;  %v1507_v63 = vmax.f32 %v1463_v57, 0.0  ;;  %v8872_v59 = vpack.c.bf16 %v6142_v51, %v6141_v50 }
 0x1c5   :  { %v1508_v42 = vmax.f32 %v1465_v58, 0.0  ;;  %v1468_v41 = vpop.f32.mrb[112].mxu0 }
 0x1c6   :  { %v633_v1 = vmax.f32 %v544_v61, 0.0  ;;  %v1469_v8 = vadd.f32 %v1468_v41, %v8382_v24  ;;  %v1470_v9 = vpop.f32.mrb[113].mxu0  ;;  %v6144_v41 = vld [vmem:[%s9918_s5 + $0xa8] sm:$0xff] }
 0x1c7   :  { %v1471_v14 = vadd.f32 %v1470_v9, %v8386_v26  ;;  %v548_v60 = vpop.f32.mrb[4].mxu1  ;;  %6092 = vmatprep.mubr.msk.f32.mxu1 %vm410_vm5, %v1508_v42  ;;  %v6143_v42 = vld [vmem:[%s9918_s5 + $0xa0] sm:$0xff] }
 0x1c8   :  { %652 = vst.msk [vmem:[#allocation2 + $0x8] sm:$0xff] %vm89_vm6, %v633_v1  ;;  %v549_v15 = vadd.f32 %v8808_v4, %v548_v60  ;;  %v550_v18 = vpop.f32.mrb[5].mxu1  ;;  %1718 = vmatmul.mubr.f32.gmra.mrb[110].mxu1 %v1507_v63  ;;  %v1509_v2 = vmax.f32 %v1469_v8, 0.0 }
 0x1c9   :  { %v1510_v19 = vmax.f32 %v1471_v14, 0.0  ;;  %v1908_v20 = vpop.f32.mrb[114].mxu0 }
 0x1ca   :  { %v634_v0 = vmax.f32 %v549_v15, 0.0  ;;  %v1909_v31 = vadd.f32 %v1908_v20, %v8382_v24  ;;  %v1910_v5 = vpop.f32.mrb[115].mxu0 }
 0x1cb   :  { %v1911_v7 = vadd.f32 %v1910_v5, %v8386_v26  ;;  %v553_v10 = vpop.f32.mrb[6].mxu1  ;;  %6093 = vmatprep.mubr.msk.f32.mxu1 %vm410_vm5, %v1510_v19  ;;  %v8887_v19 = vpack.c.bf16 %v6144_v41, %v6143_v42  ;;  %v2433_v42 = vld [vmem:[%s9918_s5 + $0x20] sm:$0xff]  ;;  %v2434_v41 = vld [vmem:[%s9918_s5 + $0x28] sm:$0xff] }
 0x1cc   :  { %653 = vst.msk [vmem:[#allocation2 + $0x10] sm:$0xff] %vm89_vm6, %v634_v0  ;;  %v554_v17 = vadd.f32 %v8808_v4, %v553_v10  ;;  %v555_v36 = vpop.f32.mrb[7].mxu1  ;;  %1723 = vmatmul.mubr.f32.gmra.mrb[112].mxu1 %v1509_v2  ;;  %v2021_v28 = vmax.f32 %v1909_v31, 0.0  ;;  %v6145_v0 = vld [vmem:[%s9918_s5 + $0xb0] sm:$0xff]  ;;  %v6146_v31 = vld [vmem:[%s9918_s5 + $0xb8] sm:$0xff] }
 0x1cd   :  { %v2022_v22 = vmax.f32 %v1911_v7, 0.0  ;;  %v1914_v27 = vpop.f32.mrb[116].mxu0 }
 0x1ce   :  { %v635_v12 = vmax.f32 %v554_v17, 0.0  ;;  %v1915_v30 = vadd.f32 %v1914_v27, %v8382_v24  ;;  %v1916_v33 = vpop.f32.mrb[117].mxu0  ;;  %v8902_v27 = vpack.c.bf16 %v6146_v31, %v6145_v0 }
 0x1cf   :  { %v1917_v34 = vadd.f32 %v1916_v33, %v8386_v26  ;;  %v558_v37 = vpop.f32.mrb[8].mxu1  ;;  %6116 = vmatprep.mubr.msk.f32.mxu0 %vm410_vm5, %v2022_v22  ;;  %v2430_v33 = vld [vmem:[%s9918_s5 + $0x8] sm:$0xff] }
 0x1d0   :  { %654 = vst.msk [vmem:[#allocation2 + $0x18] sm:$0xff] %vm89_vm6, %v635_v12  ;;  %v559_v39 = vadd.f32 %v8808_v4, %v558_v37  ;;  %v560_v43 = vpop.f32.mrb[9].mxu1  ;;  %2181 = vmatmul.mubr.f32.vlgmr.msra.gmra.mrb[152].mxu0 %v2021_v28  ;;  %v2023_v25 = vmax.f32 %v1915_v30, 0.0  ;;  %v2429_v30 = vld [vmem:[%s9918_s5] sm:$0xff] }
 0x1d1   :  { %v2024_v44 = vmax.f32 %v1917_v34, 0.0  ;;  %v1920_v45 = vpop.f32.mrb[118].mxu0  ;;  %7445 = vmatpush3.bf16.msra.mxu0 %v8669_v62  ;;  %v2441_v51 = vld [vmem:[#allocation2 + $0x1] sm:$0xff] }
 0x1d2   :  { %v636_v46 = vmax.f32 %v559_v39, 0.0  ;;  %v1921_v3 = vadd.f32 %v1920_v45, %v8382_v24  ;;  %v1922_v29 = vpop.f32.mrb[119].mxu0  ;;  %7447 = vmatprep.subr.bf16.mxu0 %v8842_v40 }
 0x1d3   :  { %v1923_v48 = vadd.f32 %v1922_v29, %v8386_v26  ;;  %v563_v49 = vpop.f32.mrb[10].mxu1  ;;  %6117 = vmatprep.mubr.msk.f32.mxu0 %vm410_vm5, %v2024_v44  ;;  %v2431_v29 = vld [vmem:[%s9918_s5 + $0x10] sm:$0xff] }
 0x1d4   :  { %655 = vst.msk [vmem:[#allocation2 + $0x20] sm:$0xff] %vm89_vm6, %v636_v46  ;;  %v564_v53 = vadd.f32 %v8808_v4, %v563_v49  ;;  %v565_v54 = vpop.f32.mrb[11].mxu1  ;;  %2186 = vmatmul.mubr.f32.gmra.mrb[154].mxu0 %v2023_v25  ;;  %v2025_v55 = vmax.f32 %v1921_v3, 0.0  ;;  %v8917_v25 = vpack.c.bf16 %v2430_v33, %v2429_v30 }
 0x1d5   :  { %v2026_v52 = vmax.f32 %v1923_v48, 0.0  ;;  %v1926_v35 = vpop.f32.mrb[120].mxu0  ;;  %7449 = vmatpush3.bf16.msra.mxu0 %v8842_v40  ;;  %v2432_v48 = vld [vmem:[%s9918_s5 + $0x18] sm:$0xff] }
 0x1d6   :  { %v637_v57 = vmax.f32 %v564_v53, 0.0  ;;  %v1927_v32 = vadd.f32 %v1926_v35, %v8382_v24  ;;  %v1928_v58 = vpop.f32.mrb[121].mxu0  ;;  %7451 = vmatprep.subr.bf16.mxu0 %v8857_v47 }
 0x1d7   :  { %v1929_v61 = vadd.f32 %v1928_v58, %v8386_v26  ;;  %v568_v56 = vpop.f32.mrb[12].mxu1  ;;  %6118 = vmatprep.mubr.msk.f32.mxu0 %vm410_vm5, %v2026_v52 }
 0x1d8   :  { %656 = vst.msk [vmem:[#allocation2 + $0x28] sm:$0xff] %vm89_vm6, %v637_v57  ;;  %v569_v63 = vadd.f32 %v8808_v4, %v568_v56  ;;  %v570_v1 = vpop.f32.mrb[13].mxu1  ;;  %2191 = vmatmul.mubr.f32.gmra.mrb[156].mxu0 %v2025_v55  ;;  %v2027_v14 = vmax.f32 %v1927_v32, 0.0  ;;  %v8933_v32 = vpack.c.bf16 %v2432_v48, %v2431_v29  ;;  %v2442_v56 = vld [vmem:[#allocation2 + $0x9] sm:$0xff] }
 0x1d9   :  { %v2028_v8 = vmax.f32 %v1929_v61, 0.0  ;;  %v1932_v9 = vpop.f32.mrb[122].mxu0  ;;  %7453 = vmatpush3.bf16.msra.mxu0 %v8857_v47 }
 0x1da   :  { %v638_v60 = vmax.f32 %v569_v63, 0.0  ;;  %v1933_v15 = vadd.f32 %v1932_v9, %v8382_v24  ;;  %v1934_v18 = vpop.f32.mrb[123].mxu0  ;;  %7455 = vmatprep.subr.bf16.mxu0 %v8872_v59 }
 0x1db   :  { %v1935_v20 = vadd.f32 %v1934_v18, %v8386_v26  ;;  %v573_v2 = vpop.f32.mrb[14].mxu1  ;;  %6119 = vmatprep.mubr.msk.f32.mxu0 %vm410_vm5, %v2028_v8  ;;  %v2443_v8 = vld [vmem:[#allocation2 + $0x11] sm:$0xff] }
 0x1dc   :  { %657 = vst.msk [vmem:[#allocation2 + $0x30] sm:$0xff] %vm89_vm6, %v638_v60  ;;  %v574_v5 = vadd.f32 %v8808_v4, %v573_v2  ;;  %v575_v7 = vpop.f32.mrb[15].mxu1  ;;  %2196 = vmatmul.mubr.f32.gmra.mrb[158].mxu0 %v2027_v14  ;;  %v2029_v6 = vmax.f32 %v1933_v15, 0.0  ;;  %v8950_v2 = vpack.c.bf16 %v2434_v41, %v2433_v42 }
 0x1dd   :  { %v2030_v10 = vmax.f32 %v1935_v20, 0.0  ;;  %v1938_v13 = vpop.f32.mrb[124].mxu0  ;;  %7457 = vmatpush3.bf16.msra.mxu0 %v8872_v59  ;;  %v2435_v7 = vld [vmem:[%s9918_s5 + $0x30] sm:$0xff] }
 0x1de   :  { %v639_v17 = vmax.f32 %v574_v5, 0.0  ;;  %v1939_v36 = vadd.f32 %v1938_v13, %v8382_v24  ;;  %v1940_v22 = vpop.f32.mrb[125].mxu0  ;;  %7459 = vmatprep.subr.bf16.mxu0 %v8887_v19  ;;  %v2444_v5 = vld [vmem:[#allocation2 + $0x19] sm:$0xff] }
 0x1df   :  { %v1941_v28 = vadd.f32 %v1940_v22, %v8386_v26  ;;  %v578_v12 = vpop.f32.mrb[16].mxu1  ;;  %6120 = vmatprep.mubr.msk.f32.mxu0 %vm410_vm5, %v2030_v10  ;;  %v2436_v10 = vld [vmem:[%s9918_s5 + $0x38] sm:$0xff] }
 0x1e0   :  { %658 = vst.msk [vmem:[#allocation2 + $0x38] sm:$0xff] %vm89_vm6, %v639_v17  ;;  %v579_v34 = vadd.f32 %v8808_v4, %v578_v12  ;;  %v580_v37 = vpop.f32.mrb[17].mxu1  ;;  %2201 = vmatmul.mubr.f32.gmra.mrb[160].mxu0 %v2029_v6  ;;  %v2031_v39 = vmax.f32 %v1939_v36, 0.0  ;;  %v2445_v6 = vld [vmem:[#allocation2 + $0x21] sm:$0xff]  ;;  %v8969_v33 = vpack.c.bf16 %v2436_v10, %v2435_v7 }
 0x1e1   :  { %v2032_v21 = vmax.f32 %v1941_v28, 0.0  ;;  %v1944_v38 = vpop.f32.mrb[126].mxu0  ;;  %7461 = vmatpush3.bf16.msra.mxu0 %v8887_v19 }
 0x1e2   :  { %v640_v43 = vmax.f32 %v579_v34, 0.0  ;;  %v1945_v44 = vadd.f32 %v1944_v38, %v8382_v24  ;;  %v1946_v45 = vpop.f32.mrb[127].mxu0  ;;  %7463 = vmatprep.subr.bf16.mxu0 %v8902_v27  ;;  %v2437_v38 = vld [vmem:[%s9918_s5 + $0x40] sm:$0xff] }
 0x1e3   :  { %v1947_v46 = vadd.f32 %v1946_v45, %v8386_v26  ;;  %v583_v3 = vpop.f32.mrb[18].mxu1  ;;  %6121 = vmatprep.mubr.msk.f32.mxu0 %vm410_vm5, %v2032_v21  ;;  %v2446_v21 = vld [vmem:[#allocation2 + $0x29] sm:$0xff] }
 0x1e4   :  { %659 = vst.msk [vmem:[#allocation2 + $0x40] sm:$0xff] %vm89_vm6, %v640_v43  ;;  %v584_v49 = vadd.f32 %v8808_v4, %v583_v3  ;;  %v585_v50 = vpop.f32.mrb[19].mxu1  ;;  %2206 = vmatmul.mubr.f32.gmra.mrb[162].mxu0 %v2031_v39  ;;  %v2033_v52 = vmax.f32 %v1945_v44, 0.0  ;;  %v2438_v39 = vld [vmem:[%s9918_s5 + $0x48] sm:$0xff] }
 0x1e5   :  { %v2034_v53 = vmax.f32 %v1947_v46, 0.0  ;;  %v1950_v54 = vpop.f32.mrb[128].mxu0  ;;  %7465 = vmatpush3.bf16.msra.mxu0 %v8902_v27  ;;  %6736 = vmatprep.mubr.msk.f32.mxu0 %vm89_vm6, %v2441_v51  ;;  %v8988_v50 = vpack.c.bf16 %v2438_v39, %v2437_v38 }
 0x1e6   :  { %v641_v35 = vmax.f32 %v584_v49, 0.0  ;;  %v1951_v55 = vadd.f32 %v1950_v54, %v8382_v24  ;;  %v1952_v57 = vpop.f32.mrb[129].mxu0  ;;  %7467 = vmatprep.subr.bf16.mxu0 %v8917_v25 }
 0x1e7   :  { %v1953_v58 = vadd.f32 %v1952_v57, %v8386_v26  ;;  %v588_v61 = vpop.f32.mrb[20].mxu1  ;;  %6122 = vmatprep.mubr.msk.f32.mxu1 %vm410_vm5, %v2034_v53  ;;  %v2447_v44 = vld [vmem:[#allocation2 + $0x31] sm:$0xff] }
 0x1e8   :  { %660 = vst.msk [vmem:[#allocation2 + $0x48] sm:$0xff] %vm89_vm6, %v641_v35  ;;  %v589_v63 = vadd.f32 %v8808_v4, %v588_v61  ;;  %v590_v1 = vpop.f32.mrb[21].mxu1  ;;  %2211 = vmatmul.mubr.f32.vlgmr.msra.gmra.mrb[114].mxu1 %v2033_v52  ;;  %6737 = vmatmul.mubr.msk.f32.vlgmr.msra.gmra.mrb[164].mxu0 %vm89_vm6, %v2442_v56  ;;  %v2035_v60 = vmax.f32 %v1951_v55, 0.0  ;;  %v2439_v52 = vld [vmem:[%s9918_s5 + $0x50] sm:$0xff]  ;;  %v2440_v35 = vld [vmem:[%s9918_s5 + $0x58] sm:$0xff] }
 0x1e9   :  { %v2036_v9 = vmax.f32 %v1953_v58, 0.0  ;;  %v1956_v14 = vpop.f32.mrb[130].mxu0  ;;  %6739 = vmatprep.mubr.msk.f32.mxu0 %vm89_vm6, %v2443_v8  ;;  %7469 = vmatpush3.bf16.msra.mxu0 %v8917_v25  ;;  %v9007_v1 = vpack.c.bf16 %v2440_v35, %v2439_v52 }
 0x1ea   :  { %v642_v15 = vmax.f32 %v589_v63, 0.0  ;;  %v1957_v18 = vadd.f32 %v1956_v14, %v8382_v24  ;;  %v1958_v20 = vpop.f32.mrb[131].mxu0  ;;  %7471 = vmatprep.subr.bf16.mxu0 %v8933_v32  ;;  %7517 = vmatpush3.bf16.msra.mxu1 %v8669_v62 }
 0x1eb   :  { %v1959_v0 = vadd.f32 %v1958_v20, %v8386_v26  ;;  %v593_v31 = vpop.f32.mrb[22].mxu1  ;;  %6123 = vmatprep.mubr.msk.f32.mxu1 %vm410_vm5, %v2036_v9  ;;  %7519 = vmatprep.subr.bf16.mxu1 %v8842_v40  ;;  %v2448_v54 = vld [vmem:[#allocation2 + $0x39] sm:$0xff] }
 0x1ec   :  { %661 = vst.msk [vmem:[#allocation2 + $0x50] sm:$0xff] %vm89_vm6, %v642_v15  ;;  %v594_v62 = vadd.f32 %v8808_v4, %v593_v31  ;;  %v595_v13 = vpop.f32.mrb[23].mxu1  ;;  %2216 = vmatmul.mubr.f32.gmra.mrb[116].mxu1 %v2035_v60  ;;  %6740 = vmatmul.mubr.msk.f32.gmra.mrb[166].mxu0 %vm89_vm6, %v2444_v5  ;;  %v2037_v22 = vmax.f32 %v1957_v18, 0.0 }
 0x1ed   :  { %v2038_v17 = vmax.f32 %v1959_v0, 0.0  ;;  %v1962_v36 = vpop.f32.mrb[132].mxu0  ;;  %6742 = vmatprep.mubr.msk.f32.mxu0 %vm89_vm6, %v2445_v6  ;;  %7473 = vmatpush3.bf16.msra.mxu0 %v8933_v32 }
 0x1ee   :  { %v643_v28 = vmax.f32 %v594_v62, 0.0  ;;  %v1963_v12 = vadd.f32 %v1962_v36, %v8382_v24  ;;  %v1964_v30 = vpop.f32.mrb[133].mxu0  ;;  %7475 = vmatprep.subr.bf16.mxu0 %v8950_v2  ;;  %7521 = vmatpush3.bf16.msra.mxu1 %v8842_v40 }
 0x1ef   :  { %v1965_v34 = vadd.f32 %v1964_v30, %v8386_v26  ;;  %v598_v37 = vpop.f32.mrb[24].mxu1  ;;  %6124 = vmatprep.mubr.msk.f32.mxu1 %vm410_vm5, %v2038_v17  ;;  %7523 = vmatprep.subr.bf16.mxu1 %v8857_v47  ;;  %v2449_v57 = vld [vmem:[#allocation2 + $0x41] sm:$0xff] }
 0x1f0   :  { %662 = vst.msk [vmem:[#allocation2 + $0x58] sm:$0xff] %vm89_vm6, %v643_v28  ;;  %v599_v40 = vadd.f32 %v8808_v4, %v598_v37  ;;  %v600_v43 = vpop.f32.mrb[25].mxu1  ;;  %2221 = vmatmul.mubr.f32.gmra.mrb[118].mxu1 %v2037_v22  ;;  %6743 = vmatmul.mubr.msk.f32.gmra.mrb[168].mxu0 %vm89_vm6, %v2446_v21  ;;  %v2039_v3 = vmax.f32 %v1963_v12, 0.0 }
 0x1f1   :  { %v2040_v45 = vmax.f32 %v1965_v34, 0.0  ;;  %v1968_v46 = vpop.f32.mrb[134].mxu0  ;;  %6745 = vmatprep.mubr.msk.f32.mxu0 %vm89_vm6, %v2447_v44  ;;  %7477 = vmatpush3.bf16.msra.mxu0 %v8950_v2 }
 0x1f2   :  { %v644_v29 = vmax.f32 %v599_v40, 0.0  ;;  %v1969_v48 = vadd.f32 %v1968_v46, %v8382_v24  ;;  %v1970_v49 = vpop.f32.mrb[135].mxu0  ;;  %7479 = vmatprep.subr.bf16.mxu0 %v8969_v33  ;;  %7525 = vmatpush3.bf16.msra.mxu1 %v8857_v47 }
 0x1f3   :  { %v1971_v51 = vadd.f32 %v1970_v49, %v8386_v26  ;;  %v603_v53 = vpop.f32.mrb[26].mxu1  ;;  %6125 = vmatprep.mubr.msk.f32.mxu1 %vm410_vm5, %v2040_v45  ;;  %7527 = vmatprep.subr.bf16.mxu1 %v8872_v59  ;;  %v2450_v14 = vld [vmem:[#allocation2 + $0x49] sm:$0xff] }
 0x1f4   :  { %663 = vst.msk [vmem:[#allocation2 + $0x60] sm:$0xff] %vm89_vm6, %v644_v29  ;;  %v604_v47 = vadd.f32 %v8808_v4, %v603_v53  ;;  %v605_v55 = vpop.f32.mrb[27].mxu1  ;;  %2226 = vmatmul.mubr.f32.gmra.mrb[120].mxu1 %v2039_v3  ;;  %6746 = vmatmul.mubr.msk.f32.gmra.mrb[170].mxu0 %vm89_vm6, %v2448_v54  ;;  %v2041_v56 = vmax.f32 %v1969_v48, 0.0 }
 0x1f5   :  { %v2042_v58 = vmax.f32 %v1971_v51, 0.0  ;;  %v1974_v61 = vpop.f32.mrb[136].mxu0  ;;  %6748 = vmatprep.mubr.msk.f32.mxu0 %vm89_vm6, %v2449_v57  ;;  %7481 = vmatpush3.bf16.msra.mxu0 %v8969_v33 }
 0x1f6   :  { %v645_v42 = vmax.f32 %v604_v47, 0.0  ;;  %v1975_v41 = vadd.f32 %v1974_v61, %v8382_v24  ;;  %v1976_v63 = vpop.f32.mrb[137].mxu0  ;;  %7483 = vmatprep.subr.bf16.mxu0 %v8988_v50  ;;  %7529 = vmatpush3.bf16.msra.mxu1 %v8872_v59 }
 0x1f7   :  { %v1977_v8 = vadd.f32 %v1976_v63, %v8386_v26  ;;  %v608_v9 = vpop.f32.mrb[28].mxu1  ;;  %6126 = vmatprep.mubr.msk.f32.mxu1 %vm410_vm5, %v2042_v58  ;;  %v2451_v60 = vld [vmem:[#allocation2 + $0x51] sm:$0xff]  ;;  %7531 = vmatprep.subr.bf16.mxu1 %v8887_v19 }
 0x1f8   :  { %664 = vst.msk [vmem:[#allocation2 + $0x68] sm:$0xff] %vm89_vm6, %v645_v42  ;;  %v609_v15 = vadd.f32 %v8808_v4, %v608_v9  ;;  %v610_v18 = vpop.f32.mrb[29].mxu1  ;;  %2231 = vmatmul.mubr.f32.gmra.mrb[122].mxu1 %v2041_v56  ;;  %6749 = vmatmul.mubr.msk.f32.gmra.mrb[172].mxu0 %vm89_vm6, %v2450_v14  ;;  %v2043_v59 = vmax.f32 %v1975_v41, 0.0 }
 0x1f9   :  { %v2044_v20 = vmax.f32 %v1977_v8, 0.0  ;;  %v1980_v0 = vpop.f32.mrb[138].mxu0  ;;  %6751 = vmatprep.mubr.msk.f32.mxu0 %vm89_vm6, %v2451_v60  ;;  %7485 = vmatpush3.bf16.msra.mxu0 %v8988_v50 }
 0x1fa   :  { %v646_v31 = vmax.f32 %v609_v15, 0.0  ;;  %v1981_v5 = vadd.f32 %v1980_v0, %v8382_v24  ;;  %v1982_v7 = vpop.f32.mrb[139].mxu0  ;;  %7487 = vmatprep.subr.bf16.mxu0 %v9007_v1  ;;  %7533 = vmatpush3.bf16.msra.mxu1 %v8887_v19 }
 0x1fb   :  { %v1983_v10 = vadd.f32 %v1982_v7, %v8386_v26  ;;  %v613_v62 = vpop.f32.mrb[30].mxu1  ;;  %6127 = vmatprep.mubr.msk.f32.mxu1 %vm410_vm5, %v2044_v20  ;;  %v2452_v13 = vld [vmem:[#allocation2 + $0x59] sm:$0xff]  ;;  %7535 = vmatprep.subr.bf16.mxu1 %v8902_v27 }
 0x1fc   :  { %665 = vst.msk [vmem:[#allocation2 + $0x70] sm:$0xff] %vm89_vm6, %v646_v31  ;;  %v614_v6 = vadd.f32 %v8808_v4, %v613_v62  ;;  %v615_v17 = vpop.f32.mrb[31].mxu1  ;;  %2236 = vmatmul.mubr.f32.gmra.mrb[124].mxu1 %v2043_v59  ;;  %6752 = vmatmul.mubr.msk.f32.gmra.mrb[174].mxu0 %vm89_vm6, %v2452_v13  ;;  %v2045_v19 = vmax.f32 %v1981_v5, 0.0 }
 0x1fd   :  { %v2046_v36 = vmax.f32 %v1983_v10, 0.0  ;;  %v1986_v22 = vpop.f32.mrb[140].mxu0  ;;  %7489 = vmatpush3.bf16.msra.mxu0 %v9007_v1 }
 0x1fe   :  { %v647_v28 = vmax.f32 %v614_v6, 0.0  ;;  %v1987_v12 = vadd.f32 %v1986_v22, %v8382_v24  ;;  %v1988_v30 = vpop.f32.mrb[141].mxu0  ;;  %7537 = vmatpush3.bf16.msra.mxu1 %v8902_v27 }
 0x1ff   :  { %v1989_v34 = vadd.f32 %v1988_v30, %v8386_v26  ;;  %v618_v37 = vpop.f32.mrb[32].mxu1  ;;  %6128 = vmatprep.mubr.msk.f32.mxu1 %vm410_vm5, %v2046_v36  ;;  %v2453_v21 = vld [vmem:[#allocation2 + $0x61] sm:$0xff]  ;;  %7539 = vmatprep.subr.bf16.mxu1 %v8917_v25 }
 0x200   :  { %666 = vst.msk [vmem:[#allocation2 + $0x78] sm:$0xff] %vm89_vm6, %v647_v28  ;;  %v619_v38 = vadd.f32 %v8808_v4, %v618_v37  ;;  %v620_v39 = vpop.f32.mrb[33].mxu1  ;;  %2241 = vmatmul.mubr.f32.gmra.mrb[126].mxu1 %v2045_v19  ;;  %6754 = vmatprep.mubr.msk.f32.mxu0 %vm89_vm6, %v2453_v21  ;;  %v2047_v44 = vmax.f32 %v1987_v12, 0.0 }
 0x201   :  { %v2048_v40 = vmax.f32 %v1989_v34, 0.0  ;;  %v1992_v43 = vpop.f32.mrb[142].mxu0 }
 0x202   :  { %v648_v27 = vmax.f32 %v619_v38, 0.0  ;;  %v1993_v45 = vadd.f32 %v1992_v43, %v8382_v24  ;;  %v1994_v46 = vpop.f32.mrb[143].mxu0 }
 0x203   :  { %v1995_v3 = vadd.f32 %v1994_v46, %v8386_v26  ;;  %v623_v29 = vpop.f32.mrb[34].mxu1  ;;  %6129 = vmatprep.mubr.msk.f32.mxu1 %vm410_vm5, %v2048_v40  ;;  %v2454_v48 = vld [vmem:[#allocation2 + $0x69] sm:$0xff] }
 0x204   :  { %667 = vst.msk [vmem:[#allocation2 + $0x80] sm:$0xff] %vm89_vm6, %v648_v27  ;;  %v624_v49 = vadd.f32 %v8808_v4, %v623_v29  ;;  %v625_v51 = vpop.f32.mrb[35].mxu1  ;;  %2246 = vmatmul.mubr.f32.gmra.mrb[128].mxu1 %v2047_v44  ;;  %6755 = vmatmul.mubr.msk.f32.gmra.mrb[176].mxu0 %vm89_vm6, %v2454_v48  ;;  %v2049_v52 = vmax.f32 %v1993_v45, 0.0 }
 0x205   :  { %v2050_v53 = vmax.f32 %v1995_v3, 0.0  ;;  %v1998_v54 = vpop.f32.mrb[144].mxu0 }
 0x206   :  { %v649_v35 = vmax.f32 %v624_v49, 0.0  ;;  %v1999_v47 = vadd.f32 %v1998_v54, %v8382_v24  ;;  %v2000_v55 = vpop.f32.mrb[145].mxu0 }
 0x207   :  { %v2001_v57 = vadd.f32 %v2000_v55, %v8386_v26  ;;  %v628_v58 = vpop.f32.mrb[36].mxu1  ;;  %6130 = vmatprep.mubr.msk.f32.mxu1 %vm410_vm5, %v2050_v53  ;;  %v2455_v61 = vld [vmem:[#allocation2 + $0x71] sm:$0xff] }
 0x208   :  { %668 = vst.msk [vmem:[#allocation2 + $0x88] sm:$0xff] %vm89_vm6, %v649_v35  ;;  %v629_v56 = vadd.f32 %v8808_v4, %v628_v58  ;;  %v630_v42 = vpop.f32.mrb[37].mxu1  ;;  %2251 = vmatmul.mubr.f32.gmra.mrb[130].mxu1 %v2049_v52  ;;  %6757 = vmatprep.mubr.msk.f32.mxu0 %vm89_vm6, %v2455_v61  ;;  %v2051_v8 = vmax.f32 %v1999_v47, 0.0 }
 0x209   :  { %v2052_v41 = vmax.f32 %v2001_v57, 0.0  ;;  %v2004_v63 = vpop.f32.mrb[146].mxu0 }
 0x20a   :  { %v650_v9 = vmax.f32 %v629_v56, 0.0  ;;  %v2005_v14 = vadd.f32 %v2004_v63, %v8382_v24  ;;  %v2006_v60 = vpop.f32.mrb[147].mxu0 }
 0x20b   :  { %v2007_v15 = vadd.f32 %v2006_v60, %v8386_v26  ;;  %v1086_v18 = vpop.f32.mrb[38].mxu1  ;;  %6131 = vmatprep.mubr.msk.f32.mxu1 %vm410_vm5, %v2052_v41  ;;  %v2456_v20 = vld [vmem:[#allocation2 + $0x79] sm:$0xff] }
 0x20c   :  { %669 = vst.msk [vmem:[#allocation2 + $0x90] sm:$0xff] %vm89_vm6, %v650_v9  ;;  %v1087_v0 = vadd.f32 %v8808_v4, %v1086_v18  ;;  %v1088_v59 = vpop.f32.mrb[39].mxu1  ;;  %2256 = vmatmul.mubr.f32.gmra.mrb[132].mxu1 %v2051_v8  ;;  %6758 = vmatmul.mubr.msk.f32.gmra.mrb[178].mxu0 %vm89_vm6, %v2456_v20  ;;  %v2053_v7 = vmax.f32 %v2005_v14, 0.0 }
 0x20d   :  { %v2054_v31 = vmax.f32 %v2007_v15, 0.0  ;;  %v2010_v5 = vpop.f32.mrb[148].mxu0 }
 0x20e   :  { %v1180_v10 = vmax.f32 %v1087_v0, 0.0  ;;  %v2011_v62 = vadd.f32 %v2010_v5, %v8382_v24  ;;  %v2012_v13 = vpop.f32.mrb[149].mxu0 }
 0x20f   :  { %v2013_v6 = vadd.f32 %v2012_v13, %v8386_v26  ;;  %v1091_v17 = vpop.f32.mrb[40].mxu1  ;;  %6132 = vmatprep.mubr.msk.f32.mxu1 %vm410_vm5, %v2054_v31  ;;  %v2457_v36 = vld [vmem:[#allocation2 + $0x81] sm:$0xff] }
 0x210   :  { %1199 = vst.msk [vmem:[#allocation2 + $0x98] sm:$0xff] %vm89_vm6, %v1180_v10  ;;  %v1092_v22 = vadd.f32 %v8808_v4, %v1091_v17  ;;  %v1093_v19 = vpop.f32.mrb[41].mxu1  ;;  %2261 = vmatmul.mubr.f32.gmra.mrb[134].mxu1 %v2053_v7  ;;  %6760 = vmatprep.mubr.msk.f32.mxu0 %vm89_vm6, %v2457_v36  ;;  %v2055_v30 = vmax.f32 %v2011_v62, 0.0 }
 0x211   :  { %v2056_v28 = vmax.f32 %v2013_v6, 0.0  ;;  %v2016_v12 = vpop.f32.mrb[150].mxu0 }
 0x212   :  { %v1181_v34 = vmax.f32 %v1092_v22, 0.0  ;;  %v2017_v37 = vadd.f32 %v2016_v12, %v8382_v24  ;;  %v2018_v21 = vpop.f32.mrb[151].mxu0  ;;  %v6223_v24 = vld [vmem:[%s9918_s5 + $0xc0] sm:$0xff] }
 0x213   :  { %v2019_v38 = vadd.f32 %v2018_v21, %v8386_v26  ;;  %v1096_v39 = vpop.f32.mrb[42].mxu1  ;;  %6133 = vmatprep.mubr.msk.f32.mxu1 %vm410_vm5, %v2056_v28  ;;  %v2458_v40 = vld [vmem:[#allocation2 + $0x89] sm:$0xff] }
 0x214   :  { %1200 = vst.msk [vmem:[#allocation2 + $0xa0] sm:$0xff] %vm89_vm6, %v1181_v34  ;;  %v1097_v43 = vadd.f32 %v8808_v4, %v1096_v39  ;;  %v1098_v44 = vpop.f32.mrb[43].mxu1  ;;  %2266 = vmatmul.mubr.f32.gmra.mrb[136].mxu1 %v2055_v30  ;;  %6761 = vmatmul.mubr.msk.f32.gmra.mrb[180].mxu0 %vm89_vm6, %v2458_v40  ;;  %v2057_v45 = vmax.f32 %v2017_v37, 0.0  ;;  %v6224_v26 = vld [vmem:[%s9918_s5 + $0xc8] sm:$0xff] }
 0x215   :  { %v2058_v27 = vmax.f32 %v2019_v38, 0.0  ;;  %v9073_v48 = vpack.c.bf16 %v6224_v26, %v6223_v24 }
 0x216   :  { %v1182_v46 = vmax.f32 %v1097_v43, 0.0 }
 0x217   :  { %v1101_v3 = vpop.f32.mrb[44].mxu1  ;;  %6134 = vmatprep.mubr.msk.f32.mxu1 %vm410_vm5, %v2058_v27  ;;  %v2459_v29 = vld [vmem:[#allocation2 + $0x91] sm:$0xff]  ;;  %7491 = vmatprep.subr.bf16.mxu0 %v9073_v48 }
 0x218   :  { %1201 = vst.msk [vmem:[#allocation2 + $0xa8] sm:$0xff] %vm89_vm6, %v1182_v46  ;;  %v1102_v49 = vadd.f32 %v8808_v4, %v1101_v3  ;;  %v1103_v51 = vpop.f32.mrb[45].mxu1  ;;  %2271 = vmatmul.mubr.f32.gmra.mrb[138].mxu1 %v2057_v45  ;;  %6763 = vmatprep.mubr.msk.f32.mxu0 %vm89_vm6, %v2459_v29 }
 0x21a   :  { %v1183_v53 = vmax.f32 %v1102_v49, 0.0 }
 0x21b   :  { %v1106_v54 = vpop.f32.mrb[46].mxu1  ;;  %v2460_v52 = vld [vmem:[#allocation2 + $0x99] sm:$0xff] }
 0x21c   :  { %1202 = vst.msk [vmem:[#allocation2 + $0xb0] sm:$0xff] %vm89_vm6, %v1183_v53  ;;  %v1107_v35 = vadd.f32 %v8808_v4, %v1106_v54  ;;  %v1108_v47 = vpop.f32.mrb[47].mxu1  ;;  %6764 = vmatmul.mubr.msk.f32.gmra.mrb[182].mxu0 %vm89_vm6, %v2460_v52 }
 0x21e   :  { %v1184_v55 = vmax.f32 %v1107_v35, 0.0 }
 0x21f   :  { %v1111_v57 = vpop.f32.mrb[48].mxu1  ;;  %v2461_v58 = vld [vmem:[#allocation2 + $0xa1] sm:$0xff] }
 0x220   :  { %1203 = vst.msk [vmem:[#allocation2 + $0xb8] sm:$0xff] %vm89_vm6, %v1184_v55  ;;  %v1112_v61 = vadd.f32 %v8808_v4, %v1111_v57  ;;  %v1113_v56 = vpop.f32.mrb[49].mxu1  ;;  %6766 = vmatprep.mubr.msk.f32.mxu0 %vm89_vm6, %v2461_v58 }
 0x222   :  { %v1185_v42 = vmax.f32 %v1112_v61, 0.0 }
 0x223   :  { %v1116_v41 = vpop.f32.mrb[50].mxu1  ;;  %v2462_v63 = vld [vmem:[#allocation2 + $0xa9] sm:$0xff] }
 0x224   :  { %1204 = vst.msk [vmem:[#allocation2 + $0xc0] sm:$0xff] %vm89_vm6, %v1185_v42  ;;  %v1117_v8 = vadd.f32 %v8808_v4, %v1116_v41  ;;  %v1118_v9 = vpop.f32.mrb[51].mxu1  ;;  %6767 = vmatmul.mubr.msk.f32.gmra.mrb[184].mxu0 %vm89_vm6, %v2462_v63 }
 0x226   :  { %v1186_v14 = vmax.f32 %v1117_v8, 0.0 }
 0x227   :  { %v1121_v60 = vpop.f32.mrb[52].mxu1  ;;  %v2463_v15 = vld [vmem:[#allocation2 + $0xb1] sm:$0xff] }
 0x228   :  { %1205 = vst.msk [vmem:[#allocation2 + $0xc8] sm:$0xff] %vm89_vm6, %v1186_v14  ;;  %v1122_v18 = vadd.f32 %v8808_v4, %v1121_v60  ;;  %v1123_v20 = vpop.f32.mrb[53].mxu1  ;;  %6769 = vmatprep.mubr.msk.f32.mxu0 %vm89_vm6, %v2463_v15 }
 0x22a   :  { %v1187_v0 = vmax.f32 %v1122_v18, 0.0 }
 0x22b   :  { %v1126_v59 = vpop.f32.mrb[54].mxu1  ;;  %v2464_v31 = vld [vmem:[#allocation2 + $0xb9] sm:$0xff] }
 0x22c   :  { %1206 = vst.msk [vmem:[#allocation2 + $0xd0] sm:$0xff] %vm89_vm6, %v1187_v0  ;;  %v1127_v5 = vadd.f32 %v8808_v4, %v1126_v59  ;;  %v1128_v7 = vpop.f32.mrb[55].mxu1  ;;  %6770 = vmatmul.mubr.msk.f32.gmra.mrb[186].mxu0 %vm89_vm6, %v2464_v31 }
 0x22e   :  { %v1188_v10 = vmax.f32 %v1127_v5, 0.0 }
 0x22f   :  { %v1131_v62 = vpop.f32.mrb[56].mxu1  ;;  %v2465_v13 = vld [vmem:[#allocation2 + $0xc1] sm:$0xff] }
 0x230   :  { %1207 = vst.msk [vmem:[#allocation2 + $0xd8] sm:$0xff] %vm89_vm6, %v1188_v10  ;;  %v1132_v6 = vadd.f32 %v8808_v4, %v1131_v62  ;;  %v1133_v17 = vpop.f32.mrb[57].mxu1  ;;  %6772 = vmatprep.mubr.msk.f32.mxu0 %vm89_vm6, %v2465_v13  ;;  %v9128_v10 = vld [vmem:[%s9919_s4] ss:$0 sm:$0xff] }
 0x232   :  { %v1189_v36 = vmax.f32 %v1132_v6, 0.0 }
 0x233   :  { %v1136_v22 = vpop.f32.mrb[58].mxu1  ;;  %v2466_v19 = vld [vmem:[#allocation2 + $0xc9] sm:$0xff] }
 0x234   :  { %1208 = vst.msk [vmem:[#allocation2 + $0xe0] sm:$0xff] %vm89_vm6, %v1189_v36  ;;  %v1137_v28 = vadd.f32 %v8808_v4, %v1136_v22  ;;  %v1138_v12 = vpop.f32.mrb[59].mxu1  ;;  %6773 = vmatmul.mubr.msk.f32.gmra.mrb[188].mxu0 %vm89_vm6, %v2466_v19 }
 0x236   :  { %v1190_v30 = vmax.f32 %v1137_v28, 0.0 }
 0x237   :  { %v1141_v34 = vpop.f32.mrb[60].mxu1  ;;  %v2467_v37 = vld [vmem:[#allocation2 + $0xd1] sm:$0xff] }
 0x238   :  { %1209 = vst.msk [vmem:[#allocation2 + $0xe8] sm:$0xff] %vm89_vm6, %v1190_v30  ;;  %v1142_v21 = vadd.f32 %v8808_v4, %v1141_v34  ;;  %v1143_v38 = vpop.f32.mrb[61].mxu1  ;;  %6775 = vmatprep.mubr.msk.f32.mxu0 %vm89_vm6, %v2467_v37 }
 0x239   :  { %v6226_v38 = vld [vmem:[%s9918_s5 + $0xd8] sm:$0xff] }
 0x23a   :  { %v1191_v39 = vmax.f32 %v1142_v21, 0.0  ;;  %v6225_v21 = vld [vmem:[%s9918_s5 + $0xd0] sm:$0xff] }
 0x23b   :  { %v1146_v40 = vpop.f32.mrb[62].mxu1  ;;  %v2468_v43 = vld [vmem:[#allocation2 + $0xd9] sm:$0xff] }
 0x23c   :  { %1210 = vst.msk [vmem:[#allocation2 + $0xf0] sm:$0xff] %vm89_vm6, %v1191_v39  ;;  %v1147_v44 = vadd.f32 %v8808_v4, %v1146_v40  ;;  %v1148_v27 = vpop.f32.mrb[63].mxu1  ;;  %6776 = vmatmul.mubr.msk.f32.gmra.mrb[190].mxu0 %vm89_vm6, %v2468_v43  ;;  %v2391_v39 = vld [vmem:[#allocation2] sm:$0xff] }
 0x23e   :  { %v1192_v45 = vmax.f32 %v1147_v44, 0.0  ;;  %v9146_v44 = vpack.c.bf16 %v6226_v38, %v6225_v21  ;;  %v2402_v21 = vld [vmem:[#allocation2 + $0x58] sm:$0xff] }
 0x23f   :  { %v1151_v46 = vpop.f32.mrb[64].mxu1  ;;  %v2469_v24 = vld [vmem:[#allocation2 + $0xe1] sm:$0xff] }
 0x240   :  { %1211 = vst.msk [vmem:[#allocation2 + $0xf8] sm:$0xff] %vm89_vm6, %v1192_v45  ;;  %v1152_v26 = vadd.f32 %v8808_v4, %v1151_v46  ;;  %v1153_v3 = vpop.f32.mrb[65].mxu1  ;;  %6778 = vmatprep.mubr.msk.f32.mxu0 %vm89_vm6, %v2469_v24  ;;  %v2392_v46 = vld [vmem:[#allocation2 + $0x8] sm:$0xff]  ;;  %v6227_v24 = vld [vmem:[%s9918_s5 + $0xe0] sm:$0xff] }
 0x241   :  { %v2393_v3 = vld [vmem:[#allocation2 + $0x10] sm:$0xff] }
 0x242   :  { %v1193_v29 = vmax.f32 %v1152_v26, 0.0  ;;  %v6228_v26 = vld [vmem:[%s9918_s5 + $0xe8] sm:$0xff] }
 0x243   :  { %v1156_v49 = vpop.f32.mrb[66].mxu1  ;;  %v2470_v51 = vld [vmem:[#allocation2 + $0xe9] sm:$0xff] }
 0x244   :  { %1212 = vst.msk [vmem:[#allocation2 + $0x100] sm:$0xff] %vm89_vm6, %v1193_v29  ;;  %v1157_v53 = vadd.f32 %v8808_v4, %v1156_v49  ;;  %v1158_v54 = vpop.f32.mrb[67].mxu1  ;;  %6779 = vmatmul.mubr.msk.f32.gmra.mrb[192].mxu0 %vm89_vm6, %v2470_v51 }
 0x246   :  { %v1194_v52 = vmax.f32 %v1157_v53, 0.0  ;;  %v9160_v53 = vpack.c.bf16 %v6228_v26, %v6227_v24 }
 0x247   :  { %v1161_v35 = vpop.f32.mrb[68].mxu1  ;;  %v2471_v47 = vld [vmem:[#allocation2 + $0xf1] sm:$0xff] }
 0x248   :  { %1213 = vst.msk [vmem:[#allocation2 + $0x108] sm:$0xff] %vm89_vm6, %v1194_v52  ;;  %v1162_v55 = vadd.f32 %v8808_v4, %v1161_v35  ;;  %v1163_v57 = vpop.f32.mrb[69].mxu1  ;;  %6781 = vmatprep.mubr.msk.f32.mxu0 %vm89_vm6, %v2471_v47  ;;  %v2394_v35 = vld [vmem:[#allocation2 + $0x18] sm:$0xff]  ;;  %v6229_v47 = vld [vmem:[%s9918_s5 + $0xf0] sm:$0xff] }
 0x249   :  { %v2395_v57 = vld [vmem:[#allocation2 + $0x20] sm:$0xff] }
 0x24a   :  { %v1195_v58 = vmax.f32 %v1162_v55, 0.0  ;;  %v6230_v55 = vld [vmem:[%s9918_s5 + $0xf8] sm:$0xff] }
 0x24b   :  { %v1166_v61 = vpop.f32.mrb[70].mxu1  ;;  %v2472_v56 = vld [vmem:[#allocation2 + $0xf9] sm:$0xff] }
 0x24c   :  { %1214 = vst.msk [vmem:[#allocation2 + $0x110] sm:$0xff] %vm89_vm6, %v1195_v58  ;;  %v1167_v42 = vadd.f32 %v8808_v4, %v1166_v61  ;;  %v1168_v41 = vpop.f32.mrb[71].mxu1  ;;  %6782 = vmatmul.mubr.msk.f32.gmra.mrb[194].mxu0 %vm89_vm6, %v2472_v56 }
 0x24e   :  { %v1196_v63 = vmax.f32 %v1167_v42, 0.0  ;;  %v9175_v42 = vpack.c.bf16 %v6230_v55, %v6229_v47  ;;  %v2408_v55 = vld [vmem:[#allocation2 + $0x88] sm:$0xff] }
 0x24f   :  { %v1171_v8 = vpop.f32.mrb[72].mxu1  ;;  %v2473_v9 = vld [vmem:[#allocation2 + $0x101] sm:$0xff] }
 0x250   :  { %1215 = vst.msk [vmem:[#allocation2 + $0x118] sm:$0xff] %vm89_vm6, %v1196_v63  ;;  %v1172_v14 = vadd.f32 %v8808_v4, %v1171_v8  ;;  %v1173_v60 = vpop.f32.mrb[73].mxu1  ;;  %6784 = vmatprep.mubr.msk.f32.mxu0 %vm89_vm6, %v2473_v9  ;;  %v2396_v8 = vld [vmem:[#allocation2 + $0x28] sm:$0xff]  ;;  %v6231_v9 = vld [vmem:[%s9918_s5 + $0x100] sm:$0xff] }
 0x251   :  { %v2397_v60 = vld [vmem:[#allocation2 + $0x30] sm:$0xff] }
 0x252   :  { %v1197_v15 = vmax.f32 %v1172_v14, 0.0  ;;  %v6232_v14 = vld [vmem:[%s9918_s5 + $0x108] sm:$0xff] }
 0x253   :  { %v1176_v18 = vpop.f32.mrb[74].mxu1  ;;  %v2474_v20 = vld [vmem:[#allocation2 + $0x109] sm:$0xff] }
 0x254   :  { %1216 = vst.msk [vmem:[#allocation2 + $0x120] sm:$0xff] %vm89_vm6, %v1197_v15  ;;  %v1177_v0 = vadd.f32 %v8808_v4, %v1176_v18  ;;  %v1178_v59 = vpop.f32.mrb[75].mxu1  ;;  %6785 = vmatmul.mubr.msk.f32.gmra.mrb[196].mxu0 %vm89_vm6, %v2474_v20 }
 0x256   :  { %v1198_v31 = vmax.f32 %v1177_v0, 0.0  ;;  %v9191_v0 = vpack.c.bf16 %v6232_v14, %v6231_v9 }
 0x257   :  { %v1634_v5 = vpop.f32.mrb[76].mxu1  ;;  %v2475_v7 = vld [vmem:[#allocation2 + $0x111] sm:$0xff] }
 0x258   :  { %1217 = vst.msk [vmem:[#allocation2 + $0x128] sm:$0xff] %vm89_vm6, %v1198_v31  ;;  %v1635_v62 = vadd.f32 %v9128_v10, %v1634_v5  ;;  %v1636_v13 = vpop.f32.mrb[77].mxu1  ;;  %6787 = vmatprep.mubr.msk.f32.mxu0 %vm89_vm6, %v2475_v7  ;;  %v6233_v5 = vld [vmem:[%s9918_s5 + $0x110] sm:$0xff]  ;;  %v6234_v7 = vld [vmem:[%s9918_s5 + $0x118] sm:$0xff] }
 0x25a   :  { %v1728_v6 = vmax.f32 %v1635_v62, 0.0  ;;  %v2399_v62 = vld [vmem:[#allocation2 + $0x40] sm:$0xff] }
 0x25b   :  { %v1639_v4 = vpop.f32.mrb[78].mxu1  ;;  %v2476_v17 = vld [vmem:[#allocation2 + $0x119] sm:$0xff] }
 0x25c   :  { %1747 = vst.msk [vmem:[#allocation2 + $0x138] sm:$0xff] %vm89_vm6, %v1728_v6  ;;  %v1640_v36 = vadd.f32 %v9128_v10, %v1639_v4  ;;  %v1641_v22 = vpop.f32.mrb[79].mxu1  ;;  %6788 = vmatmul.mubr.msk.f32.gmra.mrb[198].mxu0 %vm89_vm6, %v2476_v17  ;;  %v9208_v17 = vpack.c.bf16 %v6234_v7, %v6233_v5 }
 0x25e   :  { %v1729_v19 = vmax.f32 %v1640_v36, 0.0 }
 0x25f   :  { %v1644_v28 = vpop.f32.mrb[80].mxu1  ;;  %v2477_v12 = vld [vmem:[#allocation2 + $0x121] sm:$0xff]  ;;  %v2478_v30 = vld [vmem:[#allocation2 + $0x129] sm:$0xff] }
 0x260   :  { %1748 = vst.msk [vmem:[#allocation2 + $0x140] sm:$0xff] %vm89_vm6, %v1729_v19  ;;  %v1645_v34 = vadd.f32 %v9128_v10, %v1644_v28  ;;  %v1646_v37 = vpop.f32.mrb[81].mxu1  ;;  %6790 = vmatprep.mubr.msk.f32.mxu0 %vm89_vm6, %v2477_v12  ;;  %v2401_v19 = vld [vmem:[#allocation2 + $0x50] sm:$0xff] }
 0x261   :  { %6791 = vmatmul.mubr.msk.f32.gmra.mrb[200].mxu0 %vm89_vm6, %v2478_v30 }
 0x262   :  { %v1730_v40 = vmax.f32 %v1645_v34, 0.0  ;;  %6817 = vmatprep.mubr.msk.f32.mxu0 %vm89_vm6, %v2391_v39 }
 0x263   :  { %v1649_v43 = vpop.f32.mrb[82].mxu1 }
 0x264   :  { %1749 = vst.msk [vmem:[#allocation2 + $0x148] sm:$0xff] %vm89_vm6, %v1730_v40  ;;  %v1650_v27 = vadd.f32 %v9128_v10, %v1649_v43  ;;  %v1651_v45 = vpop.f32.mrb[83].mxu1 }
 0x265   :  { %6818 = vmatmul.mubr.msk.f32.vlgmr.msra.gmra.mrb[164].mxu0 %vm89_vm6, %v2392_v46  ;;  %v2404_v45 = vld [vmem:[#allocation2 + $0x68] sm:$0xff] }
 0x266   :  { %v1731_v29 = vmax.f32 %v1650_v27, 0.0  ;;  %6820 = vmatprep.mubr.msk.f32.mxu0 %vm89_vm6, %v2393_v3  ;;  %7493 = vmatpush3.bf16.msra.mxu0 %v9073_v48 }
 0x267   :  { %v1654_v49 = vpop.f32.mrb[84].mxu1  ;;  %v3973_v51 = vld [vmem:[#allocation2 + $0x139] sm:$0xff]  ;;  %7495 = vmatprep.subr.bf16.mxu0 %v9146_v44 }
 0x268   :  { %1750 = vst.msk [vmem:[#allocation2 + $0x150] sm:$0xff] %vm89_vm6, %v1731_v29  ;;  %v1655_v54 = vadd.f32 %v9128_v10, %v1654_v49  ;;  %v1656_v52 = vpop.f32.mrb[85].mxu1  ;;  %6979 = vmatprep.mubr.msk.f32.mxu1 %vm89_vm6, %v3973_v51  ;;  %v2406_v49 = vld [vmem:[#allocation2 + $0x78] sm:$0xff]  ;;  %v2407_v51 = vld [vmem:[#allocation2 + $0x80] sm:$0xff] }
 0x269   :  { %6821 = vmatmul.mubr.msk.f32.gmra.mrb[166].mxu0 %vm89_vm6, %v2394_v35 }
 0x26a   :  { %v1732_v58 = vmax.f32 %v1655_v54, 0.0  ;;  %6823 = vmatprep.mubr.msk.f32.mxu0 %vm89_vm6, %v2395_v57  ;;  %7497 = vmatpush3.bf16.msra.mxu0 %v9146_v44  ;;  %v2409_v57 = vld [vmem:[#allocation2 + $0x90] sm:$0xff] }
 0x26b   :  { %v1659_v61 = vpop.f32.mrb[86].mxu1  ;;  %v3974_v56 = vld [vmem:[#allocation2 + $0x141] sm:$0xff]  ;;  %7499 = vmatprep.subr.bf16.mxu0 %v9160_v53 }
 0x26c   :  { %1751 = vst.msk [vmem:[#allocation2 + $0x158] sm:$0xff] %vm89_vm6, %v1732_v58  ;;  %v1660_v41 = vadd.f32 %v9128_v10, %v1659_v61  ;;  %v1661_v63 = vpop.f32.mrb[87].mxu1  ;;  %6980 = vmatmul.mubr.msk.f32.vlgmr.msra.gmra.mrb[140].mxu1 %vm89_vm6, %v3974_v56 }
 0x26d   :  { %6824 = vmatmul.mubr.msk.f32.gmra.mrb[168].mxu0 %vm89_vm6, %v2396_v8  ;;  %7541 = vmatpush3.bf16.msra.mxu1 %v8917_v25  ;;  %v2398_v25 = vld [vmem:[#allocation2 + $0x38] sm:$0xff]  ;;  %v2411_v8 = vld [vmem:[#allocation2 + $0xa0] sm:$0xff] }
 0x26e   :  { %v1733_v15 = vmax.f32 %v1660_v41, 0.0  ;;  %6826 = vmatprep.mubr.msk.f32.mxu0 %vm89_vm6, %v2397_v60  ;;  %7501 = vmatpush3.bf16.msra.mxu0 %v9160_v53  ;;  %v2410_v63 = vld [vmem:[#allocation2 + $0x98] sm:$0xff] }
 0x26f   :  { %v1664_v18 = vpop.f32.mrb[88].mxu1  ;;  %v3975_v20 = vld [vmem:[#allocation2 + $0x149] sm:$0xff]  ;;  %7503 = vmatprep.subr.bf16.mxu0 %v9175_v42  ;;  %7543 = vmatprep.subr.bf16.mxu1 %v8933_v32 }
 0x270   :  { %1752 = vst.msk [vmem:[#allocation2 + $0x160] sm:$0xff] %vm89_vm6, %v1733_v15  ;;  %v1665_v59 = vadd.f32 %v9128_v10, %v1664_v18  ;;  %v1666_v31 = vpop.f32.mrb[89].mxu1  ;;  %6982 = vmatprep.mubr.msk.f32.mxu1 %vm89_vm6, %v3975_v20  ;;  %v2412_v20 = vld [vmem:[#allocation2 + $0xa8] sm:$0xff] }
 0x271   :  { %6827 = vmatmul.mubr.msk.f32.gmra.mrb[170].mxu0 %vm89_vm6, %v2398_v25  ;;  %7545 = vmatpush3.bf16.msra.mxu1 %v8933_v32  ;;  %v2400_v32 = vld [vmem:[#allocation2 + $0x48] sm:$0xff] }
 0x272   :  { %v1734_v13 = vmax.f32 %v1665_v59, 0.0  ;;  %6829 = vmatprep.mubr.msk.f32.mxu0 %vm89_vm6, %v2399_v62  ;;  %7505 = vmatpush3.bf16.msra.mxu0 %v9175_v42  ;;  %v2413_v59 = vld [vmem:[#allocation2 + $0xb0] sm:$0xff] }
 0x273   :  { %v1669_v6 = vpop.f32.mrb[90].mxu1  ;;  %v3976_v4 = vld [vmem:[#allocation2 + $0x151] sm:$0xff]  ;;  %7507 = vmatprep.subr.bf16.mxu0 %v9191_v0  ;;  %7547 = vmatprep.subr.bf16.mxu1 %v8950_v2 }
 0x274   :  { %1753 = vst.msk [vmem:[#allocation2 + $0x168] sm:$0xff] %vm89_vm6, %v1734_v13  ;;  %v1670_v36 = vadd.f32 %v9128_v10, %v1669_v6  ;;  %v1671_v22 = vpop.f32.mrb[91].mxu1  ;;  %6983 = vmatmul.mubr.msk.f32.gmra.mrb[142].mxu1 %vm89_vm6, %v3976_v4  ;;  %v2414_v13 = vld [vmem:[#allocation2 + $0xb8] sm:$0xff]  ;;  %v2415_v6 = vld [vmem:[#allocation2 + $0xc0] sm:$0xff] }
 0x275   :  { %6830 = vmatmul.mubr.msk.f32.gmra.mrb[172].mxu0 %vm89_vm6, %v2400_v32  ;;  %7549 = vmatpush3.bf16.msra.mxu1 %v8950_v2  ;;  %v2403_v2 = vld [vmem:[#allocation2 + $0x60] sm:$0xff] }
 0x276   :  { %v1735_v28 = vmax.f32 %v1670_v36, 0.0  ;;  %6832 = vmatprep.mubr.msk.f32.mxu0 %vm89_vm6, %v2401_v19  ;;  %7509 = vmatpush3.bf16.msra.mxu0 %v9191_v0 }
 0x277   :  { %v1674_v12 = vpop.f32.mrb[92].mxu1  ;;  %v3977_v30 = vld [vmem:[#allocation2 + $0x159] sm:$0xff]  ;;  %7511 = vmatprep.subr.bf16.mxu0 %v9208_v17  ;;  %7551 = vmatprep.subr.bf16.mxu1 %v8969_v33 }
 0x278   :  { %1754 = vst.msk [vmem:[#allocation2 + $0x170] sm:$0xff] %vm89_vm6, %v1735_v28  ;;  %v1675_v34 = vadd.f32 %v9128_v10, %v1674_v12  ;;  %v1676_v37 = vpop.f32.mrb[93].mxu1  ;;  %6985 = vmatprep.mubr.msk.f32.mxu1 %vm89_vm6, %v3977_v30  ;;  %v2416_v28 = vld [vmem:[#allocation2 + $0xc8] sm:$0xff]  ;;  %v2417_v12 = vld [vmem:[#allocation2 + $0xd0] sm:$0xff] }
 0x279   :  { %6833 = vmatmul.mubr.msk.f32.gmra.mrb[174].mxu0 %vm89_vm6, %v2402_v21  ;;  %7553 = vmatpush3.bf16.msra.mxu1 %v8969_v33  ;;  %v2405_v33 = vld [vmem:[#allocation2 + $0x70] sm:$0xff] }
 0x27a   :  { %v1736_v38 = vmax.f32 %v1675_v34, 0.0  ;;  %6835 = vmatprep.mubr.msk.f32.mxu0 %vm89_vm6, %v2403_v2  ;;  %7513 = vmatpush3.bf16.msra.mxu0 %v9208_v17 }
 0x27b   :  { %v1679_v39 = vpop.f32.mrb[94].mxu1  ;;  %v3978_v40 = vld [vmem:[#allocation2 + $0x161] sm:$0xff]  ;;  %7555 = vmatprep.subr.bf16.mxu1 %v8988_v50 }
 0x27c   :  { %1755 = vst.msk [vmem:[#allocation2 + $0x178] sm:$0xff] %vm89_vm6, %v1736_v38  ;;  %v1680_v43 = vadd.f32 %v9128_v10, %v1679_v39  ;;  %v1681_v27 = vpop.f32.mrb[95].mxu1  ;;  %6986 = vmatmul.mubr.msk.f32.gmra.mrb[144].mxu1 %vm89_vm6, %v3978_v40  ;;  %v2418_v38 = vld [vmem:[#allocation2 + $0xd8] sm:$0xff]  ;;  %v2419_v39 = vld [vmem:[#allocation2 + $0xe0] sm:$0xff] }
 0x27d   :  { %6836 = vmatmul.mubr.msk.f32.gmra.mrb[176].mxu0 %vm89_vm6, %v2404_v45  ;;  %7557 = vmatpush3.bf16.msra.mxu1 %v8988_v50 }
 0x27e   :  { %v1737_v46 = vmax.f32 %v1680_v43, 0.0  ;;  %6838 = vmatprep.mubr.msk.f32.mxu0 %vm89_vm6, %v2405_v33  ;;  %7559 = vmatprep.subr.bf16.mxu1 %v9007_v1 }
 0x27f   :  { %v1684_v24 = vpop.f32.mrb[96].mxu1  ;;  %v3979_v26 = vld [vmem:[#allocation2 + $0x169] sm:$0xff] }
 0x280   :  { %1756 = vst.msk [vmem:[#allocation2 + $0x180] sm:$0xff] %vm89_vm6, %v1737_v46  ;;  %v1685_v3 = vadd.f32 %v9128_v10, %v1684_v24  ;;  %v1686_v29 = vpop.f32.mrb[97].mxu1  ;;  %6988 = vmatprep.mubr.msk.f32.mxu1 %vm89_vm6, %v3979_v26  ;;  %v2420_v46 = vld [vmem:[#allocation2 + $0xe8] sm:$0xff]  ;;  %v2421_v24 = vld [vmem:[#allocation2 + $0xf0] sm:$0xff] }
 0x281   :  { %6839 = vmatmul.mubr.msk.f32.gmra.mrb[178].mxu0 %vm89_vm6, %v2406_v49  ;;  %7561 = vmatpush3.bf16.msra.mxu1 %v9007_v1 }
 0x282   :  { %v1738_v50 = vmax.f32 %v1685_v3, 0.0  ;;  %6841 = vmatprep.mubr.msk.f32.mxu0 %vm89_vm6, %v2407_v51  ;;  %7563 = vmatprep.subr.bf16.mxu1 %v9073_v48 }
 0x283   :  { %v1689_v54 = vpop.f32.mrb[98].mxu1  ;;  %v3980_v52 = vld [vmem:[#allocation2 + $0x171] sm:$0xff] }
 0x284   :  { %1757 = vst.msk [vmem:[#allocation2 + $0x188] sm:$0xff] %vm89_vm6, %v1738_v50  ;;  %v1690_v35 = vadd.f32 %v9128_v10, %v1689_v54  ;;  %v1691_v47 = vpop.f32.mrb[99].mxu1  ;;  %6989 = vmatmul.mubr.msk.f32.gmra.mrb[146].mxu1 %vm89_vm6, %v3980_v52  ;;  %v2422_v50 = vld [vmem:[#allocation2 + $0xf8] sm:$0xff]  ;;  %v2423_v54 = vld [vmem:[#allocation2 + $0x100] sm:$0xff] }
 0x285   :  { %6842 = vmatmul.mubr.msk.f32.gmra.mrb[180].mxu0 %vm89_vm6, %v2408_v55 }
 0x286   :  { %v1739_v58 = vmax.f32 %v1690_v35, 0.0  ;;  %6844 = vmatprep.mubr.msk.f32.mxu0 %vm89_vm6, %v2409_v57 }
 0x287   :  { %v1694_v1 = vpop.f32.mrb[100].mxu1  ;;  %v3981_v61 = vld [vmem:[#allocation2 + $0x179] sm:$0xff] }
 0x288   :  { %1758 = vst.msk [vmem:[#allocation2 + $0x190] sm:$0xff] %vm89_vm6, %v1739_v58  ;;  %v1695_v56 = vadd.f32 %v9128_v10, %v1694_v1  ;;  %v1696_v41 = vpop.f32.mrb[101].mxu1  ;;  %6991 = vmatprep.mubr.msk.f32.mxu1 %vm89_vm6, %v3981_v61  ;;  %v2424_v58 = vld [vmem:[#allocation2 + $0x108] sm:$0xff]  ;;  %v2425_v1 = vld [vmem:[#allocation2 + $0x110] sm:$0xff] }
 0x289   :  { %6845 = vmatmul.mubr.msk.f32.gmra.mrb[182].mxu0 %vm89_vm6, %v2410_v63 }
 0x28a   :  { %v1740_v9 = vmax.f32 %v1695_v56, 0.0  ;;  %6847 = vmatprep.mubr.msk.f32.mxu0 %vm89_vm6, %v2411_v8 }
 0x28b   :  { %v1699_v14 = vpop.f32.mrb[102].mxu1  ;;  %v3982_v60 = vld [vmem:[#allocation2 + $0x181] sm:$0xff] }
 0x28c   :  { %1759 = vst.msk [vmem:[#allocation2 + $0x198] sm:$0xff] %vm89_vm6, %v1740_v9  ;;  %v1700_v15 = vadd.f32 %v9128_v10, %v1699_v14  ;;  %v1701_v18 = vpop.f32.mrb[103].mxu1  ;;  %6992 = vmatmul.mubr.msk.f32.gmra.mrb[148].mxu1 %vm89_vm6, %v3982_v60  ;;  %v2426_v9 = vld [vmem:[#allocation2 + $0x118] sm:$0xff]  ;;  %v2427_v14 = vld [vmem:[#allocation2 + $0x120] sm:$0xff] }
 0x28d   :  { %6848 = vmatmul.mubr.msk.f32.gmra.mrb[184].mxu0 %vm89_vm6, %v2412_v20 }
 0x28e   :  { %v1741_v31 = vmax.f32 %v1700_v15, 0.0  ;;  %6850 = vmatprep.mubr.msk.f32.mxu0 %vm89_vm6, %v2413_v59 }
 0x28f   :  { %v1704_v25 = vpop.f32.mrb[104].mxu1  ;;  %v3983_v5 = vld [vmem:[#allocation2 + $0x189] sm:$0xff] }
 0x290   :  { %1760 = vst.msk [vmem:[#allocation2 + $0x1a0] sm:$0xff] %vm89_vm6, %v1741_v31  ;;  %v1705_v7 = vadd.f32 %v9128_v10, %v1704_v25  ;;  %v1706_v62 = vpop.f32.mrb[105].mxu1  ;;  %6994 = vmatprep.mubr.msk.f32.mxu1 %vm89_vm6, %v3983_v5  ;;  %v2428_v31 = vld [vmem:[#allocation2 + $0x128] sm:$0xff] }
 0x291   :  { %6851 = vmatmul.mubr.msk.f32.gmra.mrb[186].mxu0 %vm89_vm6, %v2414_v13  ;;  %v3230_v25 = vld [vmem:[#allocation2 + $0x2] sm:$0xff] }
 0x292   :  { %v1742_v4 = vmax.f32 %v1705_v7, 0.0  ;;  %6853 = vmatprep.mubr.msk.f32.mxu0 %vm89_vm6, %v2415_v6 }
 0x293   :  { %v1709_v36 = vpop.f32.mrb[106].mxu1  ;;  %v3984_v22 = vld [vmem:[#allocation2 + $0x191] sm:$0xff] }
 0x294   :  { %1761 = vst.msk [vmem:[#allocation2 + $0x1a8] sm:$0xff] %vm89_vm6, %v1742_v4  ;;  %v1710_v32 = vadd.f32 %v9128_v10, %v1709_v36  ;;  %v1711_v19 = vpop.f32.mrb[107].mxu1  ;;  %6995 = vmatmul.mubr.msk.f32.gmra.mrb[150].mxu1 %vm89_vm6, %v3984_v22  ;;  %v3231_v4 = vld [vmem:[#allocation2 + $0xa] sm:$0xff]  ;;  %v3232_v36 = vld [vmem:[#allocation2 + $0x12] sm:$0xff] }
 0x295   :  { %6854 = vmatmul.mubr.msk.f32.gmra.mrb[188].mxu0 %vm89_vm6, %v2416_v28 }
 0x296   :  { %v1743_v30 = vmax.f32 %v1710_v32, 0.0  ;;  %6856 = vmatprep.mubr.msk.f32.mxu0 %vm89_vm6, %v2417_v12 }
 0x297   :  { %v1714_v34 = vpop.f32.mrb[108].mxu1  ;;  %v3985_v37 = vld [vmem:[#allocation2 + $0x199] sm:$0xff] }
 0x298   :  { %1762 = vst.msk [vmem:[#allocation2 + $0x1b0] sm:$0xff] %vm89_vm6, %v1743_v30  ;;  %v1715_v21 = vadd.f32 %v9128_v10, %v1714_v34  ;;  %v1716_v2 = vpop.f32.mrb[109].mxu1  ;;  %6997 = vmatprep.mubr.msk.f32.mxu1 %vm89_vm6, %v3985_v37  ;;  %v3233_v30 = vld [vmem:[#allocation2 + $0x1a] sm:$0xff]  ;;  %v3234_v34 = vld [vmem:[#allocation2 + $0x22] sm:$0xff] }
 0x299   :  { %6857 = vmatmul.mubr.msk.f32.gmra.mrb[190].mxu0 %vm89_vm6, %v2418_v38 }
 0x29a   :  { %v1744_v40 = vmax.f32 %v1715_v21, 0.0  ;;  %6859 = vmatprep.mubr.msk.f32.mxu0 %vm89_vm6, %v2419_v39 }
 0x29b   :  { %v1719_v43 = vpop.f32.mrb[110].mxu1  ;;  %v3986_v27 = vld [vmem:[#allocation2 + $0x1a1] sm:$0xff] }
 0x29c   :  { %1763 = vst.msk [vmem:[#allocation2 + $0x1b8] sm:$0xff] %vm89_vm6, %v1744_v40  ;;  %v1720_v45 = vadd.f32 %v9128_v10, %v1719_v43  ;;  %v1721_v33 = vpop.f32.mrb[111].mxu1  ;;  %6998 = vmatmul.mubr.msk.f32.gmra.mrb[152].mxu1 %vm89_vm6, %v3986_v27  ;;  %v3235_v40 = vld [vmem:[#allocation2 + $0x2a] sm:$0xff]  ;;  %v3236_v43 = vld [vmem:[#allocation2 + $0x32] sm:$0xff] }
 0x29d   :  { %6860 = vmatmul.mubr.msk.f32.gmra.mrb[192].mxu0 %vm89_vm6, %v2420_v46 }
 0x29e   :  { %v1745_v26 = vmax.f32 %v1720_v45, 0.0  ;;  %6862 = vmatprep.mubr.msk.f32.mxu0 %vm89_vm6, %v2421_v24 }
 0x29f   :  { %v1724_v3 = vpop.f32.mrb[112].mxu1  ;;  %v3987_v29 = vld [vmem:[#allocation2 + $0x1a9] sm:$0xff] }
 0x2a0   :  { %1764 = vst.msk [vmem:[#allocation2 + $0x1c0] sm:$0xff] %vm89_vm6, %v1745_v26  ;;  %v1725_v49 = vadd.f32 %v9128_v10, %v1724_v3  ;;  %v1726_v51 = vpop.f32.mrb[113].mxu1  ;;  %7000 = vmatprep.mubr.msk.f32.mxu1 %vm89_vm6, %v3987_v29  ;;  %v3237_v26 = vld [vmem:[#allocation2 + $0x3a] sm:$0xff]  ;;  %v3238_v3 = vld [vmem:[#allocation2 + $0x42] sm:$0xff] }
 0x2a1   :  { %6863 = vmatmul.mubr.msk.f32.gmra.mrb[194].mxu0 %vm89_vm6, %v2422_v50 }
 0x2a2   :  { %v1746_v52 = vmax.f32 %v1725_v49, 0.0  ;;  %6865 = vmatprep.mubr.msk.f32.mxu0 %vm89_vm6, %v2423_v54 }
 0x2a3   :  { %v2182_v35 = vpop.f32.mrb[152].mxu0  ;;  %v3988_v47 = vld [vmem:[#allocation2 + $0x1b1] sm:$0xff] }
 0x2a4   :  { %1765 = vst.msk [vmem:[#allocation2 + $0x1c8] sm:$0xff] %vm89_vm6, %v1746_v52  ;;  %v2183_v55 = vadd.f32 %v9128_v10, %v2182_v35  ;;  %v2184_v57 = vpop.f32.mrb[153].mxu0  ;;  %7001 = vmatmul.mubr.msk.f32.gmra.mrb[154].mxu1 %vm89_vm6, %v3988_v47  ;;  %v3239_v52 = vld [vmem:[#allocation2 + $0x4a] sm:$0xff]  ;;  %v3240_v35 = vld [vmem:[#allocation2 + $0x52] sm:$0xff] }
 0x2a5   :  { %6866 = vmatmul.mubr.msk.f32.gmra.mrb[196].mxu0 %vm89_vm6, %v2424_v58 }
 0x2a6   :  { %v2276_v61 = vmax.f32 %v2183_v55, 0.0  ;;  %6868 = vmatprep.mubr.msk.f32.mxu0 %vm89_vm6, %v2425_v1 }
 0x2a7   :  { %v2187_v56 = vpop.f32.mrb[154].mxu0  ;;  %v3989_v41 = vld [vmem:[#allocation2 + $0x1b9] sm:$0xff] }
 0x2a8   :  { %2295 = vst.msk [vmem:[#allocation2 + $0x1d0] sm:$0xff] %vm89_vm6, %v2276_v61  ;;  %v2188_v63 = vadd.f32 %v9128_v10, %v2187_v56  ;;  %v2189_v8 = vpop.f32.mrb[155].mxu0  ;;  %7003 = vmatprep.mubr.msk.f32.mxu1 %vm89_vm6, %v3989_v41  ;;  %v3241_v61 = vld [vmem:[#allocation2 + $0x5a] sm:$0xff]  ;;  %v3242_v56 = vld [vmem:[#allocation2 + $0x62] sm:$0xff] }
 0x2a9   :  { %6869 = vmatmul.mubr.msk.f32.gmra.mrb[198].mxu0 %vm89_vm6, %v2426_v9 }
 0x2aa   :  { %v2277_v60 = vmax.f32 %v2188_v63, 0.0  ;;  %6871 = vmatprep.mubr.msk.f32.mxu0 %vm89_vm6, %v2427_v14 }
 0x2ab   :  { %v2192_v15 = vpop.f32.mrb[156].mxu0  ;;  %v3990_v18 = vld [vmem:[#allocation2 + $0x1c1] sm:$0xff] }
 0x2ac   :  { %2296 = vst.msk [vmem:[#allocation2 + $0x1d8] sm:$0xff] %vm89_vm6, %v2277_v60  ;;  %v2193_v20 = vadd.f32 %v9128_v10, %v2192_v15  ;;  %v2194_v59 = vpop.f32.mrb[157].mxu0  ;;  %7004 = vmatmul.mubr.msk.f32.gmra.mrb[156].mxu1 %vm89_vm6, %v3990_v18  ;;  %v3243_v60 = vld [vmem:[#allocation2 + $0x6a] sm:$0xff]  ;;  %v3244_v15 = vld [vmem:[#allocation2 + $0x72] sm:$0xff] }
 0x2ad   :  { %6872 = vmatmul.mubr.msk.f32.gmra.mrb[200].mxu0 %vm89_vm6, %v2428_v31 }
 0x2ae   :  { %v2278_v5 = vmax.f32 %v2193_v20, 0.0  ;;  %6898 = vmatprep.mubr.msk.f32.mxu0 %vm89_vm6, %v3230_v25 }
 0x2af   :  { %v2197_v7 = vpop.f32.mrb[158].mxu0  ;;  %v3991_v62 = vld [vmem:[#allocation2 + $0x1c9] sm:$0xff] }
 0x2b0   :  { %2297 = vst.msk [vmem:[#allocation2 + $0x1e0] sm:$0xff] %vm89_vm6, %v2278_v5  ;;  %v2198_v13 = vadd.f32 %v9128_v10, %v2197_v7  ;;  %v2199_v6 = vpop.f32.mrb[159].mxu0  ;;  %7006 = vmatprep.mubr.msk.f32.mxu1 %vm89_vm6, %v3991_v62  ;;  %v3245_v5 = vld [vmem:[#allocation2 + $0x7a] sm:$0xff]  ;;  %v3246_v7 = vld [vmem:[#allocation2 + $0x82] sm:$0xff] }
 0x2b1   :  { %6899 = vmatmul.mubr.msk.f32.vlgmr.msra.gmra.mrb[164].mxu0 %vm89_vm6, %v3231_v4 }
 0x2b2   :  { %v2279_v22 = vmax.f32 %v2198_v13, 0.0  ;;  %6901 = vmatprep.mubr.msk.f32.mxu0 %vm89_vm6, %v3232_v36 }
 0x2b3   :  { %v2202_v32 = vpop.f32.mrb[160].mxu0  ;;  %v3992_v19 = vld [vmem:[#allocation2 + $0x1d1] sm:$0xff] }
 0x2b4   :  { %2298 = vst.msk [vmem:[#allocation2 + $0x1e8] sm:$0xff] %vm89_vm6, %v2279_v22  ;;  %v2203_v28 = vadd.f32 %v9128_v10, %v2202_v32  ;;  %v2204_v12 = vpop.f32.mrb[161].mxu0  ;;  %7007 = vmatmul.mubr.msk.f32.gmra.mrb[158].mxu1 %vm89_vm6, %v3992_v19  ;;  %v3247_v22 = vld [vmem:[#allocation2 + $0x8a] sm:$0xff]  ;;  %v3248_v32 = vld [vmem:[#allocation2 + $0x92] sm:$0xff] }
 0x2b5   :  { %6902 = vmatmul.mubr.msk.f32.gmra.mrb[166].mxu0 %vm89_vm6, %v3233_v30 }
 0x2b6   :  { %v2280_v37 = vmax.f32 %v2203_v28, 0.0  ;;  %6904 = vmatprep.mubr.msk.f32.mxu0 %vm89_vm6, %v3234_v34 }
 0x2b7   :  { %v2207_v21 = vpop.f32.mrb[162].mxu0  ;;  %v3993_v2 = vld [vmem:[#allocation2 + $0x1d9] sm:$0xff] }
 0x2b8   :  { %2299 = vst.msk [vmem:[#allocation2 + $0x1f0] sm:$0xff] %vm89_vm6, %v2280_v37  ;;  %v2208_v38 = vadd.f32 %v9128_v10, %v2207_v21  ;;  %v2209_v39 = vpop.f32.mrb[163].mxu0  ;;  %7009 = vmatprep.mubr.msk.f32.mxu1 %vm89_vm6, %v3993_v2  ;;  %v3249_v37 = vld [vmem:[#allocation2 + $0x9a] sm:$0xff]  ;;  %v3250_v21 = vld [vmem:[#allocation2 + $0xa2] sm:$0xff] }
 0x2b9   :  { %6905 = vmatmul.mubr.msk.f32.gmra.mrb[168].mxu0 %vm89_vm6, %v3235_v40 }
 0x2ba   :  { %v2281_v27 = vmax.f32 %v2208_v38, 0.0  ;;  %6907 = vmatprep.mubr.msk.f32.mxu0 %vm89_vm6, %v3236_v43 }
 0x2bb   :  { %v2212_v45 = vpop.f32.mrb[114].mxu1  ;;  %v3994_v33 = vld [vmem:[#allocation2 + $0x1e1] sm:$0xff] }
 0x2bc   :  { %2300 = vst.msk [vmem:[#allocation2 + $0x1f8] sm:$0xff] %vm89_vm6, %v2281_v27  ;;  %v2213_v46 = vadd.f32 %v9128_v10, %v2212_v45  ;;  %v2214_v24 = vpop.f32.mrb[115].mxu1  ;;  %7010 = vmatmul.mubr.msk.f32.gmra.mrb[160].mxu1 %vm89_vm6, %v3994_v33  ;;  %v3251_v27 = vld [vmem:[#allocation2 + $0xaa] sm:$0xff]  ;;  %v3252_v45 = vld [vmem:[#allocation2 + $0xb2] sm:$0xff] }
 0x2bd   :  { %6908 = vmatmul.mubr.msk.f32.gmra.mrb[170].mxu0 %vm89_vm6, %v3237_v26 }
 0x2be   :  { %v2282_v29 = vmax.f32 %v2213_v46, 0.0  ;;  %6910 = vmatprep.mubr.msk.f32.mxu0 %vm89_vm6, %v3238_v3 }
 0x2bf   :  { %v2217_v49 = vpop.f32.mrb[116].mxu1  ;;  %v3995_v51 = vld [vmem:[#allocation2 + $0x1e9] sm:$0xff] }
 0x2c0   :  { %2301 = vst.msk [vmem:[#allocation2 + $0x200] sm:$0xff] %vm89_vm6, %v2282_v29  ;;  %v2218_v50 = vadd.f32 %v9128_v10, %v2217_v49  ;;  %v2219_v54 = vpop.f32.mrb[117].mxu1  ;;  %7012 = vmatprep.mubr.msk.f32.mxu1 %vm89_vm6, %v3995_v51  ;;  %v3253_v29 = vld [vmem:[#allocation2 + $0xba] sm:$0xff]  ;;  %v3254_v49 = vld [vmem:[#allocation2 + $0xc2] sm:$0xff] }
 0x2c1   :  { %6911 = vmatmul.mubr.msk.f32.gmra.mrb[172].mxu0 %vm89_vm6, %v3239_v52 }
 0x2c2   :  { %v2283_v47 = vmax.f32 %v2218_v50, 0.0  ;;  %6913 = vmatprep.mubr.msk.f32.mxu0 %vm89_vm6, %v3240_v35 }
 0x2c3   :  { %v2222_v55 = vpop.f32.mrb[118].mxu1  ;;  %v3996_v57 = vld [vmem:[#allocation2 + $0x1f1] sm:$0xff] }
 0x2c4   :  { %2302 = vst.msk [vmem:[#allocation2 + $0x208] sm:$0xff] %vm89_vm6, %v2283_v47  ;;  %v2223_v58 = vadd.f32 %v9128_v10, %v2222_v55  ;;  %v2224_v1 = vpop.f32.mrb[119].mxu1  ;;  %7013 = vmatmul.mubr.msk.f32.gmra.mrb[162].mxu1 %vm89_vm6, %v3996_v57  ;;  %v3255_v47 = vld [vmem:[#allocation2 + $0xca] sm:$0xff]  ;;  %v3256_v55 = vld [vmem:[#allocation2 + $0xd2] sm:$0xff] }
 0x2c5   :  { %6914 = vmatmul.mubr.msk.f32.gmra.mrb[174].mxu0 %vm89_vm6, %v3241_v61 }
 0x2c6   :  { %v2284_v41 = vmax.f32 %v2223_v58, 0.0  ;;  %6916 = vmatprep.mubr.msk.f32.mxu0 %vm89_vm6, %v3242_v56 }
 0x2c7   :  { %v2227_v63 = vpop.f32.mrb[120].mxu1  ;;  %v3997_v8 = vld [vmem:[#allocation2 + $0x1f9] sm:$0xff] }
 0x2c8   :  { %2303 = vst.msk [vmem:[#allocation2 + $0x210] sm:$0xff] %vm89_vm6, %v2284_v41  ;;  %v2228_v9 = vadd.f32 %v9128_v10, %v2227_v63  ;;  %v2229_v14 = vpop.f32.mrb[121].mxu1  ;;  %7015 = vmatprep.mubr.msk.f32.mxu1 %vm89_vm6, %v3997_v8  ;;  %v3257_v41 = vld [vmem:[#allocation2 + $0xda] sm:$0xff]  ;;  %v3258_v63 = vld [vmem:[#allocation2 + $0xe2] sm:$0xff] }
 0x2c9   :  { %6917 = vmatmul.mubr.msk.f32.gmra.mrb[176].mxu0 %vm89_vm6, %v3243_v60 }
 0x2ca   :  { %v2285_v18 = vmax.f32 %v2228_v9, 0.0  ;;  %6919 = vmatprep.mubr.msk.f32.mxu0 %vm89_vm6, %v3244_v15 }
 0x2cb   :  { %v2232_v20 = vpop.f32.mrb[122].mxu1  ;;  %v3998_v59 = vld [vmem:[#allocation2 + $0x201] sm:$0xff] }
 0x2cc   :  { %2304 = vst.msk [vmem:[#allocation2 + $0x218] sm:$0xff] %vm89_vm6, %v2285_v18  ;;  %v2233_v31 = vadd.f32 %v9128_v10, %v2232_v20  ;;  %v2234_v25 = vpop.f32.mrb[123].mxu1  ;;  %7016 = vmatmul.mubr.msk.f32.gmra.mrb[164].mxu1 %vm89_vm6, %v3998_v59  ;;  %v3259_v18 = vld [vmem:[#allocation2 + $0xea] sm:$0xff]  ;;  %v3260_v20 = vld [vmem:[#allocation2 + $0xf2] sm:$0xff] }
 0x2cd   :  { %6920 = vmatmul.mubr.msk.f32.gmra.mrb[178].mxu0 %vm89_vm6, %v3245_v5 }
 0x2ce   :  { %v2286_v62 = vmax.f32 %v2233_v31, 0.0  ;;  %6922 = vmatprep.mubr.msk.f32.mxu0 %vm89_vm6, %v3246_v7 }
 0x2cf   :  { %v2237_v13 = vpop.f32.mrb[124].mxu1  ;;  %v3999_v6 = vld [vmem:[#allocation2 + $0x209] sm:$0xff] }
 0x2d0   :  { %2305 = vst.msk [vmem:[#allocation2 + $0x220] sm:$0xff] %vm89_vm6, %v2286_v62  ;;  %v2238_v4 = vadd.f32 %v9128_v10, %v2237_v13  ;;  %v2239_v36 = vpop.f32.mrb[125].mxu1  ;;  %7018 = vmatprep.mubr.msk.f32.mxu1 %vm89_vm6, %v3999_v6  ;;  %v3261_v62 = vld [vmem:[#allocation2 + $0xfa] sm:$0xff]  ;;  %v3262_v13 = vld [vmem:[#allocation2 + $0x102] sm:$0xff] }
 0x2d1   :  { %6923 = vmatmul.mubr.msk.f32.gmra.mrb[180].mxu0 %vm89_vm6, %v3247_v22  ;;  %v3263_v36 = vld [vmem:[#allocation2 + $0x10a] sm:$0xff]  ;;  %v3264_v22 = vld [vmem:[#allocation2 + $0x112] sm:$0xff] }
 0x2d2   :  { %v2287_v19 = vmax.f32 %v2238_v4, 0.0  ;;  %6925 = vmatprep.mubr.msk.f32.mxu0 %vm89_vm6, %v3248_v32  ;;  %v3265_v32 = vld [vmem:[#allocation2 + $0x11a] sm:$0xff] }
 0x2d3   :  { %v2242_v28 = vpop.f32.mrb[126].mxu1  ;;  %v4000_v12 = vld [vmem:[#allocation2 + $0x211] sm:$0xff] }
 0x2d4   :  { %2306 = vst.msk [vmem:[#allocation2 + $0x228] sm:$0xff] %vm89_vm6, %v2287_v19  ;;  %v2243_v30 = vadd.f32 %v9128_v10, %v2242_v28  ;;  %v2244_v34 = vpop.f32.mrb[127].mxu1  ;;  %7019 = vmatmul.mubr.msk.f32.gmra.mrb[166].mxu1 %vm89_vm6, %v4000_v12  ;;  %v3266_v19 = vld [vmem:[#allocation2 + $0x122] sm:$0xff] }
 0x2d5   :  { %6926 = vmatmul.mubr.msk.f32.gmra.mrb[182].mxu0 %vm89_vm6, %v3249_v37  ;;  %v3923_v34 = vld [vmem:[#allocation2 + $0x138] sm:$0xff]  ;;  %v3924_v37 = vld [vmem:[#allocation2 + $0x140] sm:$0xff] }
 0x2d6   :  { %v2288_v2 = vmax.f32 %v2243_v30, 0.0  ;;  %6928 = vmatprep.mubr.msk.f32.mxu0 %vm89_vm6, %v3250_v21  ;;  %v3267_v30 = vld [vmem:[#allocation2 + $0x12a] sm:$0xff] }
 0x2d7   :  { %v2247_v38 = vpop.f32.mrb[128].mxu1  ;;  %v4001_v39 = vld [vmem:[#allocation2 + $0x219] sm:$0xff]  ;;  %v3925_v21 = vld [vmem:[#allocation2 + $0x148] sm:$0xff] }
 0x2d8   :  { %2307 = vst.msk [vmem:[#allocation2 + $0x230] sm:$0xff] %vm89_vm6, %v2288_v2  ;;  %v2248_v40 = vadd.f32 %v9128_v10, %v2247_v38  ;;  %v2249_v43 = vpop.f32.mrb[129].mxu1  ;;  %7021 = vmatprep.mubr.msk.f32.mxu1 %vm89_vm6, %v4001_v39  ;;  %v3926_v2 = vld [vmem:[#allocation2 + $0x150] sm:$0xff]  ;;  %v3927_v38 = vld [vmem:[#allocation2 + $0x158] sm:$0xff]  ;;  %v3928_v39 = vld [vmem:[#allocation2 + $0x160] sm:$0xff] }
 0x2d9   :  { %6929 = vmatmul.mubr.msk.f32.gmra.mrb[184].mxu0 %vm89_vm6, %v3251_v27  ;;  %v3931_v43 = vld [vmem:[#allocation2 + $0x178] sm:$0xff]  ;;  %v3933_v27 = vld [vmem:[#allocation2 + $0x188] sm:$0xff] }
 0x2da   :  { %v2289_v33 = vmax.f32 %v2248_v40, 0.0  ;;  %6931 = vmatprep.mubr.msk.f32.mxu0 %vm89_vm6, %v3252_v45  ;;  %v3929_v40 = vld [vmem:[#allocation2 + $0x168] sm:$0xff]  ;;  %v3935_v45 = vld [vmem:[#allocation2 + $0x198] sm:$0xff] }
 0x2db   :  { %v2252_v46 = vpop.f32.mrb[130].mxu1  ;;  %v4002_v24 = vld [vmem:[#allocation2 + $0x221] sm:$0xff] }
 0x2dc   :  { %2308 = vst.msk [vmem:[#allocation2 + $0x238] sm:$0xff] %vm89_vm6, %v2289_v33  ;;  %v2253_v26 = vadd.f32 %v9128_v10, %v2252_v46  ;;  %v2254_v3 = vpop.f32.mrb[131].mxu1  ;;  %7022 = vmatmul.mubr.msk.f32.gmra.mrb[168].mxu1 %vm89_vm6, %v4002_v24  ;;  %v3937_v33 = vld [vmem:[#allocation2 + $0x1a8] sm:$0xff]  ;;  %v3938_v46 = vld [vmem:[#allocation2 + $0x1b0] sm:$0xff]  ;;  %v3940_v24 = vld [vmem:[#allocation2 + $0x1c0] sm:$0xff] }
 0x2dd   :  { %6932 = vmatmul.mubr.msk.f32.gmra.mrb[186].mxu0 %vm89_vm6, %v3253_v29  ;;  %v3942_v3 = vld [vmem:[#allocation2 + $0x1d0] sm:$0xff]  ;;  %v3944_v29 = vld [vmem:[#allocation2 + $0x1e0] sm:$0xff] }
 0x2de   :  { %v2290_v51 = vmax.f32 %v2253_v26, 0.0  ;;  %6934 = vmatprep.mubr.msk.f32.mxu0 %vm89_vm6, %v3254_v49  ;;  %v3941_v26 = vld [vmem:[#allocation2 + $0x1c8] sm:$0xff] }
 0x2df   :  { %v2257_v50 = vpop.f32.mrb[132].mxu1  ;;  %v4003_v54 = vld [vmem:[#allocation2 + $0x229] sm:$0xff] }
 0x2e0   :  { %2309 = vst.msk [vmem:[#allocation2 + $0x240] sm:$0xff] %vm89_vm6, %v2290_v51  ;;  %v2258_v52 = vadd.f32 %v9128_v10, %v2257_v50  ;;  %v2259_v35 = vpop.f32.mrb[133].mxu1  ;;  %7024 = vmatprep.mubr.msk.f32.mxu1 %vm89_vm6, %v4003_v54  ;;  %v3945_v49 = vld [vmem:[#allocation2 + $0x1e8] sm:$0xff]  ;;  %v3946_v51 = vld [vmem:[#allocation2 + $0x1f0] sm:$0xff]  ;;  %v3947_v50 = vld [vmem:[#allocation2 + $0x1f8] sm:$0xff] }
 0x2e1   :  { %6935 = vmatmul.mubr.msk.f32.gmra.mrb[188].mxu0 %vm89_vm6, %v3255_v47  ;;  %v3948_v54 = vld [vmem:[#allocation2 + $0x200] sm:$0xff]  ;;  %v3950_v35 = vld [vmem:[#allocation2 + $0x210] sm:$0xff]  ;;  %v3951_v47 = vld [vmem:[#allocation2 + $0x218] sm:$0xff] }
 0x2e2   :  { %v2291_v57 = vmax.f32 %v2258_v52, 0.0  ;;  %6937 = vmatprep.mubr.msk.f32.mxu0 %vm89_vm6, %v3256_v55  ;;  %v3949_v52 = vld [vmem:[#allocation2 + $0x208] sm:$0xff]  ;;  %v3952_v55 = vld [vmem:[#allocation2 + $0x220] sm:$0xff] }
 0x2e3   :  { %v2262_v58 = vpop.f32.mrb[134].mxu1  ;;  %v4004_v1 = vld [vmem:[#allocation2 + $0x231] sm:$0xff] }
 0x2e4   :  { %2310 = vst.msk [vmem:[#allocation2 + $0x248] sm:$0xff] %vm89_vm6, %v2291_v57  ;;  %v2263_v61 = vadd.f32 %v9128_v10, %v2262_v58  ;;  %v2264_v56 = vpop.f32.mrb[135].mxu1  ;;  %7025 = vmatmul.mubr.msk.f32.gmra.mrb[170].mxu1 %vm89_vm6, %v4004_v1  ;;  %v3953_v57 = vld [vmem:[#allocation2 + $0x228] sm:$0xff]  ;;  %v3954_v58 = vld [vmem:[#allocation2 + $0x230] sm:$0xff]  ;;  %v3955_v1 = vld [vmem:[#allocation2 + $0x238] sm:$0xff] }
 0x2e5   :  { %6938 = vmatmul.mubr.msk.f32.gmra.mrb[190].mxu0 %vm89_vm6, %v3257_v41 }
 0x2e6   :  { %v2292_v8 = vmax.f32 %v2263_v61, 0.0  ;;  %6940 = vmatprep.mubr.msk.f32.mxu0 %vm89_vm6, %v3258_v63 }
 0x2e7   :  { %v2267_v9 = vpop.f32.mrb[136].mxu1  ;;  %v4005_v14 = vld [vmem:[#allocation2 + $0x239] sm:$0xff] }
 0x2e8   :  { %2311 = vst.msk [vmem:[#allocation2 + $0x250] sm:$0xff] %vm89_vm6, %v2292_v8  ;;  %v2268_v60 = vadd.f32 %v9128_v10, %v2267_v9  ;;  %v2269_v15 = vpop.f32.mrb[137].mxu1  ;;  %7027 = vmatprep.mubr.msk.f32.mxu1 %vm89_vm6, %v4005_v14  ;;  %v3956_v61 = vld [vmem:[#allocation2 + $0x240] sm:$0xff] }
 0x2e9   :  { %6941 = vmatmul.mubr.msk.f32.gmra.mrb[192].mxu0 %vm89_vm6, %v3259_v18  ;;  %v4761_v9 = vld [vmem:[#allocation2 + $0x13a] sm:$0xff]  ;;  %v4762_v14 = vld [vmem:[#allocation2 + $0x142] sm:$0xff]  ;;  %v4764_v15 = vld [vmem:[#allocation2 + $0x152] sm:$0xff] }
 0x2ea   :  { %v2293_v59 = vmax.f32 %v2268_v60, 0.0  ;;  %6943 = vmatprep.mubr.msk.f32.mxu0 %vm89_vm6, %v3260_v20  ;;  %v4763_v60 = vld [vmem:[#allocation2 + $0x14a] sm:$0xff]  ;;  %v4765_v18 = vld [vmem:[#allocation2 + $0x15a] sm:$0xff]  ;;  %v4766_v20 = vld [vmem:[#allocation2 + $0x162] sm:$0xff] }
 0x2eb   :  { %v2272_v31 = vpop.f32.mrb[138].mxu1  ;;  %v4006_v25 = vld [vmem:[#allocation2 + $0x241] sm:$0xff] }
 0x2ec   :  { %2312 = vst.msk [vmem:[#allocation2 + $0x258] sm:$0xff] %vm89_vm6, %v2293_v59  ;;  %v2273_v5 = vadd.f32 %v9128_v10, %v2272_v31  ;;  %v2274_v7 = vpop.f32.mrb[139].mxu1  ;;  %7028 = vmatmul.mubr.msk.f32.gmra.mrb[172].mxu1 %vm89_vm6, %v4006_v25  ;;  %v3957_v56 = vld [vmem:[#allocation2 + $0x248] sm:$0xff]  ;;  %v4768_v31 = vld [vmem:[#allocation2 + $0x172] sm:$0xff]  ;;  %v4769_v25 = vld [vmem:[#allocation2 + $0x17a] sm:$0xff] }
 0x2ed   :  { %6944 = vmatmul.mubr.msk.f32.gmra.mrb[194].mxu0 %vm89_vm6, %v3261_v62  ;;  %v4767_v59 = vld [vmem:[#allocation2 + $0x16a] sm:$0xff]  ;;  %v4772_v62 = vld [vmem:[#allocation2 + $0x192] sm:$0xff] }
 0x2ee   :  { %v2294_v6 = vmax.f32 %v2273_v5, 0.0  ;;  %6946 = vmatprep.mubr.msk.f32.mxu0 %vm89_vm6, %v3262_v13  ;;  %v4770_v5 = vld [vmem:[#allocation2 + $0x182] sm:$0xff]  ;;  %v4771_v7 = vld [vmem:[#allocation2 + $0x18a] sm:$0xff]  ;;  %v4773_v13 = vld [vmem:[#allocation2 + $0x19a] sm:$0xff] }
 0x2ef   :  { %v4007_v4 = vld [vmem:[#allocation2 + $0x249] sm:$0xff] }
 0x2f0   :  { %2313 = vst.msk [vmem:[#allocation2 + $0x260] sm:$0xff] %vm89_vm6, %v2294_v6  ;;  %7030 = vmatprep.mubr.msk.f32.mxu1 %vm89_vm6, %v4007_v4  ;;  %v3958_v41 = vld [vmem:[#allocation2 + $0x250] sm:$0xff]  ;;  %v4774_v6 = vld [vmem:[#allocation2 + $0x1a2] sm:$0xff] }
 0x2f1   :  { %6947 = vmatmul.mubr.msk.f32.gmra.mrb[196].mxu0 %vm89_vm6, %v3263_v36  ;;  %v4775_v4 = vld [vmem:[#allocation2 + $0x1aa] sm:$0xff]  ;;  %v4776_v36 = vld [vmem:[#allocation2 + $0x1b2] sm:$0xff] }
 0x2f2   :  { %6949 = vmatprep.mubr.msk.f32.mxu0 %vm89_vm6, %v3264_v22  ;;  %v4777_v22 = vld [vmem:[#allocation2 + $0x1ba] sm:$0xff] }
 0x2f3   :  { %v4008_v10 = vld [vmem:[#allocation2 + $0x251] sm:$0xff] }
 0x2f4   :  { %7031 = vmatmul.mubr.msk.f32.gmra.mrb[174].mxu1 %vm89_vm6, %v4008_v10  ;;  %v3959_v63 = vld [vmem:[#allocation2 + $0x258] sm:$0xff]  ;;  %v4778_v10 = vld [vmem:[#allocation2 + $0x1c2] sm:$0xff] }
 0x2f5   :  { %6950 = vmatmul.mubr.msk.f32.gmra.mrb[198].mxu0 %vm89_vm6, %v3265_v32  ;;  %v4779_v32 = vld [vmem:[#allocation2 + $0x1ca] sm:$0xff] }
 0x2f6   :  { %6952 = vmatprep.mubr.msk.f32.mxu0 %vm89_vm6, %v3266_v19  ;;  %v4780_v19 = vld [vmem:[#allocation2 + $0x1d2] sm:$0xff] }
 0x2f7   :  { %v4009_v28 = vld [vmem:[#allocation2 + $0x259] sm:$0xff]  ;;  %v4010_v12 = vld [vmem:[#allocation2 + $0x261] sm:$0xff] }
 0x2f8   :  { %7033 = vmatprep.mubr.msk.f32.mxu1 %vm89_vm6, %v4009_v28  ;;  %v3960_v8 = vld [vmem:[#allocation2 + $0x260] sm:$0xff] }
 0x2f9   :  { %6953 = vmatmul.mubr.msk.f32.gmra.mrb[200].mxu0 %vm89_vm6, %v3267_v30  ;;  %7034 = vmatmul.mubr.msk.f32.gmra.mrb[176].mxu1 %vm89_vm6, %v4010_v12  ;;  %v4781_v28 = vld [vmem:[#allocation2 + $0x1da] sm:$0xff]  ;;  %v4782_v12 = vld [vmem:[#allocation2 + $0x1e2] sm:$0xff]  ;;  %v4783_v30 = vld [vmem:[#allocation2 + $0x1ea] sm:$0xff] }
 0x2fa   :  { %7060 = vmatprep.mubr.msk.f32.mxu1 %vm89_vm6, %v3923_v34  ;;  %v4784_v34 = vld [vmem:[#allocation2 + $0x1f2] sm:$0xff] }
 0x2fd   :  { %7061 = vmatmul.mubr.msk.f32.vlgmr.msra.gmra.mrb[140].mxu1 %vm89_vm6, %v3924_v37  ;;  %v4785_v37 = vld [vmem:[#allocation2 + $0x1fa] sm:$0xff] }
 0x2fe   :  { %7063 = vmatprep.mubr.msk.f32.mxu1 %vm89_vm6, %v3925_v21  ;;  %7565 = vmatpush3.bf16.msra.mxu1 %v9073_v48  ;;  %v3930_v48 = vld [vmem:[#allocation2 + $0x170] sm:$0xff]  ;;  %v4786_v21 = vld [vmem:[#allocation2 + $0x202] sm:$0xff] }
 0x2ff   :  { %7567 = vmatprep.subr.bf16.mxu1 %v9146_v44 }
 0x301   :  { %7064 = vmatmul.mubr.msk.f32.gmra.mrb[142].mxu1 %vm89_vm6, %v3926_v2  ;;  %v4787_v2 = vld [vmem:[#allocation2 + $0x20a] sm:$0xff] }
 0x302   :  { %7066 = vmatprep.mubr.msk.f32.mxu1 %vm89_vm6, %v3927_v38  ;;  %7569 = vmatpush3.bf16.msra.mxu1 %v9146_v44  ;;  %v3932_v44 = vld [vmem:[#allocation2 + $0x180] sm:$0xff]  ;;  %v4788_v38 = vld [vmem:[#allocation2 + $0x212] sm:$0xff] }
 0x303   :  { %7571 = vmatprep.subr.bf16.mxu1 %v9160_v53 }
 0x305   :  { %7067 = vmatmul.mubr.msk.f32.gmra.mrb[144].mxu1 %vm89_vm6, %v3928_v39  ;;  %v4789_v39 = vld [vmem:[#allocation2 + $0x21a] sm:$0xff] }
 0x306   :  { %7069 = vmatprep.mubr.msk.f32.mxu1 %vm89_vm6, %v3929_v40  ;;  %7573 = vmatpush3.bf16.msra.mxu1 %v9160_v53  ;;  %v3934_v53 = vld [vmem:[#allocation2 + $0x190] sm:$0xff]  ;;  %v4790_v40 = vld [vmem:[#allocation2 + $0x222] sm:$0xff] }
 0x307   :  { %7575 = vmatprep.subr.bf16.mxu1 %v9175_v42 }
 0x309   :  { %7070 = vmatmul.mubr.msk.f32.gmra.mrb[146].mxu1 %vm89_vm6, %v3930_v48  ;;  %v4791_v48 = vld [vmem:[#allocation2 + $0x22a] sm:$0xff] }
 0x30a   :  { %7072 = vmatprep.mubr.msk.f32.mxu1 %vm89_vm6, %v3931_v43  ;;  %7577 = vmatpush3.bf16.msra.mxu1 %v9175_v42  ;;  %v3936_v42 = vld [vmem:[#allocation2 + $0x1a0] sm:$0xff] }
 0x30b   :  { %7579 = vmatprep.subr.bf16.mxu1 %v9191_v0  ;;  %v9470_v43 = vld [vmem:[%s9920_s6] ss:$0 sm:$0xff] }
 0x30d   :  { %7073 = vmatmul.mubr.msk.f32.gmra.mrb[148].mxu1 %vm89_vm6, %v3932_v44 }
 0x30e   :  { %7075 = vmatprep.mubr.msk.f32.mxu1 %vm89_vm6, %v3933_v27  ;;  %7581 = vmatpush3.bf16.msra.mxu1 %v9191_v0  ;;  %v3939_v0 = vld [vmem:[#allocation2 + $0x1b8] sm:$0xff] }
 0x30f   :  { %7583 = vmatprep.subr.bf16.mxu1 %v9208_v17  ;;  %v4792_v27 = vld [vmem:[#allocation2 + $0x232] sm:$0xff] }
 0x311   :  { %7076 = vmatmul.mubr.msk.f32.gmra.mrb[150].mxu1 %vm89_vm6, %v3934_v53 }
 0x312   :  { %7078 = vmatprep.mubr.msk.f32.mxu1 %vm89_vm6, %v3935_v45  ;;  %7585 = vmatpush3.bf16.msra.mxu1 %v9208_v17  ;;  %v3943_v17 = vld [vmem:[#allocation2 + $0x1d8] sm:$0xff] }
 0x315   :  { %7079 = vmatmul.mubr.msk.f32.gmra.mrb[152].mxu1 %vm89_vm6, %v3936_v42  ;;  %v4793_v42 = vld [vmem:[#allocation2 + $0x23a] sm:$0xff] }
 0x316   :  { %7081 = vmatprep.mubr.msk.f32.mxu1 %vm89_vm6, %v3937_v33 }
 0x319   :  { %7082 = vmatmul.mubr.msk.f32.gmra.mrb[154].mxu1 %vm89_vm6, %v3938_v46 }
 0x31a   :  { %7084 = vmatprep.mubr.msk.f32.mxu1 %vm89_vm6, %v3939_v0 }
 0x31d   :  { %7085 = vmatmul.mubr.msk.f32.gmra.mrb[156].mxu1 %vm89_vm6, %v3940_v24 }
 0x31e   :  { %7087 = vmatprep.mubr.msk.f32.mxu1 %vm89_vm6, %v3941_v26 }
 0x321   :  { %7088 = vmatmul.mubr.msk.f32.gmra.mrb[158].mxu1 %vm89_vm6, %v3942_v3  ;;  %v4794_v3 = vld [vmem:[#allocation2 + $0x242] sm:$0xff] }
 0x322   :  { %7090 = vmatprep.mubr.msk.f32.mxu1 %vm89_vm6, %v3943_v17 }
 0x325   :  { %7091 = vmatmul.mubr.msk.f32.gmra.mrb[160].mxu1 %vm89_vm6, %v3944_v29 }
 0x326   :  { %7093 = vmatprep.mubr.msk.f32.mxu1 %vm89_vm6, %v3945_v49  ;;  %v4795_v49 = vld [vmem:[#allocation2 + $0x24a] sm:$0xff] }
 0x329   :  { %7094 = vmatmul.mubr.msk.f32.gmra.mrb[162].mxu1 %vm89_vm6, %v3946_v51 }
 0x32a   :  { %7096 = vmatprep.mubr.msk.f32.mxu1 %vm89_vm6, %v3947_v50 }
 0x32d   :  { %7097 = vmatmul.mubr.msk.f32.gmra.mrb[164].mxu1 %vm89_vm6, %v3948_v54 }
 0x32e   :  { %7099 = vmatprep.mubr.msk.f32.mxu1 %vm89_vm6, %v3949_v52 }
 0x331   :  { %7100 = vmatmul.mubr.msk.f32.gmra.mrb[166].mxu1 %vm89_vm6, %v3950_v35 }
 0x332   :  { %7102 = vmatprep.mubr.msk.f32.mxu1 %vm89_vm6, %v3951_v47  ;;  %v4796_v47 = vld [vmem:[#allocation2 + $0x252] sm:$0xff] }
 0x335   :  { %7103 = vmatmul.mubr.msk.f32.gmra.mrb[168].mxu1 %vm89_vm6, %v3952_v55 }
 0x336   :  { %7105 = vmatprep.mubr.msk.f32.mxu1 %vm89_vm6, %v3953_v57 }
 0x339   :  { %7106 = vmatmul.mubr.msk.f32.gmra.mrb[170].mxu1 %vm89_vm6, %v3954_v58  ;;  %v4797_v58 = vld [vmem:[#allocation2 + $0x25a] sm:$0xff] }
 0x33a   :  { %7108 = vmatprep.mubr.msk.f32.mxu1 %vm89_vm6, %v3955_v1 }
 0x33d   :  { %7109 = vmatmul.mubr.msk.f32.gmra.mrb[172].mxu1 %vm89_vm6, %v3956_v61 }
 0x33e   :  { %7111 = vmatprep.mubr.msk.f32.mxu1 %vm89_vm6, %v3957_v56 }
 0x341   :  { %7112 = vmatmul.mubr.msk.f32.gmra.mrb[174].mxu1 %vm89_vm6, %v3958_v41 }
 0x342   :  { %7114 = vmatprep.mubr.msk.f32.mxu1 %vm89_vm6, %v3959_v63 }
 0x345   :  { %7115 = vmatmul.mubr.msk.f32.gmra.mrb[176].mxu1 %vm89_vm6, %v3960_v8 }
 0x346   :  { %7141 = vmatprep.mubr.msk.f32.mxu1 %vm89_vm6, %v4761_v9 }
 0x349   :  { %7142 = vmatmul.mubr.msk.f32.vlgmr.msra.gmra.mrb[140].mxu1 %vm89_vm6, %v4762_v14 }
 0x34a   :  { %7144 = vmatprep.mubr.msk.f32.mxu1 %vm89_vm6, %v4763_v60  ;;  %v4798_v60 = vld [vmem:[#allocation2 + $0x262] sm:$0xff] }
 0x34d   :  { %7145 = vmatmul.mubr.msk.f32.gmra.mrb[142].mxu1 %vm89_vm6, %v4764_v15 }
 0x34e   :  { %7147 = vmatprep.mubr.msk.f32.mxu1 %vm89_vm6, %v4765_v18 }
 0x351   :  { %7148 = vmatmul.mubr.msk.f32.gmra.mrb[144].mxu1 %vm89_vm6, %v4766_v20 }
 0x352   :  { %7150 = vmatprep.mubr.msk.f32.mxu1 %vm89_vm6, %v4767_v59 }
 0x355   :  { %7151 = vmatmul.mubr.msk.f32.gmra.mrb[146].mxu1 %vm89_vm6, %v4768_v31 }
 0x356   :  { %7153 = vmatprep.mubr.msk.f32.mxu1 %vm89_vm6, %v4769_v25 }
 0x359   :  { %7154 = vmatmul.mubr.msk.f32.gmra.mrb[148].mxu1 %vm89_vm6, %v4770_v5 }
 0x35a   :  { %7156 = vmatprep.mubr.msk.f32.mxu1 %vm89_vm6, %v4771_v7 }
 0x35d   :  { %7157 = vmatmul.mubr.msk.f32.gmra.mrb[150].mxu1 %vm89_vm6, %v4772_v62 }
 0x35e   :  { %7159 = vmatprep.mubr.msk.f32.mxu1 %vm89_vm6, %v4773_v13 }
 0x361   :  { %7160 = vmatmul.mubr.msk.f32.gmra.mrb[152].mxu1 %vm89_vm6, %v4774_v6 }
 0x362   :  { %7162 = vmatprep.mubr.msk.f32.mxu1 %vm89_vm6, %v4775_v4 }
 0x365   :  { %7163 = vmatmul.mubr.msk.f32.gmra.mrb[154].mxu1 %vm89_vm6, %v4776_v36 }
 0x366   :  { %7165 = vmatprep.mubr.msk.f32.mxu1 %vm89_vm6, %v4777_v22 }
 0x369   :  { %7166 = vmatmul.mubr.msk.f32.gmra.mrb[156].mxu1 %vm89_vm6, %v4778_v10 }
 0x36a   :  { %7168 = vmatprep.mubr.msk.f32.mxu1 %vm89_vm6, %v4779_v32 }
 0x36d   :  { %7169 = vmatmul.mubr.msk.f32.gmra.mrb[158].mxu1 %vm89_vm6, %v4780_v19 }
 0x36e   :  { %7171 = vmatprep.mubr.msk.f32.mxu1 %vm89_vm6, %v4781_v28 }
 0x371   :  { %7172 = vmatmul.mubr.msk.f32.gmra.mrb[160].mxu1 %vm89_vm6, %v4782_v12 }
 0x372   :  { %7174 = vmatprep.mubr.msk.f32.mxu1 %vm89_vm6, %v4783_v30 }
 0x375   :  { %7175 = vmatmul.mubr.msk.f32.gmra.mrb[162].mxu1 %vm89_vm6, %v4784_v34 }
 0x376   :  { %7177 = vmatprep.mubr.msk.f32.mxu1 %vm89_vm6, %v4785_v37 }
 0x379   :  { %7178 = vmatmul.mubr.msk.f32.gmra.mrb[164].mxu1 %vm89_vm6, %v4786_v21 }
 0x37a   :  { %7180 = vmatprep.mubr.msk.f32.mxu1 %vm89_vm6, %v4787_v2 }
 0x37d   :  { %7181 = vmatmul.mubr.msk.f32.gmra.mrb[166].mxu1 %vm89_vm6, %v4788_v38 }
 0x37e   :  { %7183 = vmatprep.mubr.msk.f32.mxu1 %vm89_vm6, %v4789_v39 }
 0x381   :  { %7184 = vmatmul.mubr.msk.f32.gmra.mrb[168].mxu1 %vm89_vm6, %v4790_v40 }
 0x382   :  { %7186 = vmatprep.mubr.msk.f32.mxu1 %vm89_vm6, %v4791_v48 }
 0x384   :  { %v6900_v44 = vpop.f32.mrb[164].mxu0 }
 0x385   :  { %v3695_v53 = vadd.f32 %v6900_v44, %v9470_v43  ;;  %v3461_v45 = vpop.f32.mrb[165].mxu0  ;;  %7187 = vmatmul.mubr.msk.f32.gmra.mrb[170].mxu1 %vm89_vm6, %v4792_v27 }
 0x386   :  { %v3694_v33 = vadd.f32 %v9470_v43, %v3461_v45  ;;  %7189 = vmatprep.mubr.msk.f32.mxu1 %vm89_vm6, %v4793_v42 }
 0x387   :  { %v3771_v46 = vmul.f32 %v3695_v53, %v3695_v53  ;;  %3886 = vst.msk [vmem:[#allocation3 + $0x8] sm:$0xff] %vm3884_vm7, %v3695_v53 }
 0x388   :  { %v3770_v0 = vmul.f32 %v3694_v33, %v3694_v33  ;;  %v3810_v24 = vadd.f32 %v3695_v53, %v3694_v33  ;;  %3885 = vst.msk [vmem:[#allocation3] sm:$0xff] %vm3884_vm7, %v3694_v33  ;;  %v6903_v26 = vpop.f32.mrb[166].mxu0 }
 0x389   :  { %v3697_v17 = vadd.f32 %v6903_v26, %v9470_v43  ;;  %v3471_v29 = vpop.f32.mrb[167].mxu0  ;;  %7190 = vmatmul.mubr.msk.f32.gmra.mrb[172].mxu1 %vm89_vm6, %v4794_v3 }
 0x38a   :  { %v3811_v51 = vadd.f32 %v3771_v46, %v3770_v0  ;;  %v3696_v50 = vadd.f32 %v9470_v43, %v3471_v29  ;;  %7192 = vmatprep.mubr.msk.f32.mxu1 %vm89_vm6, %v4795_v49 }
 0x38b   :  { %3888 = vst.msk [vmem:[#allocation3 + $0x18] sm:$0xff] %vm3884_vm7, %v3697_v17  ;;  %v3773_v1 = vmul.f32 %v3697_v17, %v3697_v17 }
 0x38c   :  { %v3772_v54 = vmul.f32 %v3696_v50, %v3696_v50  ;;  %v3812_v52 = vadd.f32 %v3810_v24, %v3696_v50  ;;  %3887 = vst.msk [vmem:[#allocation3 + $0x10] sm:$0xff] %vm3884_vm7, %v3696_v50  ;;  %v6906_v35 = vpop.f32.mrb[168].mxu0 }
 0x38d   :  { %v3699_v55 = vadd.f32 %v6906_v35, %v9470_v43  ;;  %v3481_v57 = vpop.f32.mrb[169].mxu0  ;;  %7193 = vmatmul.mubr.msk.f32.gmra.mrb[174].mxu1 %vm89_vm6, %v4796_v47 }
 0x38e   :  { %v3813_v61 = vadd.f32 %v3811_v51, %v3772_v54  ;;  %v3814_v56 = vadd.f32 %v3812_v52, %v3697_v17  ;;  %v3698_v41 = vadd.f32 %v9470_v43, %v3481_v57  ;;  %7195 = vmatprep.mubr.msk.f32.mxu1 %vm89_vm6, %v4797_v58 }
 0x38f   :  { %3890 = vst.msk [vmem:[#allocation3 + $0x28] sm:$0xff] %vm3884_vm7, %v3699_v55  ;;  %v3775_v20 = vmul.f32 %v3699_v55, %v3699_v55 }
 0x390   :  { %v3815_v63 = vadd.f32 %v3813_v61, %v3773_v1  ;;  %v3774_v8 = vmul.f32 %v3698_v41, %v3698_v41  ;;  %v3816_v9 = vadd.f32 %v3814_v56, %v3698_v41  ;;  %3889 = vst.msk [vmem:[#allocation3 + $0x20] sm:$0xff] %vm3884_vm7, %v3698_v41  ;;  %v6909_v14 = vpop.f32.mrb[170].mxu0 }
 0x391   :  { %v3701_v15 = vadd.f32 %v6909_v14, %v9470_v43  ;;  %v3491_v18 = vpop.f32.mrb[171].mxu0  ;;  %7196 = vmatmul.mubr.msk.f32.gmra.mrb[176].mxu1 %vm89_vm6, %v4798_v60 }
 0x392   :  { %v3817_v59 = vadd.f32 %v3815_v63, %v3774_v8  ;;  %v3818_v31 = vadd.f32 %v3816_v9, %v3699_v55  ;;  %v3700_v25 = vadd.f32 %v9470_v43, %v3491_v18 }
 0x393   :  { %3892 = vst.msk [vmem:[#allocation3 + $0x38] sm:$0xff] %vm3884_vm7, %v3701_v15  ;;  %v3777_v36 = vmul.f32 %v3701_v15, %v3701_v15 }
 0x394   :  { %v3819_v5 = vadd.f32 %v3817_v59, %v3775_v20  ;;  %v3776_v7 = vmul.f32 %v3700_v25, %v3700_v25  ;;  %v3820_v62 = vadd.f32 %v3818_v31, %v3700_v25  ;;  %3891 = vst.msk [vmem:[#allocation3 + $0x30] sm:$0xff] %vm3884_vm7, %v3700_v25  ;;  %v6912_v13 = vpop.f32.mrb[172].mxu0 }
 0x395   :  { %v3703_v6 = vadd.f32 %v6912_v13, %v9470_v43  ;;  %v3501_v4 = vpop.f32.mrb[173].mxu0 }
 0x396   :  { %v3821_v22 = vadd.f32 %v3819_v5, %v3776_v7  ;;  %v3822_v10 = vadd.f32 %v3820_v62, %v3701_v15  ;;  %v3702_v32 = vadd.f32 %v9470_v43, %v3501_v4 }
 0x397   :  { %3894 = vst.msk [vmem:[#allocation3 + $0x48] sm:$0xff] %vm3884_vm7, %v3703_v6  ;;  %v3779_v21 = vmul.f32 %v3703_v6, %v3703_v6 }
 0x398   :  { %v3823_v19 = vadd.f32 %v3821_v22, %v3777_v36  ;;  %v3778_v28 = vmul.f32 %v3702_v32, %v3702_v32  ;;  %v3824_v12 = vadd.f32 %v3822_v10, %v3702_v32  ;;  %3893 = vst.msk [vmem:[#allocation3 + $0x40] sm:$0xff] %vm3884_vm7, %v3702_v32  ;;  %v6915_v30 = vpop.f32.mrb[174].mxu0 }
 0x399   :  { %v3705_v34 = vadd.f32 %v6915_v30, %v9470_v43  ;;  %v3511_v37 = vpop.f32.mrb[175].mxu0 }
 0x39a   :  { %v3825_v2 = vadd.f32 %v3823_v19, %v3778_v28  ;;  %v3826_v38 = vadd.f32 %v3824_v12, %v3703_v6  ;;  %v3704_v39 = vadd.f32 %v9470_v43, %v3511_v37 }
 0x39b   :  { %3896 = vst.msk [vmem:[#allocation3 + $0x58] sm:$0xff] %vm3884_vm7, %v3705_v34  ;;  %v3781_v42 = vmul.f32 %v3705_v34, %v3705_v34 }
 0x39c   :  { %v3827_v40 = vadd.f32 %v3825_v2, %v3779_v21  ;;  %v3780_v48 = vmul.f32 %v3704_v39, %v3704_v39  ;;  %v3828_v44 = vadd.f32 %v3826_v38, %v3704_v39  ;;  %3895 = vst.msk [vmem:[#allocation3 + $0x50] sm:$0xff] %vm3884_vm7, %v3704_v39  ;;  %v6918_v27 = vpop.f32.mrb[176].mxu0 }
 0x39d   :  { %v3707_v53 = vadd.f32 %v6918_v27, %v9470_v43  ;;  %v3521_v45 = vpop.f32.mrb[177].mxu0 }
 0x39e   :  { %v3829_v33 = vadd.f32 %v3827_v40, %v3780_v48  ;;  %v3830_v46 = vadd.f32 %v3828_v44, %v3705_v34  ;;  %v3706_v0 = vadd.f32 %v9470_v43, %v3521_v45 }
 0x39f   :  { %3898 = vst.msk [vmem:[#allocation3 + $0x68] sm:$0xff] %vm3884_vm7, %v3707_v53  ;;  %v3783_v51 = vmul.f32 %v3707_v53, %v3707_v53 }
 0x3a0   :  { %v3831_v24 = vadd.f32 %v3829_v33, %v3781_v42  ;;  %v3782_v26 = vmul.f32 %v3706_v0, %v3706_v0  ;;  %v3832_v3 = vadd.f32 %v3830_v46, %v3706_v0  ;;  %3897 = vst.msk [vmem:[#allocation3 + $0x60] sm:$0xff] %vm3884_vm7, %v3706_v0  ;;  %v6921_v17 = vpop.f32.mrb[178].mxu0 }
 0x3a1   :  { %v3709_v29 = vadd.f32 %v6921_v17, %v9470_v43  ;;  %v3531_v49 = vpop.f32.mrb[179].mxu0 }
 0x3a2   :  { %v3833_v50 = vadd.f32 %v3831_v24, %v3782_v26  ;;  %v3834_v54 = vadd.f32 %v3832_v3, %v3707_v53  ;;  %v3708_v52 = vadd.f32 %v9470_v43, %v3531_v49 }
 0x3a3   :  { %3900 = vst.msk [vmem:[#allocation3 + $0x78] sm:$0xff] %vm3884_vm7, %v3709_v29  ;;  %v3785_v61 = vmul.f32 %v3709_v29, %v3709_v29 }
 0x3a4   :  { %v3835_v35 = vadd.f32 %v3833_v50, %v3783_v51  ;;  %v3784_v47 = vmul.f32 %v3708_v52, %v3708_v52  ;;  %v3836_v55 = vadd.f32 %v3834_v54, %v3708_v52  ;;  %3899 = vst.msk [vmem:[#allocation3 + $0x70] sm:$0xff] %vm3884_vm7, %v3708_v52  ;;  %v6924_v57 = vpop.f32.mrb[180].mxu0 }
 0x3a5   :  { %v3711_v58 = vadd.f32 %v6924_v57, %v9470_v43  ;;  %v3541_v1 = vpop.f32.mrb[181].mxu0 }
 0x3a6   :  { %v3837_v56 = vadd.f32 %v3835_v35, %v3784_v47  ;;  %v3838_v41 = vadd.f32 %v3836_v55, %v3709_v29  ;;  %v3710_v63 = vadd.f32 %v9470_v43, %v3541_v1 }
 0x3a7   :  { %3902 = vst.msk [vmem:[#allocation3 + $0x88] sm:$0xff] %vm3884_vm7, %v3711_v58  ;;  %v3787_v20 = vmul.f32 %v3711_v58, %v3711_v58 }
 0x3a8   :  { %v3839_v8 = vadd.f32 %v3837_v56, %v3785_v61  ;;  %v3786_v9 = vmul.f32 %v3710_v63, %v3710_v63  ;;  %v3840_v14 = vadd.f32 %v3838_v41, %v3710_v63  ;;  %3901 = vst.msk [vmem:[#allocation3 + $0x80] sm:$0xff] %vm3884_vm7, %v3710_v63  ;;  %v6927_v60 = vpop.f32.mrb[182].mxu0 }
 0x3a9   :  { %v3713_v15 = vadd.f32 %v6927_v60, %v9470_v43  ;;  %v3551_v18 = vpop.f32.mrb[183].mxu0 }
 0x3aa   :  { %v3841_v59 = vadd.f32 %v3839_v8, %v3786_v9  ;;  %v3712_v31 = vadd.f32 %v9470_v43, %v3551_v18  ;;  %v3842_v25 = vadd.f32 %v3840_v14, %v3711_v58 }
 0x3ab   :  { %3904 = vst.msk [vmem:[#allocation3 + $0x98] sm:$0xff] %vm3884_vm7, %v3713_v15  ;;  %v3789_v36 = vmul.f32 %v3713_v15, %v3713_v15 }
 0x3ac   :  { %v3788_v5 = vmul.f32 %v3712_v31, %v3712_v31  ;;  %v3843_v7 = vadd.f32 %v3841_v59, %v3787_v20  ;;  %v3844_v62 = vadd.f32 %v3842_v25, %v3712_v31  ;;  %3903 = vst.msk [vmem:[#allocation3 + $0x90] sm:$0xff] %vm3884_vm7, %v3712_v31  ;;  %v6930_v13 = vpop.f32.mrb[184].mxu0 }
 0x3ad   :  { %v3715_v6 = vadd.f32 %v6930_v13, %v9470_v43  ;;  %v3561_v4 = vpop.f32.mrb[185].mxu0 }
 0x3ae   :  { %v3845_v22 = vadd.f32 %v3843_v7, %v3788_v5  ;;  %v3714_v10 = vadd.f32 %v9470_v43, %v3561_v4  ;;  %v3846_v32 = vadd.f32 %v3844_v62, %v3713_v15 }
 0x3af   :  { %3906 = vst.msk [vmem:[#allocation3 + $0xa8] sm:$0xff] %vm3884_vm7, %v3715_v6  ;;  %v3791_v21 = vmul.f32 %v3715_v6, %v3715_v6 }
 0x3b0   :  { %v3790_v19 = vmul.f32 %v3714_v10, %v3714_v10  ;;  %v3847_v28 = vadd.f32 %v3845_v22, %v3789_v36  ;;  %v3848_v12 = vadd.f32 %v3846_v32, %v3714_v10  ;;  %3905 = vst.msk [vmem:[#allocation3 + $0xa0] sm:$0xff] %vm3884_vm7, %v3714_v10  ;;  %v6933_v30 = vpop.f32.mrb[186].mxu0 }
 0x3b1   :  { %v3717_v34 = vadd.f32 %v6933_v30, %v9470_v43  ;;  %v3571_v37 = vpop.f32.mrb[187].mxu0 }
 0x3b2   :  { %v3849_v2 = vadd.f32 %v3847_v28, %v3790_v19  ;;  %v3716_v38 = vadd.f32 %v9470_v43, %v3571_v37  ;;  %v3850_v39 = vadd.f32 %v3848_v12, %v3715_v6 }
 0x3b3   :  { %3908 = vst.msk [vmem:[#allocation3 + $0xb8] sm:$0xff] %vm3884_vm7, %v3717_v34  ;;  %v3793_v42 = vmul.f32 %v3717_v34, %v3717_v34 }
 0x3b4   :  { %v3792_v40 = vmul.f32 %v3716_v38, %v3716_v38  ;;  %v3851_v48 = vadd.f32 %v3849_v2, %v3791_v21  ;;  %v3852_v44 = vadd.f32 %v3850_v39, %v3716_v38  ;;  %3907 = vst.msk [vmem:[#allocation3 + $0xb0] sm:$0xff] %vm3884_vm7, %v3716_v38  ;;  %v6936_v27 = vpop.f32.mrb[188].mxu0 }
 0x3b5   :  { %v3719_v53 = vadd.f32 %v6936_v27, %v9470_v43  ;;  %v3581_v45 = vpop.f32.mrb[189].mxu0 }
 0x3b6   :  { %v3853_v33 = vadd.f32 %v3851_v48, %v3792_v40  ;;  %v3718_v46 = vadd.f32 %v9470_v43, %v3581_v45  ;;  %v3854_v0 = vadd.f32 %v3852_v44, %v3717_v34  ;;  %v9548_v34 = vadd.s32 296, %v8360_v11 }
 0x3b7   :  { %3910 = vst.msk [vmem:[#allocation3 + $0xc8] sm:$0xff] %vm3884_vm7, %v3719_v53  ;;  %v3795_v51 = vmul.f32 %v3719_v53, %v3719_v53 }
 0x3b8   :  { %v3794_v24 = vmul.f32 %v3718_v46, %v3718_v46  ;;  %v3855_v26 = vadd.f32 %v3853_v33, %v3793_v42  ;;  %v3856_v3 = vadd.f32 %v3854_v0, %v3718_v46  ;;  %3909 = vst.msk [vmem:[#allocation3 + $0xc0] sm:$0xff] %vm3884_vm7, %v3718_v46  ;;  %v6939_v17 = vpop.f32.mrb[190].mxu0  ;;  %vm2390_vm8 = vcmp.lt.s32.totalorder %v9548_v34, 300 }
 0x3b9   :  { %v3721_v29 = vadd.f32 %v6939_v17, %v9470_v43  ;;  %v3591_v49 = vpop.f32.mrb[191].mxu0 }
 0x3ba   :  { %v3857_v50 = vadd.f32 %v3855_v26, %v3794_v24  ;;  %v3720_v54 = vadd.f32 %v9470_v43, %v3591_v49  ;;  %v3858_v52 = vadd.f32 %v3856_v3, %v3719_v53 }
 0x3bb   :  { %3912 = vst.msk [vmem:[#allocation3 + $0xd8] sm:$0xff] %vm3884_vm7, %v3721_v29  ;;  %v3797_v61 = vmul.f32 %v3721_v29, %v3721_v29 }
 0x3bc   :  { %v3796_v35 = vmul.f32 %v3720_v54, %v3720_v54  ;;  %v3859_v47 = vadd.f32 %v3857_v50, %v3795_v51  ;;  %v3860_v55 = vadd.f32 %v3858_v52, %v3720_v54  ;;  %3911 = vst.msk [vmem:[#allocation3 + $0xd0] sm:$0xff] %vm3884_vm7, %v3720_v54  ;;  %v6942_v57 = vpop.f32.mrb[192].mxu0 }
 0x3bd   :  { %v3723_v58 = vadd.f32 %v6942_v57, %v9470_v43  ;;  %v3601_v1 = vpop.f32.mrb[193].mxu0 }
 0x3be   :  { %v3861_v56 = vadd.f32 %v3859_v47, %v3796_v35  ;;  %v3722_v41 = vadd.f32 %v9470_v43, %v3601_v1  ;;  %v3862_v63 = vadd.f32 %v3860_v55, %v3721_v29 }
 0x3bf   :  { %3914 = vst.msk [vmem:[#allocation3 + $0xe8] sm:$0xff] %vm3884_vm7, %v3723_v58  ;;  %v3799_v20 = vmul.f32 %v3723_v58, %v3723_v58 }
 0x3c0   :  { %v3798_v8 = vmul.f32 %v3722_v41, %v3722_v41  ;;  %v3863_v9 = vadd.f32 %v3861_v56, %v3797_v61  ;;  %v3864_v14 = vadd.f32 %v3862_v63, %v3722_v41  ;;  %3913 = vst.msk [vmem:[#allocation3 + $0xe0] sm:$0xff] %vm3884_vm7, %v3722_v41  ;;  %v6945_v60 = vpop.f32.mrb[194].mxu0 }
 0x3c1   :  { %v3725_v15 = vadd.f32 %v6945_v60, %v9470_v43  ;;  %v3611_v18 = vpop.f32.mrb[195].mxu0 }
 0x3c2   :  { %v3865_v59 = vadd.f32 %v3863_v9, %v3798_v8  ;;  %v3724_v31 = vadd.f32 %v9470_v43, %v3611_v18  ;;  %v3866_v25 = vadd.f32 %v3864_v14, %v3723_v58 }
 0x3c3   :  { %3916 = vst.msk [vmem:[#allocation3 + $0xf8] sm:$0xff] %vm3884_vm7, %v3725_v15  ;;  %v3801_v36 = vmul.f32 %v3725_v15, %v3725_v15 }
 0x3c4   :  { %v3800_v5 = vmul.f32 %v3724_v31, %v3724_v31  ;;  %v3867_v7 = vadd.f32 %v3865_v59, %v3799_v20  ;;  %v3868_v62 = vadd.f32 %v3866_v25, %v3724_v31  ;;  %3915 = vst.msk [vmem:[#allocation3 + $0xf0] sm:$0xff] %vm3884_vm7, %v3724_v31  ;;  %v6948_v13 = vpop.f32.mrb[196].mxu0 }
 0x3c5   :  { %v3727_v6 = vadd.f32 %v6948_v13, %v9470_v43  ;;  %v3621_v4 = vpop.f32.mrb[197].mxu0 }
 0x3c6   :  { %v3869_v22 = vadd.f32 %v3867_v7, %v3800_v5  ;;  %v3726_v10 = vadd.f32 %v9470_v43, %v3621_v4  ;;  %v3870_v32 = vadd.f32 %v3868_v62, %v3725_v15 }
 0x3c7   :  { %3918 = vst.msk [vmem:[#allocation3 + $0x108] sm:$0xff] %vm3884_vm7, %v3727_v6  ;;  %v3803_v2 = vmul.f32 %v3727_v6, %v3727_v6 }
 0x3c8   :  { %v3802_v19 = vmul.f32 %v3726_v10, %v3726_v10  ;;  %v3871_v28 = vadd.f32 %v3869_v22, %v3801_v36  ;;  %v3872_v12 = vadd.f32 %v3870_v32, %v3726_v10  ;;  %3917 = vst.msk [vmem:[#allocation3 + $0x100] sm:$0xff] %vm3884_vm7, %v3726_v10  ;;  %v6951_v30 = vpop.f32.mrb[198].mxu0 }
 0x3c9   :  { %v3729_v37 = vadd.f32 %v6951_v30, %v9470_v43  ;;  %v3631_v21 = vpop.f32.mrb[199].mxu0 }
 0x3ca   :  { %v3873_v38 = vadd.f32 %v3871_v28, %v3802_v19  ;;  %v3728_v39 = vadd.f32 %v9470_v43, %v3631_v21  ;;  %v3874_v40 = vadd.f32 %v3872_v12, %v3727_v6 }
 0x3cb   :  { %3920 = vst.msk [vmem:[#allocation3 + $0x118] sm:$0xff] %vm3884_vm7, %v3729_v37  ;;  %v3805_v33 = vmul.f32 %v3729_v37, %v3729_v37 }
 0x3cc   :  { %v3804_v48 = vmul.f32 %v3728_v39, %v3728_v39  ;;  %v3875_v44 = vadd.f32 %v3873_v38, %v3803_v2  ;;  %v3876_v27 = vadd.f32 %v3874_v40, %v3728_v39  ;;  %3919 = vst.msk [vmem:[#allocation3 + $0x110] sm:$0xff] %vm3884_vm7, %v3728_v39  ;;  %v6954_v53 = vpop.f32.mrb[200].mxu0 }
 0x3cd   :  { %v3731_v45 = vadd.f32 %v6954_v53, %v9470_v43  ;;  %v3641_v42 = vpop.f32.mrb[201].mxu0 }
 0x3ce   :  { %v3877_v46 = vadd.f32 %v3875_v44, %v3804_v48  ;;  %v3730_v0 = vadd.f32 %v9470_v43, %v3641_v42  ;;  %v3878_v24 = vadd.f32 %v3876_v27, %v3729_v37 }
 0x3cf   :  { %v3769_v26 = vsel %vm2390_vm8, %v3731_v45, 0.0  ;;  %3922 = vst.msk [vmem:[#allocation3 + $0x128] sm:$0xff] %vm3884_vm7, %v3731_v45 }
 0x3d0   :  { %v3806_v3 = vmul.f32 %v3730_v0, %v3730_v0  ;;  %v3879_v17 = vadd.f32 %v3877_v46, %v3805_v33  ;;  %v3880_v29 = vadd.f32 %v3878_v24, %v3730_v0  ;;  %3921 = vst.msk [vmem:[#allocation3 + $0x120] sm:$0xff] %vm3884_vm7, %v3730_v0  ;;  %v3807_v49 = vmul.f32 %v3769_v26, %v3769_v26 }
 0x3d2   :  { %v3881_v51 = vadd.f32 %v3879_v17, %v3806_v3  ;;  %v3882_v50 = vadd.f32 %v3880_v29, %v3769_v26 }
 0x3d4   :  { %v3883_v54 = vadd.f32 %v3881_v51, %v3807_v49 }
 0x41c   :  { %v7143_v52 = vpop.f32.mrb[140].mxu1 }
 0x41d   :  { %v5219_v35 = vadd.f32 %v7143_v52, %v9470_v43  ;;  %v4991_v47 = vpop.f32.mrb[141].mxu1 }
 0x41e   :  { %v5218_v55 = vadd.f32 %v9470_v43, %v4991_v47 }
 0x41f   :  { %5409 = vst.msk [vmem:[#allocation3 + $0x138] sm:$0xff] %vm3884_vm7, %v5219_v35  ;;  %v5295_v41 = vmul.f32 %v5219_v35, %v5219_v35 }
 0x420   :  { %v5294_v57 = vmul.f32 %v5218_v55, %v5218_v55  ;;  %v5332_v58 = vadd.f32 %v5218_v55, %v3882_v50  ;;  %5408 = vst.msk [vmem:[#allocation3 + $0x130] sm:$0xff] %vm3884_vm7, %v5218_v55  ;;  %v7146_v1 = vpop.f32.mrb[142].mxu1 }
 0x421   :  { %v5221_v61 = vadd.f32 %v7146_v1, %v9470_v43  ;;  %v5001_v56 = vpop.f32.mrb[143].mxu1 }
 0x422   :  { %v5333_v63 = vadd.f32 %v5294_v57, %v3883_v54  ;;  %v5220_v8 = vadd.f32 %v9470_v43, %v5001_v56  ;;  %v5334_v9 = vadd.f32 %v5332_v58, %v5219_v35 }
 0x423   :  { %5411 = vst.msk [vmem:[#allocation3 + $0x148] sm:$0xff] %vm3884_vm7, %v5221_v61  ;;  %v5297_v31 = vmul.f32 %v5221_v61, %v5221_v61 }
 0x424   :  { %v5296_v14 = vmul.f32 %v5220_v8, %v5220_v8  ;;  %v5335_v60 = vadd.f32 %v5333_v63, %v5295_v41  ;;  %v5336_v15 = vadd.f32 %v5334_v9, %v5220_v8  ;;  %5410 = vst.msk [vmem:[#allocation3 + $0x140] sm:$0xff] %vm3884_vm7, %v5220_v8  ;;  %v7149_v18 = vpop.f32.mrb[144].mxu1 }
 0x425   :  { %v5223_v20 = vadd.f32 %v7149_v18, %v9470_v43  ;;  %v5011_v59 = vpop.f32.mrb[145].mxu1 }
 0x426   :  { %v5337_v25 = vadd.f32 %v5335_v60, %v5296_v14  ;;  %v5222_v5 = vadd.f32 %v9470_v43, %v5011_v59  ;;  %v5338_v7 = vadd.f32 %v5336_v15, %v5221_v61 }
 0x427   :  { %5413 = vst.msk [vmem:[#allocation3 + $0x158] sm:$0xff] %vm3884_vm7, %v5223_v20  ;;  %v5299_v10 = vmul.f32 %v5223_v20, %v5223_v20 }
 0x428   :  { %v5298_v62 = vmul.f32 %v5222_v5, %v5222_v5  ;;  %v5339_v13 = vadd.f32 %v5337_v25, %v5297_v31  ;;  %v5340_v6 = vadd.f32 %v5338_v7, %v5222_v5  ;;  %5412 = vst.msk [vmem:[#allocation3 + $0x150] sm:$0xff] %vm3884_vm7, %v5222_v5  ;;  %v7152_v4 = vpop.f32.mrb[146].mxu1 }
 0x429   :  { %v5225_v36 = vadd.f32 %v7152_v4, %v9470_v43  ;;  %v5021_v22 = vpop.f32.mrb[147].mxu1 }
 0x42a   :  { %v5341_v32 = vadd.f32 %v5339_v13, %v5298_v62  ;;  %v5224_v19 = vadd.f32 %v9470_v43, %v5021_v22  ;;  %v5342_v28 = vadd.f32 %v5340_v6, %v5223_v20 }
 0x42b   :  { %5415 = vst.msk [vmem:[#allocation3 + $0x168] sm:$0xff] %vm3884_vm7, %v5225_v36  ;;  %v5301_v39 = vmul.f32 %v5225_v36, %v5225_v36 }
 0x42c   :  { %v5300_v12 = vmul.f32 %v5224_v19, %v5224_v19  ;;  %v5343_v30 = vadd.f32 %v5341_v32, %v5299_v10  ;;  %v5344_v37 = vadd.f32 %v5342_v28, %v5224_v19  ;;  %5414 = vst.msk [vmem:[#allocation3 + $0x160] sm:$0xff] %vm3884_vm7, %v5224_v19  ;;  %v7155_v21 = vpop.f32.mrb[148].mxu1 }
 0x42d   :  { %v5227_v2 = vadd.f32 %v7155_v21, %v9470_v43  ;;  %v5031_v38 = vpop.f32.mrb[149].mxu1 }
 0x42e   :  { %v5345_v40 = vadd.f32 %v5343_v30, %v5300_v12  ;;  %v5226_v48 = vadd.f32 %v9470_v43, %v5031_v38  ;;  %v5346_v44 = vadd.f32 %v5344_v37, %v5225_v36 }
 0x42f   :  { %5417 = vst.msk [vmem:[#allocation3 + $0x178] sm:$0xff] %vm3884_vm7, %v5227_v2  ;;  %v5303_v0 = vmul.f32 %v5227_v2, %v5227_v2 }
 0x430   :  { %v5302_v27 = vmul.f32 %v5226_v48, %v5226_v48  ;;  %v5347_v53 = vadd.f32 %v5345_v40, %v5301_v39  ;;  %v5348_v45 = vadd.f32 %v5346_v44, %v5226_v48  ;;  %5416 = vst.msk [vmem:[#allocation3 + $0x170] sm:$0xff] %vm3884_vm7, %v5226_v48  ;;  %v7158_v42 = vpop.f32.mrb[150].mxu1 }
 0x431   :  { %v5229_v33 = vadd.f32 %v7158_v42, %v9470_v43  ;;  %v5041_v46 = vpop.f32.mrb[151].mxu1 }
 0x432   :  { %v5349_v24 = vadd.f32 %v5347_v53, %v5302_v27  ;;  %v5228_v26 = vadd.f32 %v9470_v43, %v5041_v46  ;;  %v5350_v3 = vadd.f32 %v5348_v45, %v5227_v2 }
 0x433   :  { %5419 = vst.msk [vmem:[#allocation3 + $0x188] sm:$0xff] %vm3884_vm7, %v5229_v33  ;;  %v5305_v52 = vmul.f32 %v5229_v33, %v5229_v33 }
 0x434   :  { %v5304_v17 = vmul.f32 %v5228_v26, %v5228_v26  ;;  %v5351_v29 = vadd.f32 %v5349_v24, %v5303_v0  ;;  %v5352_v49 = vadd.f32 %v5350_v3, %v5228_v26  ;;  %5418 = vst.msk [vmem:[#allocation3 + $0x180] sm:$0xff] %vm3884_vm7, %v5228_v26  ;;  %v7161_v51 = vpop.f32.mrb[152].mxu1 }
 0x435   :  { %v5231_v50 = vadd.f32 %v7161_v51, %v9470_v43  ;;  %v5051_v54 = vpop.f32.mrb[153].mxu1 }
 0x436   :  { %v5353_v35 = vadd.f32 %v5351_v29, %v5304_v17  ;;  %v5230_v47 = vadd.f32 %v9470_v43, %v5051_v54  ;;  %v5354_v55 = vadd.f32 %v5352_v49, %v5229_v33 }
 0x437   :  { %5421 = vst.msk [vmem:[#allocation3 + $0x198] sm:$0xff] %vm3884_vm7, %v5231_v50  ;;  %v5307_v63 = vmul.f32 %v5231_v50, %v5231_v50 }
 0x438   :  { %v5306_v57 = vmul.f32 %v5230_v47, %v5230_v47  ;;  %v5355_v58 = vadd.f32 %v5353_v35, %v5305_v52  ;;  %v5356_v1 = vadd.f32 %v5354_v55, %v5230_v47  ;;  %5420 = vst.msk [vmem:[#allocation3 + $0x190] sm:$0xff] %vm3884_vm7, %v5230_v47  ;;  %v7164_v61 = vpop.f32.mrb[154].mxu1 }
 0x439   :  { %v5233_v56 = vadd.f32 %v7164_v61, %v9470_v43  ;;  %v5061_v41 = vpop.f32.mrb[155].mxu1 }
 0x43a   :  { %v5357_v8 = vadd.f32 %v5355_v58, %v5306_v57  ;;  %v5232_v9 = vadd.f32 %v9470_v43, %v5061_v41  ;;  %v5358_v14 = vadd.f32 %v5356_v1, %v5231_v50 }
 0x43b   :  { %5423 = vst.msk [vmem:[#allocation3 + $0x1a8] sm:$0xff] %vm3884_vm7, %v5233_v56  ;;  %v5309_v25 = vmul.f32 %v5233_v56, %v5233_v56 }
 0x43c   :  { %v5308_v60 = vmul.f32 %v5232_v9, %v5232_v9  ;;  %v5359_v15 = vadd.f32 %v5357_v8, %v5307_v63  ;;  %v5360_v18 = vadd.f32 %v5358_v14, %v5232_v9  ;;  %5422 = vst.msk [vmem:[#allocation3 + $0x1a0] sm:$0xff] %vm3884_vm7, %v5232_v9  ;;  %v7167_v20 = vpop.f32.mrb[156].mxu1 }
 0x43d   :  { %v5235_v59 = vadd.f32 %v7167_v20, %v9470_v43  ;;  %v5071_v31 = vpop.f32.mrb[157].mxu1 }
 0x43e   :  { %v5361_v5 = vadd.f32 %v5359_v15, %v5308_v60  ;;  %v5234_v7 = vadd.f32 %v9470_v43, %v5071_v31  ;;  %v5362_v62 = vadd.f32 %v5360_v18, %v5233_v56 }
 0x43f   :  { %5425 = vst.msk [vmem:[#allocation3 + $0x1b8] sm:$0xff] %vm3884_vm7, %v5235_v59  ;;  %v5311_v32 = vmul.f32 %v5235_v59, %v5235_v59 }
 0x440   :  { %v5310_v13 = vmul.f32 %v5234_v7, %v5234_v7  ;;  %v5363_v6 = vadd.f32 %v5361_v5, %v5309_v25  ;;  %v5364_v4 = vadd.f32 %v5362_v62, %v5234_v7  ;;  %5424 = vst.msk [vmem:[#allocation3 + $0x1b0] sm:$0xff] %vm3884_vm7, %v5234_v7  ;;  %v7170_v36 = vpop.f32.mrb[158].mxu1 }
 0x441   :  { %v5237_v22 = vadd.f32 %v7170_v36, %v9470_v43  ;;  %v5081_v10 = vpop.f32.mrb[159].mxu1 }
 0x442   :  { %v5365_v19 = vadd.f32 %v5363_v6, %v5310_v13  ;;  %v5236_v28 = vadd.f32 %v9470_v43, %v5081_v10  ;;  %v5366_v12 = vadd.f32 %v5364_v4, %v5235_v59 }
 0x443   :  { %5427 = vst.msk [vmem:[#allocation3 + $0x1c8] sm:$0xff] %vm3884_vm7, %v5237_v22  ;;  %v5313_v40 = vmul.f32 %v5237_v22, %v5237_v22 }
 0x444   :  { %v5312_v30 = vmul.f32 %v5236_v28, %v5236_v28  ;;  %v5367_v37 = vadd.f32 %v5365_v19, %v5311_v32  ;;  %v5368_v21 = vadd.f32 %v5366_v12, %v5236_v28  ;;  %5426 = vst.msk [vmem:[#allocation3 + $0x1c0] sm:$0xff] %vm3884_vm7, %v5236_v28  ;;  %v7173_v2 = vpop.f32.mrb[160].mxu1 }
 0x445   :  { %v5239_v38 = vadd.f32 %v7173_v2, %v9470_v43  ;;  %v5091_v39 = vpop.f32.mrb[161].mxu1 }
 0x446   :  { %v5369_v48 = vadd.f32 %v5367_v37, %v5312_v30  ;;  %v5238_v44 = vadd.f32 %v9470_v43, %v5091_v39  ;;  %v5370_v27 = vadd.f32 %v5368_v21, %v5237_v22 }
 0x447   :  { %5429 = vst.msk [vmem:[#allocation3 + $0x1d8] sm:$0xff] %vm3884_vm7, %v5239_v38  ;;  %v5315_v24 = vmul.f32 %v5239_v38, %v5239_v38 }
 0x448   :  { %v5314_v53 = vmul.f32 %v5238_v44, %v5238_v44  ;;  %v5371_v45 = vadd.f32 %v5369_v48, %v5313_v40  ;;  %v5372_v42 = vadd.f32 %v5370_v27, %v5238_v44  ;;  %5428 = vst.msk [vmem:[#allocation3 + $0x1d0] sm:$0xff] %vm3884_vm7, %v5238_v44  ;;  %v7176_v33 = vpop.f32.mrb[162].mxu1 }
 0x449   :  { %v5241_v46 = vadd.f32 %v7176_v33, %v9470_v43  ;;  %v5101_v0 = vpop.f32.mrb[163].mxu1 }
 0x44a   :  { %v5373_v26 = vadd.f32 %v5371_v45, %v5314_v53  ;;  %v5240_v3 = vadd.f32 %v9470_v43, %v5101_v0  ;;  %v5374_v17 = vadd.f32 %v5372_v42, %v5239_v38 }
 0x44b   :  { %5431 = vst.msk [vmem:[#allocation3 + $0x1e8] sm:$0xff] %vm3884_vm7, %v5241_v46  ;;  %v5317_v35 = vmul.f32 %v5241_v46, %v5241_v46 }
 0x44c   :  { %v5316_v29 = vmul.f32 %v5240_v3, %v5240_v3  ;;  %v5375_v49 = vadd.f32 %v5373_v26, %v5315_v24  ;;  %v5376_v51 = vadd.f32 %v5374_v17, %v5240_v3  ;;  %5430 = vst.msk [vmem:[#allocation3 + $0x1e0] sm:$0xff] %vm3884_vm7, %v5240_v3  ;;  %v7179_v50 = vpop.f32.mrb[164].mxu1 }
 0x44d   :  { %v5243_v54 = vadd.f32 %v7179_v50, %v9470_v43  ;;  %v5111_v52 = vpop.f32.mrb[165].mxu1 }
 0x44e   :  { %v5377_v47 = vadd.f32 %v5375_v49, %v5316_v29  ;;  %v5242_v55 = vadd.f32 %v9470_v43, %v5111_v52  ;;  %v5378_v57 = vadd.f32 %v5376_v51, %v5241_v46 }
 0x44f   :  { %5433 = vst.msk [vmem:[#allocation3 + $0x1f8] sm:$0xff] %vm3884_vm7, %v5243_v54  ;;  %v5319_v8 = vmul.f32 %v5243_v54, %v5243_v54 }
 0x450   :  { %v5318_v58 = vmul.f32 %v5242_v55, %v5242_v55  ;;  %v5379_v1 = vadd.f32 %v5377_v47, %v5317_v35  ;;  %v5380_v61 = vadd.f32 %v5378_v57, %v5242_v55  ;;  %5432 = vst.msk [vmem:[#allocation3 + $0x1f0] sm:$0xff] %vm3884_vm7, %v5242_v55  ;;  %v7182_v56 = vpop.f32.mrb[166].mxu1 }
 0x451   :  { %v5245_v41 = vadd.f32 %v7182_v56, %v9470_v43  ;;  %v5121_v63 = vpop.f32.mrb[167].mxu1 }
 0x452   :  { %v5381_v9 = vadd.f32 %v5379_v1, %v5318_v58  ;;  %v5244_v14 = vadd.f32 %v9470_v43, %v5121_v63  ;;  %v5382_v60 = vadd.f32 %v5380_v61, %v5243_v54 }
 0x453   :  { %5435 = vst.msk [vmem:[#allocation3 + $0x208] sm:$0xff] %vm3884_vm7, %v5245_v41  ;;  %v5321_v5 = vmul.f32 %v5245_v41, %v5245_v41 }
 0x454   :  { %v5320_v15 = vmul.f32 %v5244_v14, %v5244_v14  ;;  %v5383_v18 = vadd.f32 %v5381_v9, %v5319_v8  ;;  %v5384_v20 = vadd.f32 %v5382_v60, %v5244_v14  ;;  %5434 = vst.msk [vmem:[#allocation3 + $0x200] sm:$0xff] %vm3884_vm7, %v5244_v14  ;;  %v7185_v59 = vpop.f32.mrb[168].mxu1 }
 0x455   :  { %v5247_v31 = vadd.f32 %v7185_v59, %v9470_v43  ;;  %v5131_v25 = vpop.f32.mrb[169].mxu1 }
 0x456   :  { %v5385_v7 = vadd.f32 %v5383_v18, %v5320_v15  ;;  %v5246_v62 = vadd.f32 %v9470_v43, %v5131_v25  ;;  %v5386_v13 = vadd.f32 %v5384_v20, %v5245_v41 }
 0x457   :  { %5437 = vst.msk [vmem:[#allocation3 + $0x218] sm:$0xff] %vm3884_vm7, %v5247_v31  ;;  %v5323_v19 = vmul.f32 %v5247_v31, %v5247_v31 }
 0x458   :  { %v5322_v6 = vmul.f32 %v5246_v62, %v5246_v62  ;;  %v5387_v4 = vadd.f32 %v5385_v7, %v5321_v5  ;;  %v5388_v36 = vadd.f32 %v5386_v13, %v5246_v62  ;;  %5436 = vst.msk [vmem:[#allocation3 + $0x210] sm:$0xff] %vm3884_vm7, %v5246_v62  ;;  %v7188_v22 = vpop.f32.mrb[170].mxu1 }
 0x459   :  { %v5249_v10 = vadd.f32 %v7188_v22, %v9470_v43  ;;  %v5141_v32 = vpop.f32.mrb[171].mxu1 }
 0x45a   :  { %v5389_v28 = vadd.f32 %v5387_v4, %v5322_v6  ;;  %v5248_v12 = vadd.f32 %v9470_v43, %v5141_v32  ;;  %v5390_v30 = vadd.f32 %v5388_v36, %v5247_v31 }
 0x45b   :  { %5439 = vst.msk [vmem:[#allocation3 + $0x228] sm:$0xff] %vm3884_vm7, %v5249_v10  ;;  %v5325_v48 = vmul.f32 %v5249_v10, %v5249_v10 }
 0x45c   :  { %v5324_v37 = vmul.f32 %v5248_v12, %v5248_v12  ;;  %v5391_v21 = vadd.f32 %v5389_v28, %v5323_v19  ;;  %v5392_v2 = vadd.f32 %v5390_v30, %v5248_v12  ;;  %5438 = vst.msk [vmem:[#allocation3 + $0x220] sm:$0xff] %vm3884_vm7, %v5248_v12  ;;  %v7191_v38 = vpop.f32.mrb[172].mxu1  ;;  %v5464_v28 = vld [vmem:[%s9922_s7] sm:$0x1] }
 0x45d   :  { %v5251_v39 = vadd.f32 %v7191_v38, %v9470_v43  ;;  %v5151_v40 = vpop.f32.mrb[173].mxu1  ;;  %v5729_v38 = vld [vmem:[#allocation3 + $0x138] sm:$0xff] }
 0x45e   :  { %v5393_v44 = vadd.f32 %v5391_v21, %v5324_v37  ;;  %v5250_v27 = vadd.f32 %v9470_v43, %v5151_v40  ;;  %v5394_v53 = vadd.f32 %v5392_v2, %v5249_v10  ;;  %v16_v10 = vstv %s9921_s10  ;;  %v5468_v37 = vld [vmem:[%s9923_s8] sm:$0x1]  ;;  %v5730_v40 = vld [vmem:[#allocation3 + $0x140] sm:$0xff] }
 0x45f   :  { %5441 = vst.msk [vmem:[#allocation3 + $0x238] sm:$0xff] %vm3884_vm7, %v5251_v39  ;;  %v5327_v26 = vmul.f32 %v5251_v39, %v5251_v39  ;;  %17 = vst [vmem:[#allocation4] sm:$0x1] %v16_v10 }
 0x460   :  { %v5326_v45 = vmul.f32 %v5250_v27, %v5250_v27  ;;  %v5395_v42 = vadd.f32 %v5393_v44, %v5325_v48  ;;  %v5396_v33 = vadd.f32 %v5394_v53, %v5250_v27  ;;  %5440 = vst.msk [vmem:[#allocation3 + $0x230] sm:$0xff] %vm3884_vm7, %v5250_v27  ;;  %v7194_v46 = vpop.f32.mrb[174].mxu1  ;;  %v5731_v48 = vld [vmem:[#allocation3 + $0x148] sm:$0xff]  ;;  %v5732_v27 = vld [vmem:[#allocation3 + $0x150] sm:$0xff]  ;;  %v5733_v53 = vld [vmem:[#allocation3 + $0x158] sm:$0xff] }
 0x461   :  { %v5253_v0 = vadd.f32 %v7194_v46, %v9470_v43  ;;  %v5161_v24 = vpop.f32.mrb[175].mxu1 }
 0x462   :  { %v5397_v3 = vadd.f32 %v5395_v42, %v5326_v45  ;;  %v5252_v17 = vadd.f32 %v9470_v43, %v5161_v24  ;;  %v5398_v29 = vadd.f32 %v5396_v33, %v5251_v39  ;;  %v5728_v39 = vld [vmem:[#allocation3 + $0x130] sm:$0xff]  ;;  %v5734_v45 = vld [vmem:[#allocation3 + $0x160] sm:$0xff]  ;;  %v5735_v24 = vld [vmem:[#allocation3 + $0x168] sm:$0xff] }
 0x463   :  { %5443 = vst.msk [vmem:[#allocation3 + $0x248] sm:$0xff] %vm3884_vm7, %v5253_v0  ;;  %v5329_v47 = vmul.f32 %v5253_v0, %v5253_v0 }
 0x464   :  { %v5328_v49 = vmul.f32 %v5252_v17, %v5252_v17  ;;  %v5399_v51 = vadd.f32 %v5397_v3, %v5327_v26  ;;  %v5400_v50 = vadd.f32 %v5398_v29, %v5252_v17  ;;  %5442 = vst.msk [vmem:[#allocation3 + $0x240] sm:$0xff] %vm3884_vm7, %v5252_v17  ;;  %v7197_v54 = vpop.f32.mrb[176].mxu1  ;;  %v5736_v26 = vld [vmem:[#allocation3 + $0x170] sm:$0xff]  ;;  %v5737_v3 = vld [vmem:[#allocation3 + $0x178] sm:$0xff] }
 0x465   :  { %v5255_v52 = vadd.f32 %v7197_v54, %v9470_v43  ;;  %v5171_v35 = vpop.f32.mrb[177].mxu1  ;;  %v5738_v54 = vld [vmem:[#allocation3 + $0x180] sm:$0xff] }
 0x466   :  { %v5401_v55 = vadd.f32 %v5399_v51, %v5328_v49  ;;  %v5254_v57 = vadd.f32 %v9470_v43, %v5171_v35  ;;  %v5402_v58 = vadd.f32 %v5400_v50, %v5253_v0  ;;  %v5473_v0 = vld [vmem:[#allocation3] sm:$0xff]  ;;  %v5740_v35 = vld [vmem:[#allocation3 + $0x190] sm:$0xf] }
 0x467   :  { %v5293_v1 = vsel %vm2390_vm8, %v5255_v52, 0.0  ;;  %5445 = vst.msk [vmem:[#allocation3 + $0x258] sm:$0xff] %vm3884_vm7, %v5255_v52  ;;  %v5739_v52 = vld [vmem:[#allocation3 + $0x188] sm:$0xff] }
 0x468   :  { %v5330_v61 = vmul.f32 %v5254_v57, %v5254_v57  ;;  %v5403_v56 = vadd.f32 %v5401_v55, %v5329_v47  ;;  %v5404_v41 = vadd.f32 %v5402_v58, %v5254_v57  ;;  %5444 = vst.msk [vmem:[#allocation3 + $0x250] sm:$0xff] %vm3884_vm7, %v5254_v57  ;;  %v5331_v63 = vmul.f32 %v5293_v1, %v5293_v1 }
 0x46a   :  { %v5405_v8 = vadd.f32 %v5403_v56, %v5330_v61  ;;  %v5406_v9 = vadd.f32 %v5404_v41, %v5293_v1 }
 0x46c   :  { %v5407_v14 = vadd.f32 %v5405_v8, %v5331_v63  ;;  %v5446_v60 = vsel %vm3884_vm7, %v5406_v9, 0.0 }
 0x46d   :  { %v5447_v15 = vrot.slane %v5446_v60, 4 }
 0x46e   :  { %v5453_v43 = vsel %vm3884_vm7, %v5407_v14, 0.0 }
 0x46f   :  { %v5448_v18 = vadd.f32 %v5447_v15, %v5446_v60  ;;  %v5454_v20 = vrot.slane %v5453_v43, 4 }
 0x471   :  { %v5449_v34 = vrot.slane %v5448_v18, 2  ;;  %v5455_v59 = vadd.f32 %v5454_v20, %v5453_v43 }
 0x473   :  { %v5450_v31 = vadd.f32 %v5449_v34, %v5448_v18  ;;  %v5456_v25 = vrot.slane %v5455_v59, 2 }
 0x475   :  { %v5451_v5 = vrot.slane %v5450_v31, 1  ;;  %v5457_v7 = vadd.f32 %v5456_v25, %v5455_v59 }
 0x477   :  { %v5452_v62 = vadd.f32 %v5451_v5, %v5450_v31  ;;  %v5458_v13 = vrot.slane %v5457_v7, 1 }
 0x479   :  { %v5459_v6 = vadd.f32 %v5458_v13, %v5457_v7  ;;  %v5460_v4 = vmul.f32 0.0016666667, %v5452_v62 }
 0x47b   :  { %v5461_v36 = vmul.f32 0.0016666667, %v5459_v6  ;;  %v5462_v22 = vmul.f32 %v5460_v4, %v5460_v4 }
 0x47d   :  { %v5463_v32 = vsub.f32 %v5461_v36, %v5462_v22 }
 0x47f   :  { %v5465_v19 = vadd.f32 1e-05, %v5463_v32 }
 0x481   :  { %7773 = vrsqrt.f32 %v5465_v19 }
 0x48b   :  { %v7774_v12 = vpop.eup %7773 }
 0x48c   :  { %v5467_v30 = vmul.f32 %v7774_v12, %v5464_v28 }
 0x48e   :  { %v5469_v21 = vmul.f32 %v5467_v30, %v5460_v4  ;;  %v9651_v2 = vrot.slane %v5467_v30, %v8368_v16 }
 0x490   :  { %v5470_v44 = vsub.f32 %v5468_v37, %v5469_v21  ;;  %v5741_v42 = vmul.f32 %v5728_v39, %v9651_v2  ;;  %v5742_v33 = vmul.f32 %v5729_v38, %v9651_v2  ;;  %v5743_v46 = vmul.f32 %v5730_v40, %v9651_v2  ;;  %v5474_v39 = vld [vmem:[#allocation3 + $0x8] sm:$0xff]  ;;  %v5475_v40 = vld [vmem:[#allocation3 + $0x10] sm:$0xff] }
 0x491   :  { %v5744_v17 = vmul.f32 %v5731_v48, %v9651_v2  ;;  %v5745_v29 = vmul.f32 %v5732_v27, %v9651_v2  ;;  %v5746_v49 = vmul.f32 %v5733_v53, %v9651_v2  ;;  %v5747_v51 = vmul.f32 %v5734_v45, %v9651_v2  ;;  %v5476_v27 = vld [vmem:[#allocation3 + $0x18] sm:$0xff]  ;;  %v5477_v53 = vld [vmem:[#allocation3 + $0x20] sm:$0xff]  ;;  %v5478_v45 = vld [vmem:[#allocation3 + $0x28] sm:$0xff] }
 0x492   :  { %v9661_v50 = vrot.slane %v5470_v44, %v8368_v16  ;;  %v5748_v47 = vmul.f32 %v5735_v24, %v9651_v2  ;;  %v5749_v55 = vmul.f32 %v5736_v26, %v9651_v2  ;;  %v5750_v57 = vmul.f32 %v5737_v3, %v9651_v2  ;;  %v5480_v24 = vld [vmem:[#allocation3 + $0x38] sm:$0xff]  ;;  %v5481_v26 = vld [vmem:[#allocation3 + $0x40] sm:$0xff] }
 0x493   :  { %v5751_v58 = vmul.f32 %v5738_v54, %v9651_v2  ;;  %v5752_v1 = vmul.f32 %v5739_v52, %v9651_v2  ;;  %v5753_v61 = vmul.f32 %v5740_v35, %v9651_v2  ;;  %v5492_v56 = vmul.f32 %v9651_v2, %v5473_v0  ;;  %v5479_v0 = vld [vmem:[#allocation3 + $0x30] sm:$0xff]  ;;  %v5484_v52 = vld [vmem:[#allocation3 + $0x58] sm:$0xff] }
 0x494   :  { %v5754_v16 = vadd.f32 %v5741_v42, %v9661_v50  ;;  %v5755_v41 = vadd.f32 %v5742_v33, %v9661_v50  ;;  %v5756_v63 = vadd.f32 %v5743_v46, %v9661_v50  ;;  %v5757_v8 = vadd.f32 %v5744_v17, %v9661_v50  ;;  %v5483_v54 = vld [vmem:[#allocation3 + $0x50] sm:$0xff] }
 0x495   :  { %v5758_v9 = vadd.f32 %v5745_v29, %v9661_v50  ;;  %v5759_v14 = vadd.f32 %v5746_v49, %v9661_v50  ;;  %v5760_v60 = vadd.f32 %v5747_v51, %v9661_v50  ;;  %v5761_v15 = vadd.f32 %v5748_v47, %v9661_v50  ;;  %v5482_v51 = vld [vmem:[#allocation3 + $0x48] sm:$0xff] }
 0x496   :  { %v5762_v43 = vadd.f32 %v5749_v55, %v9661_v50  ;;  %v5763_v18 = vadd.f32 %v5750_v57, %v9661_v50  ;;  %v5764_v20 = vadd.f32 %v5751_v58, %v9661_v50  ;;  %v5765_v34 = vadd.f32 %v5752_v1, %v9661_v50  ;;  %v5485_v58 = vld [vmem:[#allocation3 + $0x60] sm:$0xf] }
 0x497   :  { %v5766_v59 = vadd.f32 %v5753_v61, %v9661_v50  ;;  %v5767_v31 = vsel %vm3884_vm7, %v5754_v16, -inf  ;;  %v5768_v25 = vsel %vm3884_vm7, %v5755_v41, -inf  ;;  %v5769_v5 = vsel %vm3884_vm7, %v5756_v63, -inf }
 0x498   :  { %v5770_v7 = vsel %vm3884_vm7, %v5757_v8, -inf  ;;  %v5771_v62 = vsel %vm3884_vm7, %v5758_v9, -inf  ;;  %v5773_v13 = vsel %vm3884_vm7, %v5759_v14, -inf  ;;  %v5775_v6 = vsel %vm3884_vm7, %v5760_v60, -inf }
 0x499   :  { %v5772_v4 = vmax.f32 %v5767_v31, %v5771_v62  ;;  %v5774_v36 = vmax.f32 %v5768_v25, %v5773_v13  ;;  %v5776_v22 = vmax.f32 %v5769_v5, %v5775_v6  ;;  %v5777_v10 = vsel %vm3884_vm7, %v5761_v15, -inf }
 0x49a   :  { %v5778_v32 = vmax.f32 %v5770_v7, %v5777_v10  ;;  %v5779_v19 = vsel %vm3884_vm7, %v5762_v43, -inf  ;;  %v5781_v28 = vsel %vm3884_vm7, %v5763_v18, -inf  ;;  %v5783_v12 = vsel %vm3884_vm7, %v5764_v20, -inf }
 0x49b   :  { %v5780_v30 = vmax.f32 %v5772_v4, %v5779_v19  ;;  %v5782_v37 = vmax.f32 %v5774_v36, %v5781_v28  ;;  %v5784_v21 = vmax.f32 %v5776_v22, %v5783_v12  ;;  %v5785_v38 = vsel %vm3884_vm7, %v5765_v34, -inf }
 0x49c   :  { %v5786_v48 = vmax.f32 %v5778_v32, %v5785_v38  ;;  %v5787_v44 = vsel %vm5544_vm9, %v5766_v59, -inf  ;;  %v5493_v42 = vmul.f32 %v9651_v2, %v5474_v39  ;;  %v5494_v33 = vmul.f32 %v9651_v2, %v5475_v40 }
 0x49d   :  { %v5788_v46 = vmax.f32 %v5780_v30, %v5787_v44  ;;  %v5495_v3 = vmul.f32 %v9651_v2, %v5476_v27  ;;  %v5496_v17 = vmul.f32 %v9651_v2, %v5477_v53  ;;  %v5497_v29 = vmul.f32 %v9651_v2, %v5478_v45 }
 0x49e   :  { %v5790_v49 = vmax.f32 %v5784_v21, %v5786_v48  ;;  %v5498_v35 = vmul.f32 %v9651_v2, %v5479_v0  ;;  %v5499_v47 = vmul.f32 %v9651_v2, %v5480_v24  ;;  %v5500_v55 = vmul.f32 %v9651_v2, %v5481_v26  ;;  %v5805_v0 = vld [vmem:[#allocation3 + $0x1a4] sm:$0xff]  ;;  %v9737_v24 = vld [vmem:[%s9924_s9] sm:$0x7] }
 0x49f   :  { %v5789_v57 = vmax.f32 %v5788_v46, %v5782_v37  ;;  %v5501_v1 = vmul.f32 %v9651_v2, %v5482_v51  ;;  %v5502_v61 = vmul.f32 %v9651_v2, %v5483_v54  ;;  %v5503_v16 = vmul.f32 %v9651_v2, %v5484_v52  ;;  %v5804_v46 = vld [vmem:[#allocation3 + $0x19c] sm:$0xff] }
 0x4a0   :  { %v5504_v41 = vmul.f32 %v9651_v2, %v5485_v58  ;;  %v5511_v63 = vadd.f32 %v9661_v50, %v5492_v56  ;;  %v5512_v8 = vadd.f32 %v9661_v50, %v5493_v42  ;;  %v5513_v9 = vadd.f32 %v9661_v50, %v5494_v33  ;;  %v5803_v33 = vld [vmem:[#allocation3 + $0x194] sm:$0xff] }
 0x4a1   :  { %v5791_v14 = vmax.f32 %v5789_v57, %v5790_v49  ;;  %v5514_v60 = vadd.f32 %v9661_v50, %v5495_v3  ;;  %v5515_v15 = vadd.f32 %v9661_v50, %v5496_v17  ;;  %v5516_v43 = vadd.f32 %v9661_v50, %v5497_v29  ;;  %v5806_v3 = vld [vmem:[#allocation3 + $0x1ac] sm:$0xff]  ;;  %v5807_v17 = vld [vmem:[#allocation3 + $0x1b4] sm:$0xff] }
 0x4a2   :  { %v5517_v18 = vadd.f32 %v9661_v50, %v5498_v35  ;;  %v5518_v20 = vadd.f32 %v9661_v50, %v5499_v47  ;;  %v5519_v34 = vadd.f32 %v9661_v50, %v5500_v55  ;;  %v5520_v59 = vadd.f32 %v9661_v50, %v5501_v1  ;;  %v5808_v35 = vld [vmem:[#allocation3 + $0x1bc] sm:$0xff]  ;;  %v5809_v47 = vld [vmem:[#allocation3 + $0x1c4] sm:$0xff]  ;;  %v5810_v55 = vld [vmem:[#allocation3 + $0x1cc] sm:$0xff] }
 0x4a3   :  { %v5792_v56 = vrot.slane %v5791_v14, 4  ;;  %v5521_v31 = vadd.f32 %v9661_v50, %v5502_v61  ;;  %v5522_v25 = vadd.f32 %v9661_v50, %v5503_v16  ;;  %v5523_v5 = vadd.f32 %v9661_v50, %v5504_v41  ;;  %v5811_v61 = vld [vmem:[#allocation3 + $0x1d4] sm:$0xff]  ;;  %v5812_v16 = vld [vmem:[#allocation3 + $0x1dc] sm:$0xff]  ;;  %v5813_v41 = vld [vmem:[#allocation3 + $0x1e4] sm:$0xff] }
 0x4a4   :  { %v5524_v7 = vsel %vm3884_vm7, %v5511_v63, -inf  ;;  %v5525_v62 = vsel %vm3884_vm7, %v5512_v8, -inf  ;;  %v5526_v13 = vsel %vm3884_vm7, %v5513_v9, -inf  ;;  %v5527_v6 = vsel %vm3884_vm7, %v5514_v60, -inf  ;;  %v5814_v60 = vld [vmem:[#allocation3 + $0x1ec] sm:$0xff] }
 0x4a5   :  { %v5793_v4 = vmax.f32 %v5791_v14, %v5792_v56  ;;  %v5528_v36 = vsel %vm3884_vm7, %v5515_v15, -inf  ;;  %v5530_v22 = vsel %vm3884_vm7, %v5516_v43, -inf  ;;  %v5532_v10 = vsel %vm3884_vm7, %v5517_v18, -inf  ;;  %v5815_v15 = vld [vmem:[#allocation3 + $0x1f4] sm:$0xf] }
 0x4a6   :  { %v5529_v32 = vmax.f32 %v5524_v7, %v5528_v36  ;;  %v5531_v19 = vmax.f32 %v5525_v62, %v5530_v22  ;;  %v5533_v28 = vmax.f32 %v5526_v13, %v5532_v10  ;;  %v5534_v12 = vsel %vm3884_vm7, %v5518_v20, -inf }
 0x4a7   :  { %v5794_v30 = vrot.slane %v5793_v4, 2  ;;  %v5535_v37 = vmax.f32 %v5527_v6, %v5534_v12  ;;  %v5536_v21 = vsel %vm3884_vm7, %v5519_v34, -inf  ;;  %v5538_v38 = vsel %vm3884_vm7, %v5520_v59, -inf }
 0x4a8   :  { %v5537_v39 = vmax.f32 %v5529_v32, %v5536_v21  ;;  %v5539_v40 = vmax.f32 %v5531_v19, %v5538_v38  ;;  %v5540_v48 = vsel %vm3884_vm7, %v5521_v31, -inf  ;;  %v5542_v44 = vsel %vm3884_vm7, %v5522_v25, -inf }
 0x4a9   :  { %v5795_v27 = vmax.f32 %v5793_v4, %v5794_v30  ;;  %v5541_v53 = vmax.f32 %v5533_v28, %v5540_v48  ;;  %v5543_v45 = vmax.f32 %v5535_v37, %v5542_v44  ;;  %v5545_v42 = vsel %vm5544_vm9, %v5523_v5, -inf }
 0x4aa   :  { %v5546_v26 = vmax.f32 %v5537_v39, %v5545_v42  ;;  %v5816_v29 = vmul.f32 %v5803_v33, %v9651_v2  ;;  %v5817_v49 = vmul.f32 %v5804_v46, %v9651_v2  ;;  %v5818_v51 = vmul.f32 %v5805_v0, %v9651_v2 }
 0x4ab   :  { %v5796_v54 = vrot.slane %v5795_v27, 1  ;;  %v5548_v52 = vmax.f32 %v5541_v53, %v5543_v45  ;;  %v5819_v57 = vmul.f32 %v5806_v3, %v9651_v2  ;;  %v5820_v58 = vmul.f32 %v5807_v17, %v9651_v2 }
 0x4ac   :  { %v5547_v1 = vmax.f32 %v5546_v26, %v5539_v40  ;;  %v5821_v63 = vmul.f32 %v5808_v35, %v9651_v2  ;;  %v5822_v8 = vmul.f32 %v5809_v47, %v9651_v2  ;;  %v5823_v9 = vmul.f32 %v5810_v55, %v9651_v2 }
 0x4ad   :  { %v5797_v14 = vmax.f32 %v5795_v27, %v5796_v54  ;;  %v5824_v43 = vmul.f32 %v5811_v61, %v9651_v2  ;;  %v5825_v18 = vmul.f32 %v5812_v16, %v9651_v2  ;;  %v5826_v20 = vmul.f32 %v5813_v41, %v9651_v2  ;;  %v5565_v16 = vld [vmem:[#allocation3 + $0x7c] sm:$0xff]  ;;  %v5566_v41 = vld [vmem:[#allocation3 + $0x84] sm:$0xff] }
 0x4ae   :  { %v5549_v34 = vmax.f32 %v5547_v1, %v5548_v52  ;;  %v5827_v59 = vmul.f32 %v5814_v60, %v9651_v2  ;;  %v5828_v56 = vmul.f32 %v5815_v15, %v9651_v2  ;;  %v5829_v31 = vadd.f32 %v5816_v29, %v9661_v50  ;;  %v5564_v1 = vld [vmem:[#allocation3 + $0x74] sm:$0xff]  ;;  %v5567_v15 = vld [vmem:[#allocation3 + $0x8c] sm:$0xff] }
 0x4af   :  { %v5798_v25 = vmul.f32 %v5797_v14, %v9737_v24  ;;  %v5830_v5 = vadd.f32 %v5817_v49, %v9661_v50  ;;  %v5831_v7 = vadd.f32 %v5818_v51, %v9661_v50  ;;  %v5832_v62 = vadd.f32 %v5819_v57, %v9661_v50  ;;  %v5562_v57 = vld [vmem:[#allocation3 + $0x64] sm:$0xff] }
 0x4b0   :  { %v5550_v13 = vrot.slane %v5549_v34, 4  ;;  %v5833_v6 = vadd.f32 %v5820_v58, %v9661_v50  ;;  %v5834_v4 = vadd.f32 %v5821_v63, %v9661_v50  ;;  %v5835_v36 = vadd.f32 %v5822_v8, %v9661_v50  ;;  %v5563_v58 = vld [vmem:[#allocation3 + $0x6c] sm:$0xff] }
 0x4b1   :  { %v5799_v22 = vsel %vm5557_vm10, %v5798_v25, 0.0  ;;  %v5836_v10 = vadd.f32 %v5823_v9, %v9661_v50  ;;  %v5837_v32 = vadd.f32 %v5824_v43, %v9661_v50  ;;  %v5838_v19 = vadd.f32 %v5825_v18, %v9661_v50  ;;  %v5568_v43 = vld [vmem:[#allocation3 + $0x94] sm:$0xff]  ;;  %v5569_v18 = vld [vmem:[#allocation3 + $0x9c] sm:$0xff] }
 0x4b2   :  { %5800 = vadd.xlane.f32.xlu1 %v5799_v22  ;;  %v5551_v28 = vmax.f32 %v5549_v34, %v5550_v13  ;;  %v5839_v12 = vadd.f32 %v5826_v20, %v9661_v50  ;;  %v5840_v30 = vadd.f32 %v5827_v59, %v9661_v50  ;;  %v5841_v37 = vadd.f32 %v5828_v56, %v9661_v50  ;;  %v5570_v56 = vld [vmem:[#allocation3 + $0xa4] sm:$0xff]  ;;  %v5572_v25 = vld [vmem:[#allocation3 + $0xb4] sm:$0xff] }
 0x4b3   :  { %v5842_v21 = vsel %vm3884_vm7, %v5829_v31, -inf  ;;  %v5843_v38 = vsel %vm3884_vm7, %v5830_v5, -inf  ;;  %v5844_v39 = vsel %vm3884_vm7, %v5831_v7, -inf  ;;  %v5845_v40 = vsel %vm3884_vm7, %v5832_v62, -inf  ;;  %v5571_v31 = vld [vmem:[#allocation3 + $0xac] sm:$0xff] }
 0x4b4   :  { %v5552_v48 = vrot.slane %v5551_v28, 2  ;;  %v5846_v44 = vsel %vm3884_vm7, %v5833_v6, -inf  ;;  %v5848_v27 = vsel %vm3884_vm7, %v5834_v4, -inf  ;;  %v5850_v53 = vsel %vm3884_vm7, %v5835_v36, -inf  ;;  %v5573_v6 = vld [vmem:[#allocation3 + $0xbc] sm:$0xff] }
 0x4b5   :  { %v5847_v45 = vmax.f32 %v5842_v21, %v5846_v44  ;;  %v5849_v42 = vmax.f32 %v5843_v38, %v5848_v27  ;;  %v5851_v33 = vmax.f32 %v5844_v39, %v5850_v53  ;;  %v5852_v46 = vsel %vm3884_vm7, %v5836_v10, -inf  ;;  %v5574_v4 = vld [vmem:[#allocation3 + $0xc4] sm:$0xf] }
 0x4b6   :  { %v5553_v0 = vmax.f32 %v5551_v28, %v5552_v48  ;;  %v5853_v26 = vmax.f32 %v5845_v40, %v5852_v46  ;;  %v5854_v3 = vsel %vm3884_vm7, %v5837_v32, -inf  ;;  %v5856_v17 = vsel %vm3884_vm7, %v5838_v19, -inf }
 0x4b7   :  { %v5855_v29 = vmax.f32 %v5847_v45, %v5854_v3  ;;  %v5857_v49 = vmax.f32 %v5849_v42, %v5856_v17  ;;  %v5858_v51 = vsel %vm3884_vm7, %v5839_v12, -inf  ;;  %v5860_v54 = vsel %vm3884_vm7, %v5840_v30, -inf }
 0x4b8   :  { %v5554_v52 = vrot.slane %v5553_v0, 1  ;;  %v5859_v35 = vmax.f32 %v5851_v33, %v5858_v51  ;;  %v5861_v47 = vmax.f32 %v5853_v26, %v5860_v54  ;;  %v5862_v55 = vsel %vm5544_vm9, %v5841_v37, -inf }
 0x4b9   :  { %v5863_v61 = vmax.f32 %v5855_v29, %v5862_v55  ;;  %v5575_v63 = vmul.f32 %v5562_v57, %v9651_v2  ;;  %v5576_v8 = vmul.f32 %v5563_v58, %v9651_v2  ;;  %v5577_v9 = vmul.f32 %v5564_v1, %v9651_v2 }
 0x4ba   :  { %v5555_v14 = vmax.f32 %v5553_v0, %v5554_v52  ;;  %v5865_v60 = vmax.f32 %v5859_v35, %v5861_v47  ;;  %v5578_v20 = vmul.f32 %v5565_v16, %v9651_v2  ;;  %v5579_v34 = vmul.f32 %v5566_v41, %v9651_v2 }
 0x4bb   :  { %v5864_v59 = vmax.f32 %v5863_v61, %v5857_v49  ;;  %v5580_v5 = vmul.f32 %v5567_v15, %v9651_v2  ;;  %v5581_v7 = vmul.f32 %v5568_v43, %v9651_v2  ;;  %v5582_v62 = vmul.f32 %v5569_v18, %v9651_v2 }
 0x4bc   :  { %v5556_v13 = vmul.f32 %v5555_v14, %v9737_v24  ;;  %v5583_v36 = vmul.f32 %v5570_v56, %v9651_v2  ;;  %v5584_v22 = vmul.f32 %v5571_v31, %v9651_v2  ;;  %v5585_v10 = vmul.f32 %v5572_v25, %v9651_v2  ;;  %v5887_v56 = vld [vmem:[#allocation3 + $0x210] sm:$0xff]  ;;  %v5888_v31 = vld [vmem:[#allocation3 + $0x218] sm:$0xff]  ;;  %v5890_v25 = vld [vmem:[#allocation3 + $0x228] sm:$0xff] }
 0x4bd   :  { %v5866_v32 = vmax.f32 %v5864_v59, %v5865_v60  ;;  %v5586_v19 = vmul.f32 %v5573_v6, %v9651_v2  ;;  %v5587_v28 = vmul.f32 %v5574_v4, %v9651_v2  ;;  %v5588_v12 = vadd.f32 %v5575_v63, %v9661_v50  ;;  %v5884_v60 = vld [vmem:[#allocation3 + $0x1f8] sm:$0xff]  ;;  %v5886_v59 = vld [vmem:[#allocation3 + $0x208] sm:$0xff] }
 0x4be   :  { %v5558_v30 = vsel %vm5557_vm10, %v5556_v13, 0.0  ;;  %v5589_v37 = vadd.f32 %v5576_v8, %v9661_v50  ;;  %v5590_v21 = vadd.f32 %v5577_v9, %v9661_v50  ;;  %v5591_v38 = vadd.f32 %v5578_v20, %v9661_v50 }
 0x4bf   :  { %5559 = vadd.xlane.f32.xlu0 %v5558_v30  ;;  %v5867_v39 = vrot.slane %v5866_v32, 4  ;;  %v5592_v40 = vadd.f32 %v5579_v34, %v9661_v50  ;;  %v5593_v48 = vadd.f32 %v5580_v5, %v9661_v50  ;;  %v5594_v44 = vadd.f32 %v5581_v7, %v9661_v50  ;;  %v5885_v34 = vld [vmem:[#allocation3 + $0x200] sm:$0xff] }
 0x4c0   :  { %v5595_v27 = vadd.f32 %v5582_v62, %v9661_v50  ;;  %v5596_v53 = vadd.f32 %v5583_v36, %v9661_v50  ;;  %v5597_v45 = vadd.f32 %v5584_v22, %v9661_v50  ;;  %v5598_v42 = vadd.f32 %v5585_v10, %v9661_v50  ;;  %v5889_v22 = vld [vmem:[#allocation3 + $0x220] sm:$0xff]  ;;  %v5891_v10 = vld [vmem:[#allocation3 + $0x230] sm:$0xff] }
 0x4c1   :  { %v5868_v33 = vmax.f32 %v5866_v32, %v5867_v39  ;;  %v5599_v46 = vadd.f32 %v5586_v19, %v9661_v50  ;;  %v5600_v0 = vadd.f32 %v5587_v28, %v9661_v50  ;;  %v5601_v26 = vsel %vm3884_vm7, %v5588_v12, -inf  ;;  %v5892_v32 = vld [vmem:[#allocation3 + $0x238] sm:$0xff]  ;;  %v5893_v28 = vld [vmem:[#allocation3 + $0x240] sm:$0xff]  ;;  %v5894_v12 = vld [vmem:[#allocation3 + $0x248] sm:$0xff] }
 0x4c2   :  { %v5602_v3 = vsel %vm3884_vm7, %v5589_v37, -inf  ;;  %v5603_v17 = vsel %vm3884_vm7, %v5590_v21, -inf  ;;  %v5604_v29 = vsel %vm3884_vm7, %v5591_v38, -inf  ;;  %v5605_v49 = vsel %vm3884_vm7, %v5592_v40, -inf }
 0x4c3   :  { %v5869_v51 = vrot.slane %v5868_v33, 2  ;;  %v5606_v54 = vmax.f32 %v5601_v26, %v5605_v49  ;;  %v5607_v52 = vsel %vm3884_vm7, %v5593_v48, -inf  ;;  %v5609_v35 = vsel %vm3884_vm7, %v5594_v44, -inf  ;;  %v5895_v48 = vld [vmem:[#allocation3 + $0x250] sm:$0xff]  ;;  %v5896_v44 = vld [vmem:[#allocation3 + $0x258] sm:$0xf] }
 0x4c4   :  { %v5608_v47 = vmax.f32 %v5602_v3, %v5607_v52  ;;  %v5610_v55 = vmax.f32 %v5603_v17, %v5609_v35  ;;  %v5611_v57 = vsel %vm3884_vm7, %v5595_v27, -inf  ;;  %v5613_v58 = vsel %vm3884_vm7, %v5596_v53, -inf }
 0x4c5   :  { %v5870_v1 = vmax.f32 %v5868_v33, %v5869_v51  ;;  %v5612_v61 = vmax.f32 %v5604_v29, %v5611_v57  ;;  %v5614_v16 = vmax.f32 %v5606_v54, %v5613_v58  ;;  %v5615_v41 = vsel %vm3884_vm7, %v5597_v45, -inf }
 0x4c6   :  { %v5616_v63 = vmax.f32 %v5608_v47, %v5615_v41  ;;  %v5617_v8 = vsel %vm3884_vm7, %v5598_v42, -inf  ;;  %v5619_v9 = vsel %vm3884_vm7, %v5599_v46, -inf  ;;  %v5621_v14 = vsel %vm5544_vm9, %v5600_v0, -inf }
 0x4c7   :  { %v5871_v15 = vrot.slane %v5870_v1, 1  ;;  %v5618_v43 = vmax.f32 %v5610_v55, %v5617_v8  ;;  %v5620_v18 = vmax.f32 %v5612_v61, %v5619_v9  ;;  %v5622_v20 = vmax.f32 %v5614_v16, %v5621_v14 }
 0x4c8   :  { %v5897_v5 = vmul.f32 %v5884_v60, %v9651_v2  ;;  %v5898_v7 = vmul.f32 %v5885_v34, %v9651_v2  ;;  %v5899_v62 = vmul.f32 %v5886_v59, %v9651_v2  ;;  %v5900_v13 = vmul.f32 %v5887_v56, %v9651_v2 }
 0x4c9   :  { %v5872_v6 = vmax.f32 %v5870_v1, %v5871_v15  ;;  %v5623_v4 = vmax.f32 %v5622_v20, %v5616_v63  ;;  %v5624_v36 = vmax.f32 %v5618_v43, %v5620_v18  ;;  %v5901_v19 = vmul.f32 %v5888_v31, %v9651_v2 }
 0x4ca   :  { %v5902_v30 = vmul.f32 %v5889_v22, %v9651_v2  ;;  %v5903_v37 = vmul.f32 %v5890_v25, %v9651_v2  ;;  %v5904_v21 = vmul.f32 %v5891_v10, %v9651_v2  ;;  %v5905_v38 = vmul.f32 %v5892_v32, %v9651_v2  ;;  %v5646_v10 = vld [vmem:[#allocation3 + $0xd8] sm:$0xff]  ;;  %v5647_v32 = vld [vmem:[#allocation3 + $0xe0] sm:$0xff] }
 0x4cb   :  { %v5873_v39 = vmul.f32 %v5872_v6, %v9737_v24  ;;  %v5625_v40 = vmax.f32 %v5623_v4, %v5624_v36  ;;  %v5906_v27 = vmul.f32 %v5893_v28, %v9651_v2  ;;  %v5907_v53 = vmul.f32 %v5894_v12, %v9651_v2  ;;  %v5644_v6 = vld [vmem:[#allocation3 + $0xc8] sm:$0xff]  ;;  %v5645_v4 = vld [vmem:[#allocation3 + $0xd0] sm:$0xff] }
 0x4cc   :  { %v5908_v45 = vmul.f32 %v5895_v48, %v9651_v2  ;;  %v5909_v42 = vmul.f32 %v5896_v44, %v9651_v2  ;;  %v5910_v33 = vadd.f32 %v5897_v5, %v9661_v50  ;;  %v5911_v46 = vadd.f32 %v5898_v7, %v9661_v50  ;;  %v5651_v44 = vld [vmem:[#allocation3 + $0x100] sm:$0xff] }
 0x4cd   :  { %v5874_v0 = vsel %vm5633_vm11, %v5873_v39, 0.0  ;;  %v5626_v26 = vrot.slane %v5625_v40, 4  ;;  %v5912_v3 = vadd.f32 %v5899_v62, %v9661_v50  ;;  %v5913_v17 = vadd.f32 %v5900_v13, %v9661_v50 }
 0x4ce   :  { %5875 = vadd.xlane.f32.xlu1 %v5874_v0  ;;  %v5914_v29 = vadd.f32 %v5901_v19, %v9661_v50  ;;  %v5915_v49 = vadd.f32 %v5902_v30, %v9661_v50  ;;  %v5916_v51 = vadd.f32 %v5903_v37, %v9661_v50  ;;  %v5917_v54 = vadd.f32 %v5904_v21, %v9661_v50  ;;  %v5648_v37 = vld [vmem:[#allocation3 + $0xe8] sm:$0xff]  ;;  %v5649_v21 = vld [vmem:[#allocation3 + $0xf0] sm:$0xff] }
 0x4cf   :  { %v5627_v52 = vmax.f32 %v5625_v40, %v5626_v26  ;;  %v5918_v35 = vadd.f32 %v5905_v38, %v9661_v50  ;;  %v5919_v47 = vadd.f32 %v5906_v27, %v9661_v50  ;;  %v5920_v55 = vadd.f32 %v5907_v53, %v9661_v50  ;;  %v5650_v38 = vld [vmem:[#allocation3 + $0xf8] sm:$0xff]  ;;  %v5652_v27 = vld [vmem:[#allocation3 + $0x108] sm:$0xff]  ;;  %v5653_v26 = vld [vmem:[#allocation3 + $0x110] sm:$0xff] }
 0x4d0   :  { %v5921_v57 = vadd.f32 %v5908_v45, %v9661_v50  ;;  %v5922_v58 = vadd.f32 %v5909_v42, %v9661_v50  ;;  %v5923_v1 = vsel %vm3884_vm7, %v5910_v33, -inf  ;;  %v5924_v61 = vsel %vm3884_vm7, %v5911_v46, -inf  ;;  %v5654_v53 = vld [vmem:[#allocation3 + $0x118] sm:$0xff] }
 0x4d1   :  { %v5628_v16 = vrot.slane %v5627_v52, 2  ;;  %v5925_v41 = vsel %vm3884_vm7, %v5912_v3, -inf  ;;  %v5926_v63 = vsel %vm3884_vm7, %v5913_v17, -inf  ;;  %v5927_v8 = vsel %vm3884_vm7, %v5914_v29, -inf  ;;  %v5655_v3 = vld [vmem:[#allocation3 + $0x120] sm:$0xff] }
 0x4d2   :  { %v5928_v9 = vmax.f32 %v5923_v1, %v5927_v8  ;;  %v5929_v14 = vsel %vm3884_vm7, %v5915_v49, -inf  ;;  %v5931_v60 = vsel %vm3884_vm7, %v5916_v51, -inf  ;;  %v5933_v15 = vsel %vm3884_vm7, %v5917_v54, -inf  ;;  %v5656_v17 = vld [vmem:[#allocation3 + $0x128] sm:$0xf] }
 0x4d3   :  { %v5629_v43 = vmax.f32 %v5627_v52, %v5628_v16  ;;  %v5930_v18 = vmax.f32 %v5924_v61, %v5929_v14  ;;  %v5932_v20 = vmax.f32 %v5925_v41, %v5931_v60  ;;  %v5934_v34 = vmax.f32 %v5926_v63, %v5933_v15 }
 0x4d4   :  { %v5935_v59 = vsel %vm3884_vm7, %v5918_v35, -inf  ;;  %v5937_v56 = vsel %vm3884_vm7, %v5919_v47, -inf  ;;  %v5939_v31 = vsel %vm3884_vm7, %v5920_v55, -inf  ;;  %v5941_v25 = vsel %vm3884_vm7, %v5921_v57, -inf }
 0x4d5   :  { %v5630_v5 = vrot.slane %v5629_v43, 1  ;;  %v5936_v7 = vmax.f32 %v5928_v9, %v5935_v59  ;;  %v5938_v62 = vmax.f32 %v5930_v18, %v5937_v56  ;;  %v5940_v13 = vmax.f32 %v5932_v20, %v5939_v31 }
 0x4d6   :  { %v5942_v36 = vmax.f32 %v5934_v34, %v5941_v25  ;;  %v5943_v22 = vsel %vm5544_vm9, %v5922_v58, -inf  ;;  %v5657_v19 = vmul.f32 %v5644_v6, %v9651_v2  ;;  %v5658_v28 = vmul.f32 %v5645_v4, %v9651_v2 }
 0x4d7   :  { %v5631_v12 = vmax.f32 %v5629_v43, %v5630_v5  ;;  %v5944_v30 = vmax.f32 %v5936_v7, %v5943_v22  ;;  %v5659_v39 = vmul.f32 %v5646_v10, %v9651_v2  ;;  %v5660_v40 = vmul.f32 %v5647_v32, %v9651_v2 }
 0x4d8   :  { %v5946_v48 = vmax.f32 %v5940_v13, %v5942_v36  ;;  %v5661_v45 = vmul.f32 %v5648_v37, %v9651_v2  ;;  %v5662_v42 = vmul.f32 %v5649_v21, %v9651_v2  ;;  %v5663_v33 = vmul.f32 %v5650_v38, %v9651_v2 }
 0x4d9   :  { %v5632_v46 = vmul.f32 %v5631_v12, %v9737_v24  ;;  %v5945_v0 = vmax.f32 %v5944_v30, %v5938_v62  ;;  %v5664_v29 = vmul.f32 %v5651_v44, %v9651_v2  ;;  %v5665_v49 = vmul.f32 %v5652_v27, %v9651_v2 }
 0x4da   :  { %v5666_v51 = vmul.f32 %v5653_v26, %v9651_v2  ;;  %v5667_v54 = vmul.f32 %v5654_v53, %v9651_v2  ;;  %v5668_v52 = vmul.f32 %v5655_v3, %v9651_v2  ;;  %v5669_v35 = vmul.f32 %v5656_v17, %v9651_v2 }
 0x4db   :  { %v5634_v47 = vsel %vm5633_vm11, %v5632_v46, 0.0  ;;  %v5947_v55 = vmax.f32 %v5945_v0, %v5946_v48  ;;  %v5670_v57 = vadd.f32 %v5657_v19, %v9661_v50  ;;  %v5671_v58 = vadd.f32 %v5658_v28, %v9661_v50 }
 0x4dc   :  { %5635 = vadd.xlane.f32.xlu0 %v5634_v47  ;;  %v5672_v1 = vadd.f32 %v5659_v39, %v9661_v50  ;;  %v5673_v61 = vadd.f32 %v5660_v40, %v9661_v50  ;;  %v5674_v16 = vadd.f32 %v5661_v45, %v9661_v50  ;;  %v5675_v41 = vadd.f32 %v5662_v42, %v9661_v50 }
 0x4dd   :  { %v5948_v63 = vrot.slane %v5947_v55, 4  ;;  %v5676_v8 = vadd.f32 %v5663_v33, %v9661_v50  ;;  %v5677_v2 = vadd.f32 %v5664_v29, %v9661_v50  ;;  %v5678_v9 = vadd.f32 %v5665_v49, %v9661_v50 }
 0x4de   :  { %v5679_v14 = vadd.f32 %v5666_v51, %v9661_v50  ;;  %v5680_v60 = vadd.f32 %v5667_v54, %v9661_v50  ;;  %v5681_v15 = vadd.f32 %v5668_v52, %v9661_v50  ;;  %v5682_v43 = vadd.f32 %v5669_v35, %v9661_v50  ;;  %v5472_v54 = vld [vmem:[#allocation4] sm:$0x1] }
 0x4df   :  { %v5949_v18 = vmax.f32 %v5947_v55, %v5948_v63  ;;  %v5683_v20 = vsel %vm3884_vm7, %v5670_v57, -inf  ;;  %v5684_v34 = vsel %vm3884_vm7, %v5671_v58, -inf  ;;  %v5685_v59 = vsel %vm3884_vm7, %v5672_v1, -inf }
 0x4e0   :  { %v5686_v56 = vsel %vm3884_vm7, %v5673_v61, -inf  ;;  %v5687_v31 = vsel %vm3884_vm7, %v5674_v16, -inf  ;;  %v5689_v25 = vsel %vm3884_vm7, %v5675_v41, -inf  ;;  %v5691_v5 = vsel %vm3884_vm7, %v5676_v8, -inf }
 0x4e1   :  { %v5950_v7 = vrot.slane %v5949_v18, 2  ;;  %v5688_v62 = vmax.f32 %v5683_v20, %v5687_v31  ;;  %v5690_v13 = vmax.f32 %v5684_v34, %v5689_v25  ;;  %v5692_v6 = vmax.f32 %v5685_v59, %v5691_v5 }
 0x4e2   :  { %v5693_v50 = vsel %vm3884_vm7, %v5677_v2, -inf  ;;  %v5695_v4 = vsel %vm3884_vm7, %v5678_v9, -inf  ;;  %v5699_v32 = vsel %vm3884_vm7, %v5680_v60, -inf  ;;  %v5697_v19 = vsel %vm3884_vm7, %v5679_v14, -inf }
 0x4e3   :  { %v5951_v36 = vmax.f32 %v5949_v18, %v5950_v7  ;;  %v5694_v22 = vmax.f32 %v5686_v56, %v5693_v50  ;;  %v5696_v10 = vmax.f32 %v5688_v62, %v5695_v4  ;;  %v5700_v28 = vmax.f32 %v5692_v6, %v5699_v32 }
 0x4e4   :  { %v5701_v12 = vsel %vm3884_vm7, %v5681_v15, -inf  ;;  %v5703_v30 = vsel %vm5544_vm9, %v5682_v43, -inf  ;;  %v5698_v21 = vmax.f32 %v5690_v13, %v5697_v19  ;;  %v5722_v35 = vsub.s32 2, %v8360_v11 }
 0x4e5   :  { %v5952_v37 = vrot.slane %v5951_v36, 1  ;;  %v5702_v38 = vmax.f32 %v5694_v22, %v5701_v12  ;;  %v5704_v39 = vmax.f32 %v5696_v10, %v5703_v30 }
 0x4e7   :  { %v5953_v40 = vmax.f32 %v5951_v36, %v5952_v37  ;;  %v5705_v48 = vmax.f32 %v5704_v39, %v5698_v21  ;;  %v5706_v44 = vmax.f32 %v5700_v28, %v5702_v38 }
 0x4e9   :  { %v5954_v27 = vmul.f32 %v5953_v40, %v9737_v24  ;;  %v5707_v53 = vmax.f32 %v5705_v48, %v5706_v44 }
 0x4eb   :  { %v5955_v45 = vsel %vm5715_vm12, %v5954_v27, 0.0  ;;  %v5708_v42 = vrot.slane %v5707_v53, 4 }
 0x4ec   :  { %5956 = vadd.xlane.f32.xlu1 %v5955_v45 }
 0x4ed   :  { %v5709_v33 = vmax.f32 %v5707_v53, %v5708_v42 }
 0x4ef   :  { %v5710_v46 = vrot.slane %v5709_v33, 2 }
 0x4f1   :  { %v5711_v0 = vmax.f32 %v5709_v33, %v5710_v46 }
 0x4f3   :  { %v5712_v26 = vrot.slane %v5711_v0, 1 }
 0x4f5   :  { %v5713_v3 = vmax.f32 %v5711_v0, %v5712_v26 }
 0x4f7   :  { %v5714_v17 = vmul.f32 %v5713_v3, %v9737_v24 }
 0x4f9   :  { %v5716_v29 = vsel %vm5715_vm12, %v5714_v17, 0.0 }
 0x4fa   :  { %5717 = vadd.xlane.f32.xlu0 %v5716_v29 }
 0x53f   :  { %v5801_v49 = vpop.xlane.xlu1 %5800 }
 0x540   :  { %v5802_v47 = vadd.f32 %v5801_v49, %v5472_v54 }
 0x54c   :  { %v5560_v1 = vpop.xlane.xlu0 %5559 }
 0x54d   :  { %v5561_v41 = vadd.f32 %v5560_v1, %v5472_v54 }
 0x55b   :  { %v5876_v51 = vpop.xlane.xlu1 %5875 }
 0x55c   :  { %v5881_v52 = vrot.slane %v5876_v51, %v8378_v23 }
 0x55e   :  { %v5883_v57 = vadd.f32 %v5881_v52, %v5802_v47 }
 0x569   :  { %v5636_v24 = vpop.xlane.xlu0 %5635 }
 0x56a   :  { %v5641_v16 = vrot.slane %v5636_v24, %v8378_v23 }
 0x56c   :  { %v5643_v8 = vadd.f32 %v5641_v16, %v5561_v41 }
 0x579   :  { %v5957_v55 = vpop.xlane.xlu1 %5956 }
 0x57a   :  { %v5962_v58 = vrot.slane %v5957_v55, %v5722_v35 }
 0x57c   :  { %v5964_v61 = vadd.f32 %v5962_v58, %v5883_v57 }
 0x57e   :  { %5965 = vst.msk [vmem:[%s9925_s11 + $0x1] sm:$0x1] %vm5726_vm13, %v5964_v61 }
 0x587   :  { %v5718_v63 = vpop.xlane.xlu0 %5717 }
 0x588   :  { %v5723_v2 = vrot.slane %v5718_v63, %v5722_v35 }
 0x58a   :  { %v5725_v9 = vadd.f32 %v5723_v2, %v5643_v8 }
 0x58c   :  { %5727 = vst.msk [vmem:[%s9925_s11] sm:$0x1] %vm5726_vm13, %v5725_v9 }

</bundles_post_ra>
